<compile_context>
chip_gen: v5e
topology: v5e:2x2
jax: 0.10.0
libtpu: 0.0.40
codegen_flags: <defaults>
</compile_context>

<pallas_src>
import jax
import jax.numpy as jnp
from jax.experimental import pallas as pl
from jax.experimental.pallas import tpu as pltpu

CHANNELS   = 32
PE_DIM     = 8
WALK_STEP  = 8
NUM_LAYERS = 2
HEADS      = 8
ATOM_DIM   = 62
BOND_DIM   = 21
BN_EPS     = 1e-5


# ------------------------------ fused kernel -------------------------------

def _gps_kernel(
    # graph data + precomputed index matrices / vectors
    x_raw_ref, pe_ref, ea_raw_ref,
    g_src_ref, s_dst_ref, scat_ref, gath_ref,
    gop_r_ref, gop_c_ref, valid_ref, pool_ref,
    # input-embedding weights (concat expressed as column-padded sums; pe BN folded)
    atom_w_ref, atom_b_ref, pe_w_ref, pe_b_ref, bond_w_ref, bond_b_ref,
    # stacked per-layer weights (weights bf16, biases / BN affines f32)
    glw_ref, gl_b_ref, nn0_w_ref, nn0_b_ref, nn1_w_ref, nn1_b_ref,
    in_w_ref, in_b_ref, out_w_ref, out_b_ref,
    m0_w_ref, m0_b_ref, m1_w_ref, m1_b_ref,
    n1s_ref, n1t_ref, n2s_ref, n2t_ref, n3s_ref, n3t_ref,
    # output
    o_ref,
):
    f32, bf16 = jnp.float32, jnp.bfloat16

    def mm(a, w):        # weight matmul: bf16 inputs (weights pre-cast), f32 acc
        return jax.lax.dot_general(
            a.astype(bf16), w, (((1,), (0,)), ((), ())),
            preferred_element_type=f32)

    def mm_f32(a, b):    # one-hot gather/scatter/pool matmuls: keep f32 exact
        return jax.lax.dot_general(
            a, b, (((1,), (0,)), ((), ())), preferred_element_type=f32)

    def mm_nt(a, b):     # a @ b.T (contract last dims) for attention scores
        return jax.lax.dot_general(
            a, b, (((1,), (1,)), ((), ())), preferred_element_type=f32)

    def gelu(y):         # exact (erf) GELU, matching torch.nn.GELU()
        return 0.5 * y * (1.0 + jax.lax.erf(y * 0.7071067811865476))

    num_layers = nn0_w_ref.shape[0]
    C = o_ref.shape[1]
    heads = HEADS
    dh = C // heads
    scale = 1.0 / (dh ** 0.5)

    # ---- input embeddings: cat(atom_emb(x), pe_lin(pe_norm(pe))) as padded sums ----
    x = (mm(x_raw_ref[...], atom_w_ref[...]) + atom_b_ref[...]
         + mm(pe_ref[...], pe_w_ref[...]) + pe_b_ref[...])              # [N, C]
    ea = mm(ea_raw_ref[...], bond_w_ref[...]) + bond_b_ref[...]         # [E, C]

    g_src = g_src_ref[...]      # [E, N] gather x_src
    s_dst = s_dst_ref[...]      # [N, E] scatter-add to dst
    scat = scat_ref[...]        # [BL, N] to_dense_batch
    gath = gath_ref[...]        # [N, BL] dense -> node
    BL = scat.shape[0]

    # attention additive mask (key-padding + block-diagonal), built from vectors
    same_graph = gop_r_ref[...] == gop_c_ref[...]                       # [BL, BL]
    abias = jnp.where(same_graph & (valid_ref[...] > 0.5), 0.0, -1e9).astype(f32)

    # layer-invariant edge-embedding matmul, hoisted: [E, num_layers*C]
    e_lin_all = mm(ea.astype(bf16), glw_ref[...])

    for l in range(num_layers):
        # ---- GINEConv: nn((1+eps)*x + scatter_add(relu(x_src + lin(edge_attr)))) ----
        e_lin = e_lin_all[:, l * C:(l + 1) * C] + gl_b_ref[l]
        msg = jnp.maximum(mm_f32(g_src, x) + e_lin, 0.0)
        h = mm_f32(s_dst, msg) + x                                      # eps = 0
        h = gelu(mm(h, nn0_w_ref[l]) + nn0_b_ref[l])
        h = mm(h, nn1_w_ref[l]) + nn1_b_ref[l]
        h_local = (h + x) * n1s_ref[l] + n1t_ref[l]     # Dropout=id; BN folded affine

        # ---- global multi-head attention on the dense-batched nodes ----
        dense = mm_f32(scat, x)                                         # [BL, C]
        qkv = mm(dense, in_w_ref[l]) + in_b_ref[l]                      # [BL, 3C]
        q_all = (qkv[:, :C] * scale).astype(bf16)
        k_all = qkv[:, C:2 * C].astype(bf16)
        v_all = qkv[:, 2 * C:].astype(bf16)

        # per-head scores stacked sublane-wise, one softmax pass for all heads
        s_list = []
        for hh in range(heads):
            sl = slice(hh * dh, (hh + 1) * dh)
            s_list.append(mm_nt(q_all[:, sl], k_all[:, sl]) + abias)    # [BL, BL]
        s_all = jnp.concatenate(s_list, axis=0)                         # [H*BL, BL]
        p_all = jnp.exp(s_all - jnp.max(s_all, axis=-1, keepdims=True))
        p_all = p_all * pl.reciprocal(
            jnp.sum(p_all, axis=-1, keepdims=True), approx=True)
        p_all = p_all.astype(bf16)

        # per-head p@v written to lane slices, then ONE fused out-projection
        pv_list = []
        for hh in range(heads):
            p_h = p_all[hh * BL:(hh + 1) * BL, :]                       # [BL, BL]
            v_h = v_all[:, hh * dh:(hh + 1) * dh]                       # [BL, dh]
            pv_list.append(mm(p_h, v_h))                                # [BL, dh]
        attn_cat = jnp.concatenate(pv_list, axis=-1)                    # [BL, C]
        attn = mm(attn_cat, out_w_ref[l]) + out_b_ref[l]                # [BL, C]

        h_attn = mm_f32(gath, attn)                                     # [N, C]
        h_attn = (h_attn + x) * n2s_ref[l] + n2t_ref[l]

        # ---- combine + feed-forward MLP ----
        out = h_local + h_attn
        mlp = jnp.maximum(mm(out, m0_w_ref[l]) + m0_b_ref[l], 0.0)
        mlp = mm(mlp, m1_w_ref[l]) + m1_b_ref[l]
        x = (out + mlp) * n3s_ref[l] + n3t_ref[l]

    # ---- global_mean_pool ----
    o_ref[...] = mm_f32(pool_ref[...], x)


# --------------------------- parameter construction ------------------------

def init_linear(key, fan_in, fan_out):
    kw, kb = jax.random.split(key)
    bound = 1.0 / (fan_in ** 0.5)
    w = jax.random.uniform(kw, (fan_in, fan_out), jnp.float32, -bound, bound)
    b = jax.random.uniform(kb, (fan_out,), jnp.float32, -bound, bound)
    return w, b


def init_bn(c):
    return (jnp.ones((c,), jnp.float32), jnp.zeros((c,), jnp.float32),
            jnp.zeros((c,), jnp.float32), jnp.ones((c,), jnp.float32))


def init_params(key):
    keys = jax.random.split(key, 4 + NUM_LAYERS)
    params = {
        "atom_emb": init_linear(keys[0], ATOM_DIM, CHANNELS - PE_DIM),
        "bond_emb": init_linear(keys[1], BOND_DIM, CHANNELS),
        "pe_lin":   init_linear(keys[2], WALK_STEP, PE_DIM),
        "pe_norm":  init_bn(WALK_STEP),
        "layers":   [],
    }
    for l in range(NUM_LAYERS):
        lk = jax.random.split(keys[4 + l], 7)
        in_w, in_b = init_linear(lk[3], CHANNELS, 3 * CHANNELS)
        out_w, out_b = init_linear(lk[4], CHANNELS, CHANNELS)
        params["layers"].append({
            "gine_lin": init_linear(lk[0], CHANNELS, CHANNELS),   # GINEConv.lin
            "gine_nn0": init_linear(lk[1], CHANNELS, CHANNELS),   # nn: Linear,GELU,Linear
            "gine_nn1": init_linear(lk[2], CHANNELS, CHANNELS),
            "attn": {"in_w": in_w, "in_b": in_b, "out_w": out_w, "out_b": out_b},
            "mlp0": init_linear(lk[5], CHANNELS, 2 * CHANNELS),
            "mlp1": init_linear(lk[6], 2 * CHANNELS, CHANNELS),
            "norm1": init_bn(CHANNELS),
            "norm2": init_bn(CHANNELS),
            "norm3": init_bn(CHANNELS),
        })
    return params


# ------------------------------- GPS forward -------------------------------

def gps_forward(params, x_raw, pe, edge_index, edge_attr_raw, batch,
                num_graphs, max_nodes):
    f32, bf16 = jnp.float32, jnp.bfloat16
    N = x_raw.shape[0]
    C = CHANNELS
    B, L = num_graphs, max_nodes
    BL = B * L
    BL_pad = ((BL + 7) // 8) * 8          # sublane-align the dense-batch length

    # ---- loop-invariant graph bookkeeping (plain JAX, computed once) ----
    src, dst = edge_index[0], edge_index[1]
    g_src = jax.nn.one_hot(src, N, dtype=f32)                  # [E, N]
    s_dst = jax.nn.one_hot(dst, N, dtype=f32).T                # [N, E]

    graph_ids = jnp.arange(B, dtype=batch.dtype)
    counts = jnp.sum(batch[None, :] == graph_ids[:, None], axis=1)
    ptr = jnp.concatenate([jnp.zeros((1,), counts.dtype), jnp.cumsum(counts)[:-1]])
    pos = jnp.arange(N, dtype=batch.dtype) - ptr[batch]
    slot = batch * L + pos                                     # dense-batch slot per node

    scat = jnp.zeros((BL_pad, N), f32).at[slot, jnp.arange(N)].set(1.0)  # to_dense_batch
    gath = scat.T
    valid = jnp.zeros((BL_pad,), f32).at[slot].set(1.0)
    gop = jnp.concatenate([jnp.repeat(jnp.arange(B), L),
                           jnp.full((BL_pad - BL,), -1)]).astype(f32)
    gop_r = gop.reshape(BL_pad, 1)
    gop_c = gop.reshape(1, BL_pad)
    valid_c = valid.reshape(1, BL_pad)
    pool = (graph_ids[:, None] == batch[None, :]).astype(f32) / counts[:, None].astype(f32)

    # ---- fold BatchNorm (eval) + pack weights (bf16), once, at trace time ----
    def fold_bn(bn):
        g, b, m, v = bn
        s = g / jnp.sqrt(v + BN_EPS)
        return s, b - m * s

    aw, ab = params["atom_emb"]
    pw, pb = params["pe_lin"]
    ps, pt = fold_bn(params["pe_norm"])
    atom_w = jnp.zeros((ATOM_DIM, C), f32).at[:, :C - PE_DIM].set(aw).astype(bf16)
    atom_b = jnp.zeros((1, C), f32).at[0, :C - PE_DIM].set(ab)
    pe_w = jnp.zeros((WALK_STEP, C), f32).at[:, C - PE_DIM:].set(ps[:, None] * pw).astype(bf16)
    pe_b = jnp.zeros((1, C), f32).at[0, C - PE_DIM:].set(pt @ pw + pb)
    bw, bb = params["bond_emb"]
    bond_w, bond_b = bw.astype(bf16), bb.reshape(1, C)

    layers = params["layers"]

    def stack_w(name):
        return jnp.stack([lp[name][0] for lp in layers]).astype(bf16)

    def stack_b(name):
        return jnp.stack([lp[name][1].reshape(1, -1) for lp in layers])

    # layer-invariant edge linear: concat along output columns -> one matmul in-kernel
    glw_cat = jnp.concatenate([lp["gine_lin"][0] for lp in layers], axis=1).astype(bf16)
    gl_b = stack_b("gine_lin")
    nn0_w, nn0_b = stack_w("gine_nn0"), stack_b("gine_nn0")
    nn1_w, nn1_b = stack_w("gine_nn1"), stack_b("gine_nn1")
    m0_w, m0_b = stack_w("mlp0"), stack_b("mlp0")
    m1_w, m1_b = stack_w("mlp1"), stack_b("mlp1")

    # fused attention weights: [L, C, 3C] in-proj, [L, C, C] out-proj
    in_w = jnp.stack([lp["attn"]["in_w"] for lp in layers]).astype(bf16)
    in_b = jnp.stack([lp["attn"]["in_b"].reshape(1, 3 * C) for lp in layers])
    out_w = jnp.stack([lp["attn"]["out_w"] for lp in layers]).astype(bf16)
    out_b = jnp.stack([lp["attn"]["out_b"].reshape(1, C) for lp in layers])

    def stack_bn(name):
        st = [fold_bn(lp[name]) for lp in layers]
        return (jnp.stack([s.reshape(1, C) for s, _ in st]),
                jnp.stack([t.reshape(1, C) for _, t in st]))

    n1s, n1t = stack_bn("norm1")
    n2s, n2t = stack_bn("norm2")
    n3s, n3t = stack_bn("norm3")

    inputs = (x_raw, pe, edge_attr_raw,
              g_src, s_dst, scat, gath, gop_r, gop_c, valid_c, pool,
              atom_w, atom_b, pe_w, pe_b, bond_w, bond_b,
              glw_cat, gl_b, nn0_w, nn0_b, nn1_w, nn1_b,
              in_w, in_b, out_w, out_b,
              m0_w, m0_b, m1_w, m1_b,
              n1s, n1t, n2s, n2t, n3s, n3t)

    def full_spec(a):
        nd = a.ndim
        return pl.BlockSpec(a.shape, lambda i, _nd=nd: (0,) * _nd)

    # TODO(synk): at realistic N/E the O(N*E) one-hot gather/scatter matrices must be
    # replaced by scalar-prefetch / manual-DMA index gathers and the kernel tiled over
    # an E/BL grid axis; a "parallel" graph axis should then be added for v7x megacore
    # (grid=(1,) keeps everything on one TensorCore). At this toy size a single
    # VMEM-resident grid step is optimal on all generations.
    return pl.pallas_call(
        _gps_kernel,
        out_shape=jax.ShapeDtypeStruct((B, C), f32),
        grid=(1,),
        in_specs=[full_spec(a) for a in inputs],
        out_specs=pl.BlockSpec((B, C), lambda i: (0, 0)),
        compiler_params=pltpu.CompilerParams(
            dimension_semantics=("arbitrary",),
            vmem_limit_bytes=32 * 1024 * 1024),
    )(*inputs)


# ----------------------------------- main -----------------------------------

if __name__ == "__main__":
    key = jax.random.PRNGKey(0)
    pkey, xkey, pekey, ekey = jax.random.split(key, 4)
    params = init_params(pkey)

    # two small graphs (10 and 6 nodes), ring topology with both edge directions
    sizes = [10, 6]
    num_graphs = len(sizes)
    N = sum(sizes)
    max_nodes = max(sizes)
    batch = jnp.concatenate(
        [jnp.full((s,), g, jnp.int32) for g, s in enumerate(sizes)])

    srcs, dsts = [], []
    off = 0
    for s in sizes:
        for i in range(s):
            srcs += [off + i, off + (i + 1) % s]
            dsts += [off + (i + 1) % s, off + i]
        off += s
    edge_index = jnp.array([srcs, dsts], dtype=jnp.int32)       # [2, 32]
    E = edge_index.shape[1]

    x_raw = jax.random.normal(xkey, (N, ATOM_DIM), jnp.float32)          # [16, 62]
    pe = jax.random.normal(pekey, (N, WALK_STEP), jnp.float32)           # [16, 8]
    edge_attr_raw = jax.random.normal(ekey, (E, BOND_DIM), jnp.float32)  # [32, 21]

    gps_fn = jax.jit(gps_forward, static_argnums=(6, 7))
    out = gps_fn(params, x_raw, pe, edge_index, edge_attr_raw, batch,
                 num_graphs, max_nodes)
    out = jax.block_until_ready(out)
    assert out.shape == (num_graphs, CHANNELS)
    assert bool(jnp.all(jnp.isfinite(out)))
    print("KERNEL_OK")
</pallas_src>

<mosaic_0001>
module attributes {stable_mosaic.version = 11 : i64} {
  func.func @_gps_kernel(%arg0: i32, %arg1: memref<16x62xf32, #tpu.memory_space<vmem>>, %arg2: memref<16x8xf32, #tpu.memory_space<vmem>>, %arg3: memref<32x21xf32, #tpu.memory_space<vmem>>, %arg4: memref<32x16xf32, #tpu.memory_space<vmem>>, %arg5: memref<16x32xf32, #tpu.memory_space<vmem>>, %arg6: memref<24x16xf32, #tpu.memory_space<vmem>>, %arg7: memref<16x24xf32, #tpu.memory_space<vmem>>, %arg8: memref<24x1xf32, #tpu.memory_space<vmem>>, %arg9: memref<1x24xf32, #tpu.memory_space<vmem>>, %arg10: memref<1x24xf32, #tpu.memory_space<vmem>>, %arg11: memref<2x16xf32, #tpu.memory_space<vmem>>, %arg12: memref<62x32xbf16, #tpu.memory_space<vmem>>, %arg13: memref<1x32xf32, #tpu.memory_space<vmem>>, %arg14: memref<8x32xbf16, #tpu.memory_space<vmem>>, %arg15: memref<1x32xf32, #tpu.memory_space<vmem>>, %arg16: memref<21x32xbf16, #tpu.memory_space<vmem>>, %arg17: memref<1x32xf32, #tpu.memory_space<vmem>>, %arg18: memref<32x64xbf16, #tpu.memory_space<vmem>>, %arg19: memref<2x1x32xf32, #tpu.memory_space<vmem>>, %arg20: memref<2x32x32xbf16, #tpu.memory_space<vmem>>, %arg21: memref<2x1x32xf32, #tpu.memory_space<vmem>>, %arg22: memref<2x32x32xbf16, #tpu.memory_space<vmem>>, %arg23: memref<2x1x32xf32, #tpu.memory_space<vmem>>, %arg24: memref<2x32x96xbf16, #tpu.memory_space<vmem>>, %arg25: memref<2x1x96xf32, #tpu.memory_space<vmem>>, %arg26: memref<2x32x32xbf16, #tpu.memory_space<vmem>>, %arg27: memref<2x1x32xf32, #tpu.memory_space<vmem>>, %arg28: memref<2x32x64xbf16, #tpu.memory_space<vmem>>, %arg29: memref<2x1x64xf32, #tpu.memory_space<vmem>>, %arg30: memref<2x64x32xbf16, #tpu.memory_space<vmem>>, %arg31: memref<2x1x32xf32, #tpu.memory_space<vmem>>, %arg32: memref<2x1x32xf32, #tpu.memory_space<vmem>>, %arg33: memref<2x1x32xf32, #tpu.memory_space<vmem>>, %arg34: memref<2x1x32xf32, #tpu.memory_space<vmem>>, %arg35: memref<2x1x32xf32, #tpu.memory_space<vmem>>, %arg36: memref<2x1x32xf32, #tpu.memory_space<vmem>>, %arg37: memref<2x1x32xf32, #tpu.memory_space<vmem>>, %arg38: memref<2x32xf32, #tpu.memory_space<vmem>>) attributes {dimension_semantics = [#tpu.dimension_semantics<arbitrary>], iteration_bounds = array<i64: 1>, scalar_prefetch = 0 : i64, scratch_operands = 0 : i64, tpu.core_type = #tpu.core_type<tc>, window_params = [{pipeline_mode = #tpu.pipeline_mode<synchronous>, transform_indices = @transform_0, window_bounds = array<i64: 16, 62>}, {pipeline_mode = #tpu.pipeline_mode<synchronous>, transform_indices = @transform_1, window_bounds = array<i64: 16, 8>}, {pipeline_mode = #tpu.pipeline_mode<synchronous>, transform_indices = @transform_2, window_bounds = array<i64: 32, 21>}, {pipeline_mode = #tpu.pipeline_mode<synchronous>, transform_indices = @transform_3, window_bounds = array<i64: 32, 16>}, {pipeline_mode = #tpu.pipeline_mode<synchronous>, transform_indices = @transform_4, window_bounds = array<i64: 16, 32>}, {pipeline_mode = #tpu.pipeline_mode<synchronous>, transform_indices = @transform_5, window_bounds = array<i64: 24, 16>}, {pipeline_mode = #tpu.pipeline_mode<synchronous>, transform_indices = @transform_6, window_bounds = array<i64: 16, 24>}, {pipeline_mode = #tpu.pipeline_mode<synchronous>, transform_indices = @transform_7, window_bounds = array<i64: 24, 1>}, {pipeline_mode = #tpu.pipeline_mode<synchronous>, transform_indices = @transform_8, window_bounds = array<i64: 1, 24>}, {pipeline_mode = #tpu.pipeline_mode<synchronous>, transform_indices = @transform_9, window_bounds = array<i64: 1, 24>}, {pipeline_mode = #tpu.pipeline_mode<synchronous>, transform_indices = @transform_10, window_bounds = array<i64: 2, 16>}, {pipeline_mode = #tpu.pipeline_mode<synchronous>, transform_indices = @transform_11, window_bounds = array<i64: 62, 32>}, {pipeline_mode = #tpu.pipeline_mode<synchronous>, transform_indices = @transform_12, window_bounds = array<i64: 1, 32>}, {pipeline_mode = #tpu.pipeline_mode<synchronous>, transform_indices = @transform_13, window_bounds = array<i64: 8, 32>}, {pipeline_mode = #tpu.pipeline_mode<synchronous>, transform_indices = @transform_14, window_bounds = array<i64: 1, 32>}, {pipeline_mode = #tpu.pipeline_mode<synchronous>, transform_indices = @transform_15, window_bounds = array<i64: 21, 32>}, {pipeline_mode = #tpu.pipeline_mode<synchronous>, transform_indices = @transform_16, window_bounds = array<i64: 1, 32>}, {pipeline_mode = #tpu.pipeline_mode<synchronous>, transform_indices = @transform_17, window_bounds = array<i64: 32, 64>}, {pipeline_mode = #tpu.pipeline_mode<synchronous>, transform_indices = @transform_18, window_bounds = array<i64: 2, 1, 32>}, {pipeline_mode = #tpu.pipeline_mode<synchronous>, transform_indices = @transform_19, window_bounds = array<i64: 2, 32, 32>}, {pipeline_mode = #tpu.pipeline_mode<synchronous>, transform_indices = @transform_20, window_bounds = array<i64: 2, 1, 32>}, {pipeline_mode = #tpu.pipeline_mode<synchronous>, transform_indices = @transform_21, window_bounds = array<i64: 2, 32, 32>}, {pipeline_mode = #tpu.pipeline_mode<synchronous>, transform_indices = @transform_22, window_bounds = array<i64: 2, 1, 32>}, {pipeline_mode = #tpu.pipeline_mode<synchronous>, transform_indices = @transform_23, window_bounds = array<i64: 2, 32, 96>}, {pipeline_mode = #tpu.pipeline_mode<synchronous>, transform_indices = @transform_24, window_bounds = array<i64: 2, 1, 96>}, {pipeline_mode = #tpu.pipeline_mode<synchronous>, transform_indices = @transform_25, window_bounds = array<i64: 2, 32, 32>}, {pipeline_mode = #tpu.pipeline_mode<synchronous>, transform_indices = @transform_26, window_bounds = array<i64: 2, 1, 32>}, {pipeline_mode = #tpu.pipeline_mode<synchronous>, transform_indices = @transform_27, window_bounds = array<i64: 2, 32, 64>}, {pipeline_mode = #tpu.pipeline_mode<synchronous>, transform_indices = @transform_28, window_bounds = array<i64: 2, 1, 64>}, {pipeline_mode = #tpu.pipeline_mode<synchronous>, transform_indices = @transform_29, window_bounds = array<i64: 2, 64, 32>}, {pipeline_mode = #tpu.pipeline_mode<synchronous>, transform_indices = @transform_30, window_bounds = array<i64: 2, 1, 32>}, {pipeline_mode = #tpu.pipeline_mode<synchronous>, transform_indices = @transform_31, window_bounds = array<i64: 2, 1, 32>}, {pipeline_mode = #tpu.pipeline_mode<synchronous>, transform_indices = @transform_32, window_bounds = array<i64: 2, 1, 32>}, {pipeline_mode = #tpu.pipeline_mode<synchronous>, transform_indices = @transform_33, window_bounds = array<i64: 2, 1, 32>}, {pipeline_mode = #tpu.pipeline_mode<synchronous>, transform_indices = @transform_34, window_bounds = array<i64: 2, 1, 32>}, {pipeline_mode = #tpu.pipeline_mode<synchronous>, transform_indices = @transform_35, window_bounds = array<i64: 2, 1, 32>}, {pipeline_mode = #tpu.pipeline_mode<synchronous>, transform_indices = @transform_36, window_bounds = array<i64: 2, 1, 32>}, {pipeline_mode = #tpu.pipeline_mode<synchronous>, transform_indices = @transform_37, window_bounds = array<i64: 2, 32>}]} {
    %c0 = arith.constant 0 : index
    %c0_0 = arith.constant 0 : index
    %0 = vector.load %arg1[%c0, %c0_0] : memref<16x62xf32, #tpu.memory_space<vmem>>, vector<16x62xf32>
    %c0_1 = arith.constant 0 : index
    %c0_2 = arith.constant 0 : index
    %1 = vector.load %arg12[%c0_1, %c0_2] : memref<62x32xbf16, #tpu.memory_space<vmem>>, vector<62x32xbf16>
    %2 = arith.truncf %0 : vector<16x62xf32> to vector<16x62xbf16>
    %cst = arith.constant dense<0.000000e+00> : vector<16x32xf32>
    %3 = tpu.matmul %2, %1, %cst {dimension_numbers = #tpu.dot_dimension_numbers<[1], [0], [0], [1], [0, 0, 1, 1], [], []>} : vector<16x62xbf16>, vector<62x32xbf16>, vector<16x32xf32> -> vector<16x32xf32>
    %c0_3 = arith.constant 0 : index
    %c0_4 = arith.constant 0 : index
    %4 = vector.load %arg13[%c0_3, %c0_4] : memref<1x32xf32, #tpu.memory_space<vmem>>, vector<1x32xf32>
    %5 = vector.broadcast %4 : vector<1x32xf32> to vector<16x32xf32>
    %6 = arith.addf %3, %5 : vector<16x32xf32>
    %c0_5 = arith.constant 0 : index
    %c0_6 = arith.constant 0 : index
    %7 = vector.load %arg2[%c0_5, %c0_6] : memref<16x8xf32, #tpu.memory_space<vmem>>, vector<16x8xf32>
    %c0_7 = arith.constant 0 : index
    %c0_8 = arith.constant 0 : index
    %8 = vector.load %arg14[%c0_7, %c0_8] : memref<8x32xbf16, #tpu.memory_space<vmem>>, vector<8x32xbf16>
    %9 = arith.truncf %7 : vector<16x8xf32> to vector<16x8xbf16>
    %cst_9 = arith.constant dense<0.000000e+00> : vector<16x32xf32>
    %10 = tpu.matmul %9, %8, %cst_9 {dimension_numbers = #tpu.dot_dimension_numbers<[1], [0], [0], [1], [0, 0, 1, 1], [], []>} : vector<16x8xbf16>, vector<8x32xbf16>, vector<16x32xf32> -> vector<16x32xf32>
    %11 = arith.addf %6, %10 : vector<16x32xf32>
    %c0_10 = arith.constant 0 : index
    %c0_11 = arith.constant 0 : index
    %12 = vector.load %arg15[%c0_10, %c0_11] : memref<1x32xf32, #tpu.memory_space<vmem>>, vector<1x32xf32>
    %13 = vector.broadcast %12 : vector<1x32xf32> to vector<16x32xf32>
    %14 = arith.addf %11, %13 : vector<16x32xf32>
    %c0_12 = arith.constant 0 : index
    %c0_13 = arith.constant 0 : index
    %15 = vector.load %arg3[%c0_12, %c0_13] : memref<32x21xf32, #tpu.memory_space<vmem>>, vector<32x21xf32>
    %c0_14 = arith.constant 0 : index
    %c0_15 = arith.constant 0 : index
    %16 = vector.load %arg16[%c0_14, %c0_15] : memref<21x32xbf16, #tpu.memory_space<vmem>>, vector<21x32xbf16>
    %17 = arith.truncf %15 : vector<32x21xf32> to vector<32x21xbf16>
    %cst_16 = arith.constant dense<0.000000e+00> : vector<32x32xf32>
    %18 = tpu.matmul %17, %16, %cst_16 {dimension_numbers = #tpu.dot_dimension_numbers<[1], [0], [0], [1], [0, 0, 1, 1], [], []>} : vector<32x21xbf16>, vector<21x32xbf16>, vector<32x32xf32> -> vector<32x32xf32>
    %c0_17 = arith.constant 0 : index
    %c0_18 = arith.constant 0 : index
    %19 = vector.load %arg17[%c0_17, %c0_18] : memref<1x32xf32, #tpu.memory_space<vmem>>, vector<1x32xf32>
    %20 = vector.broadcast %19 : vector<1x32xf32> to vector<32x32xf32>
    %21 = arith.addf %18, %20 : vector<32x32xf32>
    %c0_19 = arith.constant 0 : index
    %c0_20 = arith.constant 0 : index
    %22 = vector.load %arg4[%c0_19, %c0_20] : memref<32x16xf32, #tpu.memory_space<vmem>>, vector<32x16xf32>
    %c0_21 = arith.constant 0 : index
    %c0_22 = arith.constant 0 : index
    %23 = vector.load %arg5[%c0_21, %c0_22] : memref<16x32xf32, #tpu.memory_space<vmem>>, vector<16x32xf32>
    %c0_23 = arith.constant 0 : index
    %c0_24 = arith.constant 0 : index
    %24 = vector.load %arg6[%c0_23, %c0_24] : memref<24x16xf32, #tpu.memory_space<vmem>>, vector<24x16xf32>
    %c0_25 = arith.constant 0 : index
    %c0_26 = arith.constant 0 : index
    %25 = vector.load %arg7[%c0_25, %c0_26] : memref<16x24xf32, #tpu.memory_space<vmem>>, vector<16x24xf32>
    %c0_27 = arith.constant 0 : index
    %c0_28 = arith.constant 0 : index
    %26 = vector.load %arg8[%c0_27, %c0_28] : memref<24x1xf32, #tpu.memory_space<vmem>>, vector<24x1xf32>
    %c0_29 = arith.constant 0 : index
    %c0_30 = arith.constant 0 : index
    %27 = vector.load %arg9[%c0_29, %c0_30] : memref<1x24xf32, #tpu.memory_space<vmem>>, vector<1x24xf32>
    %28 = vector.broadcast %26 : vector<24x1xf32> to vector<24x24xf32>
    %29 = vector.broadcast %27 : vector<1x24xf32> to vector<24x24xf32>
    %30 = arith.cmpf oeq, %28, %29 : vector<24x24xf32>
    %c0_31 = arith.constant 0 : index
    %c0_32 = arith.constant 0 : index
    %31 = vector.load %arg10[%c0_31, %c0_32] : memref<1x24xf32, #tpu.memory_space<vmem>>, vector<1x24xf32>
    %cst_33 = arith.constant 5.000000e-01 : f32
    %32 = vector.broadcast %cst_33 : f32 to vector<1x24xf32>
    %33 = arith.cmpf ogt, %31, %32 : vector<1x24xf32>
    %34 = vector.broadcast %33 : vector<1x24xi1> to vector<24x24xi1>
    %35 = arith.andi %30, %34 : vector<24x24xi1>
    %cst_34 = arith.constant 0.000000e+00 : f32
    %cst_35 = arith.constant -1.000000e+09 : f32
    %36 = vector.broadcast %cst_34 : f32 to vector<24x24xf32>
    %37 = vector.broadcast %cst_35 : f32 to vector<24x24xf32>
    %38 = arith.select %35, %36, %37 : vector<24x24xi1>, vector<24x24xf32>
    %39 = arith.truncf %21 : vector<32x32xf32> to vector<32x32xbf16>
    %c0_36 = arith.constant 0 : index
    %c0_37 = arith.constant 0 : index
    %40 = vector.load %arg18[%c0_36, %c0_37] : memref<32x64xbf16, #tpu.memory_space<vmem>>, vector<32x64xbf16>
    %cst_38 = arith.constant dense<0.000000e+00> : vector<32x64xf32>
    %41 = tpu.matmul %39, %40, %cst_38 {dimension_numbers = #tpu.dot_dimension_numbers<[1], [0], [0], [1], [0, 0, 1, 1], [], []>} : vector<32x32xbf16>, vector<32x64xbf16>, vector<32x64xf32> -> vector<32x64xf32>
    %42 = vector.extract_strided_slice %41 {offsets = [0, 0], sizes = [32, 32], strides = [1, 1]} : vector<32x64xf32> to vector<32x32xf32>
    %c0_39 = arith.constant 0 : index
    %c0_40 = arith.constant 0 : index
    %c0_41 = arith.constant 0 : index
    %43 = vector.load %arg19[%c0_39, %c0_40, %c0_41] : memref<2x1x32xf32, #tpu.memory_space<vmem>>, vector<1x1x32xf32>
    %44 = vector.shape_cast %43 : vector<1x1x32xf32> to vector<1x32xf32>
    %45 = vector.broadcast %44 : vector<1x32xf32> to vector<32x32xf32>
    %46 = arith.addf %42, %45 : vector<32x32xf32>
    %cst_42 = arith.constant dense<0.000000e+00> : vector<32x32xf32>
    %47 = tpu.matmul %22, %14, %cst_42 {dimension_numbers = #tpu.dot_dimension_numbers<[1], [0], [0], [1], [0, 0, 1, 1], [], []>} : vector<32x16xf32>, vector<16x32xf32>, vector<32x32xf32> -> vector<32x32xf32>
    %48 = arith.addf %47, %46 : vector<32x32xf32>
    %cst_43 = arith.constant 0.000000e+00 : f32
    %49 = vector.broadcast %cst_43 : f32 to vector<32x32xf32>
    %50 = arith.maximumf %48, %49 : vector<32x32xf32>
    %cst_44 = arith.constant dense<0.000000e+00> : vector<16x32xf32>
    %51 = tpu.matmul %23, %50, %cst_44 {dimension_numbers = #tpu.dot_dimension_numbers<[1], [0], [0], [1], [0, 0, 1, 1], [], []>} : vector<16x32xf32>, vector<32x32xf32>, vector<16x32xf32> -> vector<16x32xf32>
    %52 = arith.addf %51, %14 : vector<16x32xf32>
    %c0_45 = arith.constant 0 : index
    %c0_46 = arith.constant 0 : index
    %c0_47 = arith.constant 0 : index
    %53 = vector.load %arg20[%c0_45, %c0_46, %c0_47] : memref<2x32x32xbf16, #tpu.memory_space<vmem>>, vector<1x32x32xbf16>
    %54 = vector.shape_cast %53 : vector<1x32x32xbf16> to vector<32x32xbf16>
    %55 = arith.truncf %52 : vector<16x32xf32> to vector<16x32xbf16>
    %cst_48 = arith.constant dense<0.000000e+00> : vector<16x32xf32>
    %56 = tpu.matmul %55, %54, %cst_48 {dimension_numbers = #tpu.dot_dimension_numbers<[1], [0], [0], [1], [0, 0, 1, 1], [], []>} : vector<16x32xbf16>, vector<32x32xbf16>, vector<16x32xf32> -> vector<16x32xf32>
    %c0_49 = arith.constant 0 : index
    %c0_50 = arith.constant 0 : index
    %c0_51 = arith.constant 0 : index
    %57 = vector.load %arg21[%c0_49, %c0_50, %c0_51] : memref<2x1x32xf32, #tpu.memory_space<vmem>>, vector<1x1x32xf32>
    %58 = vector.shape_cast %57 : vector<1x1x32xf32> to vector<1x32xf32>
    %59 = vector.broadcast %58 : vector<1x32xf32> to vector<16x32xf32>
    %60 = arith.addf %56, %59 : vector<16x32xf32>
    %cst_52 = arith.constant 5.000000e-01 : f32
    %61 = vector.broadcast %cst_52 : f32 to vector<16x32xf32>
    %62 = arith.mulf %61, %60 : vector<16x32xf32>
    %cst_53 = arith.constant 0.707106769 : f32
    %63 = vector.broadcast %cst_53 : f32 to vector<16x32xf32>
    %64 = arith.mulf %60, %63 : vector<16x32xf32>
    %65 = math.erf %64 : vector<16x32xf32>
    %cst_54 = arith.constant 1.000000e+00 : f32
    %66 = vector.broadcast %cst_54 : f32 to vector<16x32xf32>
    %67 = arith.addf %66, %65 : vector<16x32xf32>
    %68 = arith.mulf %62, %67 : vector<16x32xf32>
    %c0_55 = arith.constant 0 : index
    %c0_56 = arith.constant 0 : index
    %c0_57 = arith.constant 0 : index
    %69 = vector.load %arg22[%c0_55, %c0_56, %c0_57] : memref<2x32x32xbf16, #tpu.memory_space<vmem>>, vector<1x32x32xbf16>
    %70 = vector.shape_cast %69 : vector<1x32x32xbf16> to vector<32x32xbf16>
    %71 = arith.truncf %68 : vector<16x32xf32> to vector<16x32xbf16>
    %cst_58 = arith.constant dense<0.000000e+00> : vector<16x32xf32>
    %72 = tpu.matmul %71, %70, %cst_58 {dimension_numbers = #tpu.dot_dimension_numbers<[1], [0], [0], [1], [0, 0, 1, 1], [], []>} : vector<16x32xbf16>, vector<32x32xbf16>, vector<16x32xf32> -> vector<16x32xf32>
    %c0_59 = arith.constant 0 : index
    %c0_60 = arith.constant 0 : index
    %c0_61 = arith.constant 0 : index
    %73 = vector.load %arg23[%c0_59, %c0_60, %c0_61] : memref<2x1x32xf32, #tpu.memory_space<vmem>>, vector<1x1x32xf32>
    %74 = vector.shape_cast %73 : vector<1x1x32xf32> to vector<1x32xf32>
    %75 = vector.broadcast %74 : vector<1x32xf32> to vector<16x32xf32>
    %76 = arith.addf %72, %75 : vector<16x32xf32>
    %77 = arith.addf %76, %14 : vector<16x32xf32>
    %c0_62 = arith.constant 0 : index
    %c0_63 = arith.constant 0 : index
    %c0_64 = arith.constant 0 : index
    %78 = vector.load %arg32[%c0_62, %c0_63, %c0_64] : memref<2x1x32xf32, #tpu.memory_space<vmem>>, vector<1x1x32xf32>
    %79 = vector.shape_cast %78 : vector<1x1x32xf32> to vector<1x32xf32>
    %80 = vector.broadcast %79 : vector<1x32xf32> to vector<16x32xf32>
    %81 = arith.mulf %77, %80 : vector<16x32xf32>
    %c0_65 = arith.constant 0 : index
    %c0_66 = arith.constant 0 : index
    %c0_67 = arith.constant 0 : index
    %82 = vector.load %arg33[%c0_65, %c0_66, %c0_67] : memref<2x1x32xf32, #tpu.memory_space<vmem>>, vector<1x1x32xf32>
    %83 = vector.shape_cast %82 : vector<1x1x32xf32> to vector<1x32xf32>
    %84 = vector.broadcast %83 : vector<1x32xf32> to vector<16x32xf32>
    %85 = arith.addf %81, %84 : vector<16x32xf32>
    %cst_68 = arith.constant dense<0.000000e+00> : vector<24x32xf32>
    %86 = tpu.matmul %24, %14, %cst_68 {dimension_numbers = #tpu.dot_dimension_numbers<[1], [0], [0], [1], [0, 0, 1, 1], [], []>} : vector<24x16xf32>, vector<16x32xf32>, vector<24x32xf32> -> vector<24x32xf32>
    %c0_69 = arith.constant 0 : index
    %c0_70 = arith.constant 0 : index
    %c0_71 = arith.constant 0 : index
    %87 = vector.load %arg24[%c0_69, %c0_70, %c0_71] : memref<2x32x96xbf16, #tpu.memory_space<vmem>>, vector<1x32x96xbf16>
    %88 = vector.shape_cast %87 : vector<1x32x96xbf16> to vector<32x96xbf16>
    %89 = arith.truncf %86 : vector<24x32xf32> to vector<24x32xbf16>
    %cst_72 = arith.constant dense<0.000000e+00> : vector<24x96xf32>
    %90 = tpu.matmul %89, %88, %cst_72 {dimension_numbers = #tpu.dot_dimension_numbers<[1], [0], [0], [1], [0, 0, 1, 1], [], []>} : vector<24x32xbf16>, vector<32x96xbf16>, vector<24x96xf32> -> vector<24x96xf32>
    %c0_73 = arith.constant 0 : index
    %c0_74 = arith.constant 0 : index
    %c0_75 = arith.constant 0 : index
    %91 = vector.load %arg25[%c0_73, %c0_74, %c0_75] : memref<2x1x96xf32, #tpu.memory_space<vmem>>, vector<1x1x96xf32>
    %92 = vector.shape_cast %91 : vector<1x1x96xf32> to vector<1x96xf32>
    %93 = vector.broadcast %92 : vector<1x96xf32> to vector<24x96xf32>
    %94 = arith.addf %90, %93 : vector<24x96xf32>
    %95 = vector.extract_strided_slice %94 {offsets = [0, 0], sizes = [24, 32], strides = [1, 1]} : vector<24x96xf32> to vector<24x32xf32>
    %cst_76 = arith.constant 5.000000e-01 : f32
    %96 = vector.broadcast %cst_76 : f32 to vector<24x32xf32>
    %97 = arith.mulf %95, %96 : vector<24x32xf32>
    %98 = arith.truncf %97 : vector<24x32xf32> to vector<24x32xbf16>
    %99 = vector.extract_strided_slice %94 {offsets = [0, 32], sizes = [24, 32], strides = [1, 1]} : vector<24x96xf32> to vector<24x32xf32>
    %100 = arith.truncf %99 : vector<24x32xf32> to vector<24x32xbf16>
    %101 = vector.extract_strided_slice %94 {offsets = [0, 64], sizes = [24, 32], strides = [1, 1]} : vector<24x96xf32> to vector<24x32xf32>
    %102 = arith.truncf %101 : vector<24x32xf32> to vector<24x32xbf16>
    %103 = vector.extract_strided_slice %98 {offsets = [0, 0], sizes = [24, 4], strides = [1, 1]} : vector<24x32xbf16> to vector<24x4xbf16>
    %104 = vector.extract_strided_slice %100 {offsets = [0, 0], sizes = [24, 4], strides = [1, 1]} : vector<24x32xbf16> to vector<24x4xbf16>
    %cst_77 = arith.constant dense<0.000000e+00> : vector<24x24xf32>
    %105 = tpu.matmul %103, %104, %cst_77 {dimension_numbers = #tpu.dot_dimension_numbers<[1], [1], [0], [0], [0, 0, 1, 0], [], []>} : vector<24x4xbf16>, vector<24x4xbf16>, vector<24x24xf32> -> vector<24x24xf32>
    %106 = arith.addf %105, %38 : vector<24x24xf32>
    %107 = vector.extract_strided_slice %98 {offsets = [0, 4], sizes = [24, 4], strides = [1, 1]} : vector<24x32xbf16> to vector<24x4xbf16>
    %108 = vector.extract_strided_slice %100 {offsets = [0, 4], sizes = [24, 4], strides = [1, 1]} : vector<24x32xbf16> to vector<24x4xbf16>
    %cst_78 = arith.constant dense<0.000000e+00> : vector<24x24xf32>
    %109 = tpu.matmul %107, %108, %cst_78 {dimension_numbers = #tpu.dot_dimension_numbers<[1], [1], [0], [0], [0, 0, 1, 0], [], []>} : vector<24x4xbf16>, vector<24x4xbf16>, vector<24x24xf32> -> vector<24x24xf32>
    %110 = arith.addf %109, %38 : vector<24x24xf32>
    %111 = vector.extract_strided_slice %98 {offsets = [0, 8], sizes = [24, 4], strides = [1, 1]} : vector<24x32xbf16> to vector<24x4xbf16>
    %112 = vector.extract_strided_slice %100 {offsets = [0, 8], sizes = [24, 4], strides = [1, 1]} : vector<24x32xbf16> to vector<24x4xbf16>
    %cst_79 = arith.constant dense<0.000000e+00> : vector<24x24xf32>
    %113 = tpu.matmul %111, %112, %cst_79 {dimension_numbers = #tpu.dot_dimension_numbers<[1], [1], [0], [0], [0, 0, 1, 0], [], []>} : vector<24x4xbf16>, vector<24x4xbf16>, vector<24x24xf32> -> vector<24x24xf32>
    %114 = arith.addf %113, %38 : vector<24x24xf32>
    %115 = vector.extract_strided_slice %98 {offsets = [0, 12], sizes = [24, 4], strides = [1, 1]} : vector<24x32xbf16> to vector<24x4xbf16>
    %116 = vector.extract_strided_slice %100 {offsets = [0, 12], sizes = [24, 4], strides = [1, 1]} : vector<24x32xbf16> to vector<24x4xbf16>
    %cst_80 = arith.constant dense<0.000000e+00> : vector<24x24xf32>
    %117 = tpu.matmul %115, %116, %cst_80 {dimension_numbers = #tpu.dot_dimension_numbers<[1], [1], [0], [0], [0, 0, 1, 0], [], []>} : vector<24x4xbf16>, vector<24x4xbf16>, vector<24x24xf32> -> vector<24x24xf32>
    %118 = arith.addf %117, %38 : vector<24x24xf32>
    %119 = vector.extract_strided_slice %98 {offsets = [0, 16], sizes = [24, 4], strides = [1, 1]} : vector<24x32xbf16> to vector<24x4xbf16>
    %120 = vector.extract_strided_slice %100 {offsets = [0, 16], sizes = [24, 4], strides = [1, 1]} : vector<24x32xbf16> to vector<24x4xbf16>
    %cst_81 = arith.constant dense<0.000000e+00> : vector<24x24xf32>
    %121 = tpu.matmul %119, %120, %cst_81 {dimension_numbers = #tpu.dot_dimension_numbers<[1], [1], [0], [0], [0, 0, 1, 0], [], []>} : vector<24x4xbf16>, vector<24x4xbf16>, vector<24x24xf32> -> vector<24x24xf32>
    %122 = arith.addf %121, %38 : vector<24x24xf32>
    %123 = vector.extract_strided_slice %98 {offsets = [0, 20], sizes = [24, 4], strides = [1, 1]} : vector<24x32xbf16> to vector<24x4xbf16>
    %124 = vector.extract_strided_slice %100 {offsets = [0, 20], sizes = [24, 4], strides = [1, 1]} : vector<24x32xbf16> to vector<24x4xbf16>
    %cst_82 = arith.constant dense<0.000000e+00> : vector<24x24xf32>
    %125 = tpu.matmul %123, %124, %cst_82 {dimension_numbers = #tpu.dot_dimension_numbers<[1], [1], [0], [0], [0, 0, 1, 0], [], []>} : vector<24x4xbf16>, vector<24x4xbf16>, vector<24x24xf32> -> vector<24x24xf32>
    %126 = arith.addf %125, %38 : vector<24x24xf32>
    %127 = vector.extract_strided_slice %98 {offsets = [0, 24], sizes = [24, 4], strides = [1, 1]} : vector<24x32xbf16> to vector<24x4xbf16>
    %128 = vector.extract_strided_slice %100 {offsets = [0, 24], sizes = [24, 4], strides = [1, 1]} : vector<24x32xbf16> to vector<24x4xbf16>
    %cst_83 = arith.constant dense<0.000000e+00> : vector<24x24xf32>
    %129 = tpu.matmul %127, %128, %cst_83 {dimension_numbers = #tpu.dot_dimension_numbers<[1], [1], [0], [0], [0, 0, 1, 0], [], []>} : vector<24x4xbf16>, vector<24x4xbf16>, vector<24x24xf32> -> vector<24x24xf32>
    %130 = arith.addf %129, %38 : vector<24x24xf32>
    %131 = vector.extract_strided_slice %98 {offsets = [0, 28], sizes = [24, 4], strides = [1, 1]} : vector<24x32xbf16> to vector<24x4xbf16>
    %132 = vector.extract_strided_slice %100 {offsets = [0, 28], sizes = [24, 4], strides = [1, 1]} : vector<24x32xbf16> to vector<24x4xbf16>
    %cst_84 = arith.constant dense<0.000000e+00> : vector<24x24xf32>
    %133 = tpu.matmul %131, %132, %cst_84 {dimension_numbers = #tpu.dot_dimension_numbers<[1], [1], [0], [0], [0, 0, 1, 0], [], []>} : vector<24x4xbf16>, vector<24x4xbf16>, vector<24x24xf32> -> vector<24x24xf32>
    %134 = arith.addf %133, %38 : vector<24x24xf32>
    %135 = tpu.concatenate %106, %110, %114, %118, %122, %126, %130, %134 in 0 : vector<24x24xf32>, vector<24x24xf32>, vector<24x24xf32>, vector<24x24xf32>, vector<24x24xf32>, vector<24x24xf32>, vector<24x24xf32>, vector<24x24xf32> -> vector<192x24xf32>
    %cst_85 = arith.constant dense<0xFF800000> : vector<192xf32>
    %136 = vector.multi_reduction <maximumf>, %135, %cst_85 [1] : vector<192x24xf32> to vector<192xf32>
    %137 = vector.shape_cast %136 : vector<192xf32> to vector<192x1xf32>
    %138 = vector.broadcast %137 : vector<192x1xf32> to vector<192x24xf32>
    %139 = arith.subf %135, %138 : vector<192x24xf32>
    %140 = math.exp %139 : vector<192x24xf32>
    %cst_86 = arith.constant dense<0.000000e+00> : vector<192xf32>
    %141 = vector.multi_reduction <add>, %140, %cst_86 [1] : vector<192x24xf32> to vector<192xf32>
    %142 = vector.shape_cast %141 : vector<192xf32> to vector<192x1xf32>
    %143 = tpu.reciprocal %142 {approx = true} : vector<192x1xf32> -> vector<192x1xf32>
    %144 = vector.broadcast %143 : vector<192x1xf32> to vector<192x24xf32>
    %145 = arith.mulf %140, %144 : vector<192x24xf32>
    %146 = arith.truncf %145 : vector<192x24xf32> to vector<192x24xbf16>
    %147 = vector.extract_strided_slice %146 {offsets = [0, 0], sizes = [24, 24], strides = [1, 1]} : vector<192x24xbf16> to vector<24x24xbf16>
    %148 = vector.extract_strided_slice %102 {offsets = [0, 0], sizes = [24, 4], strides = [1, 1]} : vector<24x32xbf16> to vector<24x4xbf16>
    %cst_87 = arith.constant dense<0.000000e+00> : vector<24x4xf32>
    %149 = tpu.matmul %147, %148, %cst_87 {dimension_numbers = #tpu.dot_dimension_numbers<[1], [0], [0], [1], [0, 0, 1, 1], [], []>} : vector<24x24xbf16>, vector<24x4xbf16>, vector<24x4xf32> -> vector<24x4xf32>
    %150 = vector.extract_strided_slice %146 {offsets = [24, 0], sizes = [24, 24], strides = [1, 1]} : vector<192x24xbf16> to vector<24x24xbf16>
    %151 = vector.extract_strided_slice %102 {offsets = [0, 4], sizes = [24, 4], strides = [1, 1]} : vector<24x32xbf16> to vector<24x4xbf16>
    %cst_88 = arith.constant dense<0.000000e+00> : vector<24x4xf32>
    %152 = tpu.matmul %150, %151, %cst_88 {dimension_numbers = #tpu.dot_dimension_numbers<[1], [0], [0], [1], [0, 0, 1, 1], [], []>} : vector<24x24xbf16>, vector<24x4xbf16>, vector<24x4xf32> -> vector<24x4xf32>
    %153 = vector.extract_strided_slice %146 {offsets = [48, 0], sizes = [24, 24], strides = [1, 1]} : vector<192x24xbf16> to vector<24x24xbf16>
    %154 = vector.extract_strided_slice %102 {offsets = [0, 8], sizes = [24, 4], strides = [1, 1]} : vector<24x32xbf16> to vector<24x4xbf16>
    %cst_89 = arith.constant dense<0.000000e+00> : vector<24x4xf32>
    %155 = tpu.matmul %153, %154, %cst_89 {dimension_numbers = #tpu.dot_dimension_numbers<[1], [0], [0], [1], [0, 0, 1, 1], [], []>} : vector<24x24xbf16>, vector<24x4xbf16>, vector<24x4xf32> -> vector<24x4xf32>
    %156 = vector.extract_strided_slice %146 {offsets = [72, 0], sizes = [24, 24], strides = [1, 1]} : vector<192x24xbf16> to vector<24x24xbf16>
    %157 = vector.extract_strided_slice %102 {offsets = [0, 12], sizes = [24, 4], strides = [1, 1]} : vector<24x32xbf16> to vector<24x4xbf16>
    %cst_90 = arith.constant dense<0.000000e+00> : vector<24x4xf32>
    %158 = tpu.matmul %156, %157, %cst_90 {dimension_numbers = #tpu.dot_dimension_numbers<[1], [0], [0], [1], [0, 0, 1, 1], [], []>} : vector<24x24xbf16>, vector<24x4xbf16>, vector<24x4xf32> -> vector<24x4xf32>
    %159 = vector.extract_strided_slice %146 {offsets = [96, 0], sizes = [24, 24], strides = [1, 1]} : vector<192x24xbf16> to vector<24x24xbf16>
    %160 = vector.extract_strided_slice %102 {offsets = [0, 16], sizes = [24, 4], strides = [1, 1]} : vector<24x32xbf16> to vector<24x4xbf16>
    %cst_91 = arith.constant dense<0.000000e+00> : vector<24x4xf32>
    %161 = tpu.matmul %159, %160, %cst_91 {dimension_numbers = #tpu.dot_dimension_numbers<[1], [0], [0], [1], [0, 0, 1, 1], [], []>} : vector<24x24xbf16>, vector<24x4xbf16>, vector<24x4xf32> -> vector<24x4xf32>
    %162 = vector.extract_strided_slice %146 {offsets = [120, 0], sizes = [24, 24], strides = [1, 1]} : vector<192x24xbf16> to vector<24x24xbf16>
    %163 = vector.extract_strided_slice %102 {offsets = [0, 20], sizes = [24, 4], strides = [1, 1]} : vector<24x32xbf16> to vector<24x4xbf16>
    %cst_92 = arith.constant dense<0.000000e+00> : vector<24x4xf32>
    %164 = tpu.matmul %162, %163, %cst_92 {dimension_numbers = #tpu.dot_dimension_numbers<[1], [0], [0], [1], [0, 0, 1, 1], [], []>} : vector<24x24xbf16>, vector<24x4xbf16>, vector<24x4xf32> -> vector<24x4xf32>
    %165 = vector.extract_strided_slice %146 {offsets = [144, 0], sizes = [24, 24], strides = [1, 1]} : vector<192x24xbf16> to vector<24x24xbf16>
    %166 = vector.extract_strided_slice %102 {offsets = [0, 24], sizes = [24, 4], strides = [1, 1]} : vector<24x32xbf16> to vector<24x4xbf16>
    %cst_93 = arith.constant dense<0.000000e+00> : vector<24x4xf32>
    %167 = tpu.matmul %165, %166, %cst_93 {dimension_numbers = #tpu.dot_dimension_numbers<[1], [0], [0], [1], [0, 0, 1, 1], [], []>} : vector<24x24xbf16>, vector<24x4xbf16>, vector<24x4xf32> -> vector<24x4xf32>
    %168 = vector.extract_strided_slice %146 {offsets = [168, 0], sizes = [24, 24], strides = [1, 1]} : vector<192x24xbf16> to vector<24x24xbf16>
    %169 = vector.extract_strided_slice %102 {offsets = [0, 28], sizes = [24, 4], strides = [1, 1]} : vector<24x32xbf16> to vector<24x4xbf16>
    %cst_94 = arith.constant dense<0.000000e+00> : vector<24x4xf32>
    %170 = tpu.matmul %168, %169, %cst_94 {dimension_numbers = #tpu.dot_dimension_numbers<[1], [0], [0], [1], [0, 0, 1, 1], [], []>} : vector<24x24xbf16>, vector<24x4xbf16>, vector<24x4xf32> -> vector<24x4xf32>
    %171 = tpu.concatenate %149, %152, %155, %158, %161, %164, %167, %170 in 1 : vector<24x4xf32>, vector<24x4xf32>, vector<24x4xf32>, vector<24x4xf32>, vector<24x4xf32>, vector<24x4xf32>, vector<24x4xf32>, vector<24x4xf32> -> vector<24x32xf32>
    %c0_95 = arith.constant 0 : index
    %c0_96 = arith.constant 0 : index
    %c0_97 = arith.constant 0 : index
    %172 = vector.load %arg26[%c0_95, %c0_96, %c0_97] : memref<2x32x32xbf16, #tpu.memory_space<vmem>>, vector<1x32x32xbf16>
    %173 = vector.shape_cast %172 : vector<1x32x32xbf16> to vector<32x32xbf16>
    %174 = arith.truncf %171 : vector<24x32xf32> to vector<24x32xbf16>
    %cst_98 = arith.constant dense<0.000000e+00> : vector<24x32xf32>
    %175 = tpu.matmul %174, %173, %cst_98 {dimension_numbers = #tpu.dot_dimension_numbers<[1], [0], [0], [1], [0, 0, 1, 1], [], []>} : vector<24x32xbf16>, vector<32x32xbf16>, vector<24x32xf32> -> vector<24x32xf32>
    %c0_99 = arith.constant 0 : index
    %c0_100 = arith.constant 0 : index
    %c0_101 = arith.constant 0 : index
    %176 = vector.load %arg27[%c0_99, %c0_100, %c0_101] : memref<2x1x32xf32, #tpu.memory_space<vmem>>, vector<1x1x32xf32>
    %177 = vector.shape_cast %176 : vector<1x1x32xf32> to vector<1x32xf32>
    %178 = vector.broadcast %177 : vector<1x32xf32> to vector<24x32xf32>
    %179 = arith.addf %175, %178 : vector<24x32xf32>
    %cst_102 = arith.constant dense<0.000000e+00> : vector<16x32xf32>
    %180 = tpu.matmul %25, %179, %cst_102 {dimension_numbers = #tpu.dot_dimension_numbers<[1], [0], [0], [1], [0, 0, 1, 1], [], []>} : vector<16x24xf32>, vector<24x32xf32>, vector<16x32xf32> -> vector<16x32xf32>
    %181 = arith.addf %180, %14 : vector<16x32xf32>
    %c0_103 = arith.constant 0 : index
    %c0_104 = arith.constant 0 : index
    %c0_105 = arith.constant 0 : index
    %182 = vector.load %arg34[%c0_103, %c0_104, %c0_105] : memref<2x1x32xf32, #tpu.memory_space<vmem>>, vector<1x1x32xf32>
    %183 = vector.shape_cast %182 : vector<1x1x32xf32> to vector<1x32xf32>
    %184 = vector.broadcast %183 : vector<1x32xf32> to vector<16x32xf32>
    %185 = arith.mulf %181, %184 : vector<16x32xf32>
    %c0_106 = arith.constant 0 : index
    %c0_107 = arith.constant 0 : index
    %c0_108 = arith.constant 0 : index
    %186 = vector.load %arg35[%c0_106, %c0_107, %c0_108] : memref<2x1x32xf32, #tpu.memory_space<vmem>>, vector<1x1x32xf32>
    %187 = vector.shape_cast %186 : vector<1x1x32xf32> to vector<1x32xf32>
    %188 = vector.broadcast %187 : vector<1x32xf32> to vector<16x32xf32>
    %189 = arith.addf %185, %188 : vector<16x32xf32>
    %190 = arith.addf %85, %189 : vector<16x32xf32>
    %c0_109 = arith.constant 0 : index
    %c0_110 = arith.constant 0 : index
    %c0_111 = arith.constant 0 : index
    %191 = vector.load %arg28[%c0_109, %c0_110, %c0_111] : memref<2x32x64xbf16, #tpu.memory_space<vmem>>, vector<1x32x64xbf16>
    %192 = vector.shape_cast %191 : vector<1x32x64xbf16> to vector<32x64xbf16>
    %193 = arith.truncf %190 : vector<16x32xf32> to vector<16x32xbf16>
    %cst_112 = arith.constant dense<0.000000e+00> : vector<16x64xf32>
    %194 = tpu.matmul %193, %192, %cst_112 {dimension_numbers = #tpu.dot_dimension_numbers<[1], [0], [0], [1], [0, 0, 1, 1], [], []>} : vector<16x32xbf16>, vector<32x64xbf16>, vector<16x64xf32> -> vector<16x64xf32>
    %c0_113 = arith.constant 0 : index
    %c0_114 = arith.constant 0 : index
    %c0_115 = arith.constant 0 : index
    %195 = vector.load %arg29[%c0_113, %c0_114, %c0_115] : memref<2x1x64xf32, #tpu.memory_space<vmem>>, vector<1x1x64xf32>
    %196 = vector.shape_cast %195 : vector<1x1x64xf32> to vector<1x64xf32>
    %197 = vector.broadcast %196 : vector<1x64xf32> to vector<16x64xf32>
    %198 = arith.addf %194, %197 : vector<16x64xf32>
    %cst_116 = arith.constant 0.000000e+00 : f32
    %199 = vector.broadcast %cst_116 : f32 to vector<16x64xf32>
    %200 = arith.maximumf %198, %199 : vector<16x64xf32>
    %c0_117 = arith.constant 0 : index
    %c0_118 = arith.constant 0 : index
    %c0_119 = arith.constant 0 : index
    %201 = vector.load %arg30[%c0_117, %c0_118, %c0_119] : memref<2x64x32xbf16, #tpu.memory_space<vmem>>, vector<1x64x32xbf16>
    %202 = vector.shape_cast %201 : vector<1x64x32xbf16> to vector<64x32xbf16>
    %203 = arith.truncf %200 : vector<16x64xf32> to vector<16x64xbf16>
    %cst_120 = arith.constant dense<0.000000e+00> : vector<16x32xf32>
    %204 = tpu.matmul %203, %202, %cst_120 {dimension_numbers = #tpu.dot_dimension_numbers<[1], [0], [0], [1], [0, 0, 1, 1], [], []>} : vector<16x64xbf16>, vector<64x32xbf16>, vector<16x32xf32> -> vector<16x32xf32>
    %c0_121 = arith.constant 0 : index
    %c0_122 = arith.constant 0 : index
    %c0_123 = arith.constant 0 : index
    %205 = vector.load %arg31[%c0_121, %c0_122, %c0_123] : memref<2x1x32xf32, #tpu.memory_space<vmem>>, vector<1x1x32xf32>
    %206 = vector.shape_cast %205 : vector<1x1x32xf32> to vector<1x32xf32>
    %207 = vector.broadcast %206 : vector<1x32xf32> to vector<16x32xf32>
    %208 = arith.addf %204, %207 : vector<16x32xf32>
    %209 = arith.addf %190, %208 : vector<16x32xf32>
    %c0_124 = arith.constant 0 : index
    %c0_125 = arith.constant 0 : index
    %c0_126 = arith.constant 0 : index
    %210 = vector.load %arg36[%c0_124, %c0_125, %c0_126] : memref<2x1x32xf32, #tpu.memory_space<vmem>>, vector<1x1x32xf32>
    %211 = vector.shape_cast %210 : vector<1x1x32xf32> to vector<1x32xf32>
    %212 = vector.broadcast %211 : vector<1x32xf32> to vector<16x32xf32>
    %213 = arith.mulf %209, %212 : vector<16x32xf32>
    %c0_127 = arith.constant 0 : index
    %c0_128 = arith.constant 0 : index
    %c0_129 = arith.constant 0 : index
    %214 = vector.load %arg37[%c0_127, %c0_128, %c0_129] : memref<2x1x32xf32, #tpu.memory_space<vmem>>, vector<1x1x32xf32>
    %215 = vector.shape_cast %214 : vector<1x1x32xf32> to vector<1x32xf32>
    %216 = vector.broadcast %215 : vector<1x32xf32> to vector<16x32xf32>
    %217 = arith.addf %213, %216 : vector<16x32xf32>
    %218 = vector.extract_strided_slice %41 {offsets = [0, 32], sizes = [32, 32], strides = [1, 1]} : vector<32x64xf32> to vector<32x32xf32>
    %c1 = arith.constant 1 : index
    %c0_130 = arith.constant 0 : index
    %c0_131 = arith.constant 0 : index
    %219 = vector.load %arg19[%c1, %c0_130, %c0_131] : memref<2x1x32xf32, #tpu.memory_space<vmem>>, vector<1x1x32xf32>
    %220 = vector.shape_cast %219 : vector<1x1x32xf32> to vector<1x32xf32>
    %221 = vector.broadcast %220 : vector<1x32xf32> to vector<32x32xf32>
    %222 = arith.addf %218, %221 : vector<32x32xf32>
    %cst_132 = arith.constant dense<0.000000e+00> : vector<32x32xf32>
    %223 = tpu.matmul %22, %217, %cst_132 {dimension_numbers = #tpu.dot_dimension_numbers<[1], [0], [0], [1], [0, 0, 1, 1], [], []>} : vector<32x16xf32>, vector<16x32xf32>, vector<32x32xf32> -> vector<32x32xf32>
    %224 = arith.addf %223, %222 : vector<32x32xf32>
    %cst_133 = arith.constant 0.000000e+00 : f32
    %225 = vector.broadcast %cst_133 : f32 to vector<32x32xf32>
    %226 = arith.maximumf %224, %225 : vector<32x32xf32>
    %cst_134 = arith.constant dense<0.000000e+00> : vector<16x32xf32>
    %227 = tpu.matmul %23, %226, %cst_134 {dimension_numbers = #tpu.dot_dimension_numbers<[1], [0], [0], [1], [0, 0, 1, 1], [], []>} : vector<16x32xf32>, vector<32x32xf32>, vector<16x32xf32> -> vector<16x32xf32>
    %228 = arith.addf %227, %217 : vector<16x32xf32>
    %c1_135 = arith.constant 1 : index
    %c0_136 = arith.constant 0 : index
    %c0_137 = arith.constant 0 : index
    %229 = vector.load %arg20[%c1_135, %c0_136, %c0_137] : memref<2x32x32xbf16, #tpu.memory_space<vmem>>, vector<1x32x32xbf16>
    %230 = vector.shape_cast %229 : vector<1x32x32xbf16> to vector<32x32xbf16>
    %231 = arith.truncf %228 : vector<16x32xf32> to vector<16x32xbf16>
    %cst_138 = arith.constant dense<0.000000e+00> : vector<16x32xf32>
    %232 = tpu.matmul %231, %230, %cst_138 {dimension_numbers = #tpu.dot_dimension_numbers<[1], [0], [0], [1], [0, 0, 1, 1], [], []>} : vector<16x32xbf16>, vector<32x32xbf16>, vector<16x32xf32> -> vector<16x32xf32>
    %c1_139 = arith.constant 1 : index
    %c0_140 = arith.constant 0 : index
    %c0_141 = arith.constant 0 : index
    %233 = vector.load %arg21[%c1_139, %c0_140, %c0_141] : memref<2x1x32xf32, #tpu.memory_space<vmem>>, vector<1x1x32xf32>
    %234 = vector.shape_cast %233 : vector<1x1x32xf32> to vector<1x32xf32>
    %235 = vector.broadcast %234 : vector<1x32xf32> to vector<16x32xf32>
    %236 = arith.addf %232, %235 : vector<16x32xf32>
    %cst_142 = arith.constant 5.000000e-01 : f32
    %237 = vector.broadcast %cst_142 : f32 to vector<16x32xf32>
    %238 = arith.mulf %237, %236 : vector<16x32xf32>
    %cst_143 = arith.constant 0.707106769 : f32
    %239 = vector.broadcast %cst_143 : f32 to vector<16x32xf32>
    %240 = arith.mulf %236, %239 : vector<16x32xf32>
    %241 = math.erf %240 : vector<16x32xf32>
    %cst_144 = arith.constant 1.000000e+00 : f32
    %242 = vector.broadcast %cst_144 : f32 to vector<16x32xf32>
    %243 = arith.addf %242, %241 : vector<16x32xf32>
    %244 = arith.mulf %238, %243 : vector<16x32xf32>
    %c1_145 = arith.constant 1 : index
    %c0_146 = arith.constant 0 : index
    %c0_147 = arith.constant 0 : index
    %245 = vector.load %arg22[%c1_145, %c0_146, %c0_147] : memref<2x32x32xbf16, #tpu.memory_space<vmem>>, vector<1x32x32xbf16>
    %246 = vector.shape_cast %245 : vector<1x32x32xbf16> to vector<32x32xbf16>
    %247 = arith.truncf %244 : vector<16x32xf32> to vector<16x32xbf16>
    %cst_148 = arith.constant dense<0.000000e+00> : vector<16x32xf32>
    %248 = tpu.matmul %247, %246, %cst_148 {dimension_numbers = #tpu.dot_dimension_numbers<[1], [0], [0], [1], [0, 0, 1, 1], [], []>} : vector<16x32xbf16>, vector<32x32xbf16>, vector<16x32xf32> -> vector<16x32xf32>
    %c1_149 = arith.constant 1 : index
    %c0_150 = arith.constant 0 : index
    %c0_151 = arith.constant 0 : index
    %249 = vector.load %arg23[%c1_149, %c0_150, %c0_151] : memref<2x1x32xf32, #tpu.memory_space<vmem>>, vector<1x1x32xf32>
    %250 = vector.shape_cast %249 : vector<1x1x32xf32> to vector<1x32xf32>
    %251 = vector.broadcast %250 : vector<1x32xf32> to vector<16x32xf32>
    %252 = arith.addf %248, %251 : vector<16x32xf32>
    %253 = arith.addf %252, %217 : vector<16x32xf32>
    %c1_152 = arith.constant 1 : index
    %c0_153 = arith.constant 0 : index
    %c0_154 = arith.constant 0 : index
    %254 = vector.load %arg32[%c1_152, %c0_153, %c0_154] : memref<2x1x32xf32, #tpu.memory_space<vmem>>, vector<1x1x32xf32>
    %255 = vector.shape_cast %254 : vector<1x1x32xf32> to vector<1x32xf32>
    %256 = vector.broadcast %255 : vector<1x32xf32> to vector<16x32xf32>
    %257 = arith.mulf %253, %256 : vector<16x32xf32>
    %c1_155 = arith.constant 1 : index
    %c0_156 = arith.constant 0 : index
    %c0_157 = arith.constant 0 : index
    %258 = vector.load %arg33[%c1_155, %c0_156, %c0_157] : memref<2x1x32xf32, #tpu.memory_space<vmem>>, vector<1x1x32xf32>
    %259 = vector.shape_cast %258 : vector<1x1x32xf32> to vector<1x32xf32>
    %260 = vector.broadcast %259 : vector<1x32xf32> to vector<16x32xf32>
    %261 = arith.addf %257, %260 : vector<16x32xf32>
    %cst_158 = arith.constant dense<0.000000e+00> : vector<24x32xf32>
    %262 = tpu.matmul %24, %217, %cst_158 {dimension_numbers = #tpu.dot_dimension_numbers<[1], [0], [0], [1], [0, 0, 1, 1], [], []>} : vector<24x16xf32>, vector<16x32xf32>, vector<24x32xf32> -> vector<24x32xf32>
    %c1_159 = arith.constant 1 : index
    %c0_160 = arith.constant 0 : index
    %c0_161 = arith.constant 0 : index
    %263 = vector.load %arg24[%c1_159, %c0_160, %c0_161] : memref<2x32x96xbf16, #tpu.memory_space<vmem>>, vector<1x32x96xbf16>
    %264 = vector.shape_cast %263 : vector<1x32x96xbf16> to vector<32x96xbf16>
    %265 = arith.truncf %262 : vector<24x32xf32> to vector<24x32xbf16>
    %cst_162 = arith.constant dense<0.000000e+00> : vector<24x96xf32>
    %266 = tpu.matmul %265, %264, %cst_162 {dimension_numbers = #tpu.dot_dimension_numbers<[1], [0], [0], [1], [0, 0, 1, 1], [], []>} : vector<24x32xbf16>, vector<32x96xbf16>, vector<24x96xf32> -> vector<24x96xf32>
    %c1_163 = arith.constant 1 : index
    %c0_164 = arith.constant 0 : index
    %c0_165 = arith.constant 0 : index
    %267 = vector.load %arg25[%c1_163, %c0_164, %c0_165] : memref<2x1x96xf32, #tpu.memory_space<vmem>>, vector<1x1x96xf32>
    %268 = vector.shape_cast %267 : vector<1x1x96xf32> to vector<1x96xf32>
    %269 = vector.broadcast %268 : vector<1x96xf32> to vector<24x96xf32>
    %270 = arith.addf %266, %269 : vector<24x96xf32>
    %271 = vector.extract_strided_slice %270 {offsets = [0, 0], sizes = [24, 32], strides = [1, 1]} : vector<24x96xf32> to vector<24x32xf32>
    %cst_166 = arith.constant 5.000000e-01 : f32
    %272 = vector.broadcast %cst_166 : f32 to vector<24x32xf32>
    %273 = arith.mulf %271, %272 : vector<24x32xf32>
    %274 = arith.truncf %273 : vector<24x32xf32> to vector<24x32xbf16>
    %275 = vector.extract_strided_slice %270 {offsets = [0, 32], sizes = [24, 32], strides = [1, 1]} : vector<24x96xf32> to vector<24x32xf32>
    %276 = arith.truncf %275 : vector<24x32xf32> to vector<24x32xbf16>
    %277 = vector.extract_strided_slice %270 {offsets = [0, 64], sizes = [24, 32], strides = [1, 1]} : vector<24x96xf32> to vector<24x32xf32>
    %278 = arith.truncf %277 : vector<24x32xf32> to vector<24x32xbf16>
    %279 = vector.extract_strided_slice %274 {offsets = [0, 0], sizes = [24, 4], strides = [1, 1]} : vector<24x32xbf16> to vector<24x4xbf16>
    %280 = vector.extract_strided_slice %276 {offsets = [0, 0], sizes = [24, 4], strides = [1, 1]} : vector<24x32xbf16> to vector<24x4xbf16>
    %cst_167 = arith.constant dense<0.000000e+00> : vector<24x24xf32>
    %281 = tpu.matmul %279, %280, %cst_167 {dimension_numbers = #tpu.dot_dimension_numbers<[1], [1], [0], [0], [0, 0, 1, 0], [], []>} : vector<24x4xbf16>, vector<24x4xbf16>, vector<24x24xf32> -> vector<24x24xf32>
    %282 = arith.addf %281, %38 : vector<24x24xf32>
    %283 = vector.extract_strided_slice %274 {offsets = [0, 4], sizes = [24, 4], strides = [1, 1]} : vector<24x32xbf16> to vector<24x4xbf16>
    %284 = vector.extract_strided_slice %276 {offsets = [0, 4], sizes = [24, 4], strides = [1, 1]} : vector<24x32xbf16> to vector<24x4xbf16>
    %cst_168 = arith.constant dense<0.000000e+00> : vector<24x24xf32>
    %285 = tpu.matmul %283, %284, %cst_168 {dimension_numbers = #tpu.dot_dimension_numbers<[1], [1], [0], [0], [0, 0, 1, 0], [], []>} : vector<24x4xbf16>, vector<24x4xbf16>, vector<24x24xf32> -> vector<24x24xf32>
    %286 = arith.addf %285, %38 : vector<24x24xf32>
    %287 = vector.extract_strided_slice %274 {offsets = [0, 8], sizes = [24, 4], strides = [1, 1]} : vector<24x32xbf16> to vector<24x4xbf16>
    %288 = vector.extract_strided_slice %276 {offsets = [0, 8], sizes = [24, 4], strides = [1, 1]} : vector<24x32xbf16> to vector<24x4xbf16>
    %cst_169 = arith.constant dense<0.000000e+00> : vector<24x24xf32>
    %289 = tpu.matmul %287, %288, %cst_169 {dimension_numbers = #tpu.dot_dimension_numbers<[1], [1], [0], [0], [0, 0, 1, 0], [], []>} : vector<24x4xbf16>, vector<24x4xbf16>, vector<24x24xf32> -> vector<24x24xf32>
    %290 = arith.addf %289, %38 : vector<24x24xf32>
    %291 = vector.extract_strided_slice %274 {offsets = [0, 12], sizes = [24, 4], strides = [1, 1]} : vector<24x32xbf16> to vector<24x4xbf16>
    %292 = vector.extract_strided_slice %276 {offsets = [0, 12], sizes = [24, 4], strides = [1, 1]} : vector<24x32xbf16> to vector<24x4xbf16>
    %cst_170 = arith.constant dense<0.000000e+00> : vector<24x24xf32>
    %293 = tpu.matmul %291, %292, %cst_170 {dimension_numbers = #tpu.dot_dimension_numbers<[1], [1], [0], [0], [0, 0, 1, 0], [], []>} : vector<24x4xbf16>, vector<24x4xbf16>, vector<24x24xf32> -> vector<24x24xf32>
    %294 = arith.addf %293, %38 : vector<24x24xf32>
    %295 = vector.extract_strided_slice %274 {offsets = [0, 16], sizes = [24, 4], strides = [1, 1]} : vector<24x32xbf16> to vector<24x4xbf16>
    %296 = vector.extract_strided_slice %276 {offsets = [0, 16], sizes = [24, 4], strides = [1, 1]} : vector<24x32xbf16> to vector<24x4xbf16>
    %cst_171 = arith.constant dense<0.000000e+00> : vector<24x24xf32>
    %297 = tpu.matmul %295, %296, %cst_171 {dimension_numbers = #tpu.dot_dimension_numbers<[1], [1], [0], [0], [0, 0, 1, 0], [], []>} : vector<24x4xbf16>, vector<24x4xbf16>, vector<24x24xf32> -> vector<24x24xf32>
    %298 = arith.addf %297, %38 : vector<24x24xf32>
    %299 = vector.extract_strided_slice %274 {offsets = [0, 20], sizes = [24, 4], strides = [1, 1]} : vector<24x32xbf16> to vector<24x4xbf16>
    %300 = vector.extract_strided_slice %276 {offsets = [0, 20], sizes = [24, 4], strides = [1, 1]} : vector<24x32xbf16> to vector<24x4xbf16>
    %cst_172 = arith.constant dense<0.000000e+00> : vector<24x24xf32>
    %301 = tpu.matmul %299, %300, %cst_172 {dimension_numbers = #tpu.dot_dimension_numbers<[1], [1], [0], [0], [0, 0, 1, 0], [], []>} : vector<24x4xbf16>, vector<24x4xbf16>, vector<24x24xf32> -> vector<24x24xf32>
    %302 = arith.addf %301, %38 : vector<24x24xf32>
    %303 = vector.extract_strided_slice %274 {offsets = [0, 24], sizes = [24, 4], strides = [1, 1]} : vector<24x32xbf16> to vector<24x4xbf16>
    %304 = vector.extract_strided_slice %276 {offsets = [0, 24], sizes = [24, 4], strides = [1, 1]} : vector<24x32xbf16> to vector<24x4xbf16>
    %cst_173 = arith.constant dense<0.000000e+00> : vector<24x24xf32>
    %305 = tpu.matmul %303, %304, %cst_173 {dimension_numbers = #tpu.dot_dimension_numbers<[1], [1], [0], [0], [0, 0, 1, 0], [], []>} : vector<24x4xbf16>, vector<24x4xbf16>, vector<24x24xf32> -> vector<24x24xf32>
    %306 = arith.addf %305, %38 : vector<24x24xf32>
    %307 = vector.extract_strided_slice %274 {offsets = [0, 28], sizes = [24, 4], strides = [1, 1]} : vector<24x32xbf16> to vector<24x4xbf16>
    %308 = vector.extract_strided_slice %276 {offsets = [0, 28], sizes = [24, 4], strides = [1, 1]} : vector<24x32xbf16> to vector<24x4xbf16>
    %cst_174 = arith.constant dense<0.000000e+00> : vector<24x24xf32>
    %309 = tpu.matmul %307, %308, %cst_174 {dimension_numbers = #tpu.dot_dimension_numbers<[1], [1], [0], [0], [0, 0, 1, 0], [], []>} : vector<24x4xbf16>, vector<24x4xbf16>, vector<24x24xf32> -> vector<24x24xf32>
    %310 = arith.addf %309, %38 : vector<24x24xf32>
    %311 = tpu.concatenate %282, %286, %290, %294, %298, %302, %306, %310 in 0 : vector<24x24xf32>, vector<24x24xf32>, vector<24x24xf32>, vector<24x24xf32>, vector<24x24xf32>, vector<24x24xf32>, vector<24x24xf32>, vector<24x24xf32> -> vector<192x24xf32>
    %cst_175 = arith.constant dense<0xFF800000> : vector<192xf32>
    %312 = vector.multi_reduction <maximumf>, %311, %cst_175 [1] : vector<192x24xf32> to vector<192xf32>
    %313 = vector.shape_cast %312 : vector<192xf32> to vector<192x1xf32>
    %314 = vector.broadcast %313 : vector<192x1xf32> to vector<192x24xf32>
    %315 = arith.subf %311, %314 : vector<192x24xf32>
    %316 = math.exp %315 : vector<192x24xf32>
    %cst_176 = arith.constant dense<0.000000e+00> : vector<192xf32>
    %317 = vector.multi_reduction <add>, %316, %cst_176 [1] : vector<192x24xf32> to vector<192xf32>
    %318 = vector.shape_cast %317 : vector<192xf32> to vector<192x1xf32>
    %319 = tpu.reciprocal %318 {approx = true} : vector<192x1xf32> -> vector<192x1xf32>
    %320 = vector.broadcast %319 : vector<192x1xf32> to vector<192x24xf32>
    %321 = arith.mulf %316, %320 : vector<192x24xf32>
    %322 = arith.truncf %321 : vector<192x24xf32> to vector<192x24xbf16>
    %323 = vector.extract_strided_slice %322 {offsets = [0, 0], sizes = [24, 24], strides = [1, 1]} : vector<192x24xbf16> to vector<24x24xbf16>
    %324 = vector.extract_strided_slice %278 {offsets = [0, 0], sizes = [24, 4], strides = [1, 1]} : vector<24x32xbf16> to vector<24x4xbf16>
    %cst_177 = arith.constant dense<0.000000e+00> : vector<24x4xf32>
    %325 = tpu.matmul %323, %324, %cst_177 {dimension_numbers = #tpu.dot_dimension_numbers<[1], [0], [0], [1], [0, 0, 1, 1], [], []>} : vector<24x24xbf16>, vector<24x4xbf16>, vector<24x4xf32> -> vector<24x4xf32>
    %326 = vector.extract_strided_slice %322 {offsets = [24, 0], sizes = [24, 24], strides = [1, 1]} : vector<192x24xbf16> to vector<24x24xbf16>
    %327 = vector.extract_strided_slice %278 {offsets = [0, 4], sizes = [24, 4], strides = [1, 1]} : vector<24x32xbf16> to vector<24x4xbf16>
    %cst_178 = arith.constant dense<0.000000e+00> : vector<24x4xf32>
    %328 = tpu.matmul %326, %327, %cst_178 {dimension_numbers = #tpu.dot_dimension_numbers<[1], [0], [0], [1], [0, 0, 1, 1], [], []>} : vector<24x24xbf16>, vector<24x4xbf16>, vector<24x4xf32> -> vector<24x4xf32>
    %329 = vector.extract_strided_slice %322 {offsets = [48, 0], sizes = [24, 24], strides = [1, 1]} : vector<192x24xbf16> to vector<24x24xbf16>
    %330 = vector.extract_strided_slice %278 {offsets = [0, 8], sizes = [24, 4], strides = [1, 1]} : vector<24x32xbf16> to vector<24x4xbf16>
    %cst_179 = arith.constant dense<0.000000e+00> : vector<24x4xf32>
    %331 = tpu.matmul %329, %330, %cst_179 {dimension_numbers = #tpu.dot_dimension_numbers<[1], [0], [0], [1], [0, 0, 1, 1], [], []>} : vector<24x24xbf16>, vector<24x4xbf16>, vector<24x4xf32> -> vector<24x4xf32>
    %332 = vector.extract_strided_slice %322 {offsets = [72, 0], sizes = [24, 24], strides = [1, 1]} : vector<192x24xbf16> to vector<24x24xbf16>
    %333 = vector.extract_strided_slice %278 {offsets = [0, 12], sizes = [24, 4], strides = [1, 1]} : vector<24x32xbf16> to vector<24x4xbf16>
    %cst_180 = arith.constant dense<0.000000e+00> : vector<24x4xf32>
    %334 = tpu.matmul %332, %333, %cst_180 {dimension_numbers = #tpu.dot_dimension_numbers<[1], [0], [0], [1], [0, 0, 1, 1], [], []>} : vector<24x24xbf16>, vector<24x4xbf16>, vector<24x4xf32> -> vector<24x4xf32>
    %335 = vector.extract_strided_slice %322 {offsets = [96, 0], sizes = [24, 24], strides = [1, 1]} : vector<192x24xbf16> to vector<24x24xbf16>
    %336 = vector.extract_strided_slice %278 {offsets = [0, 16], sizes = [24, 4], strides = [1, 1]} : vector<24x32xbf16> to vector<24x4xbf16>
    %cst_181 = arith.constant dense<0.000000e+00> : vector<24x4xf32>
    %337 = tpu.matmul %335, %336, %cst_181 {dimension_numbers = #tpu.dot_dimension_numbers<[1], [0], [0], [1], [0, 0, 1, 1], [], []>} : vector<24x24xbf16>, vector<24x4xbf16>, vector<24x4xf32> -> vector<24x4xf32>
    %338 = vector.extract_strided_slice %322 {offsets = [120, 0], sizes = [24, 24], strides = [1, 1]} : vector<192x24xbf16> to vector<24x24xbf16>
    %339 = vector.extract_strided_slice %278 {offsets = [0, 20], sizes = [24, 4], strides = [1, 1]} : vector<24x32xbf16> to vector<24x4xbf16>
    %cst_182 = arith.constant dense<0.000000e+00> : vector<24x4xf32>
    %340 = tpu.matmul %338, %339, %cst_182 {dimension_numbers = #tpu.dot_dimension_numbers<[1], [0], [0], [1], [0, 0, 1, 1], [], []>} : vector<24x24xbf16>, vector<24x4xbf16>, vector<24x4xf32> -> vector<24x4xf32>
    %341 = vector.extract_strided_slice %322 {offsets = [144, 0], sizes = [24, 24], strides = [1, 1]} : vector<192x24xbf16> to vector<24x24xbf16>
    %342 = vector.extract_strided_slice %278 {offsets = [0, 24], sizes = [24, 4], strides = [1, 1]} : vector<24x32xbf16> to vector<24x4xbf16>
    %cst_183 = arith.constant dense<0.000000e+00> : vector<24x4xf32>
    %343 = tpu.matmul %341, %342, %cst_183 {dimension_numbers = #tpu.dot_dimension_numbers<[1], [0], [0], [1], [0, 0, 1, 1], [], []>} : vector<24x24xbf16>, vector<24x4xbf16>, vector<24x4xf32> -> vector<24x4xf32>
    %344 = vector.extract_strided_slice %322 {offsets = [168, 0], sizes = [24, 24], strides = [1, 1]} : vector<192x24xbf16> to vector<24x24xbf16>
    %345 = vector.extract_strided_slice %278 {offsets = [0, 28], sizes = [24, 4], strides = [1, 1]} : vector<24x32xbf16> to vector<24x4xbf16>
    %cst_184 = arith.constant dense<0.000000e+00> : vector<24x4xf32>
    %346 = tpu.matmul %344, %345, %cst_184 {dimension_numbers = #tpu.dot_dimension_numbers<[1], [0], [0], [1], [0, 0, 1, 1], [], []>} : vector<24x24xbf16>, vector<24x4xbf16>, vector<24x4xf32> -> vector<24x4xf32>
    %347 = tpu.concatenate %325, %328, %331, %334, %337, %340, %343, %346 in 1 : vector<24x4xf32>, vector<24x4xf32>, vector<24x4xf32>, vector<24x4xf32>, vector<24x4xf32>, vector<24x4xf32>, vector<24x4xf32>, vector<24x4xf32> -> vector<24x32xf32>
    %c1_185 = arith.constant 1 : index
    %c0_186 = arith.constant 0 : index
    %c0_187 = arith.constant 0 : index
    %348 = vector.load %arg26[%c1_185, %c0_186, %c0_187] : memref<2x32x32xbf16, #tpu.memory_space<vmem>>, vector<1x32x32xbf16>
    %349 = vector.shape_cast %348 : vector<1x32x32xbf16> to vector<32x32xbf16>
    %350 = arith.truncf %347 : vector<24x32xf32> to vector<24x32xbf16>
    %cst_188 = arith.constant dense<0.000000e+00> : vector<24x32xf32>
    %351 = tpu.matmul %350, %349, %cst_188 {dimension_numbers = #tpu.dot_dimension_numbers<[1], [0], [0], [1], [0, 0, 1, 1], [], []>} : vector<24x32xbf16>, vector<32x32xbf16>, vector<24x32xf32> -> vector<24x32xf32>
    %c1_189 = arith.constant 1 : index
    %c0_190 = arith.constant 0 : index
    %c0_191 = arith.constant 0 : index
    %352 = vector.load %arg27[%c1_189, %c0_190, %c0_191] : memref<2x1x32xf32, #tpu.memory_space<vmem>>, vector<1x1x32xf32>
    %353 = vector.shape_cast %352 : vector<1x1x32xf32> to vector<1x32xf32>
    %354 = vector.broadcast %353 : vector<1x32xf32> to vector<24x32xf32>
    %355 = arith.addf %351, %354 : vector<24x32xf32>
    %cst_192 = arith.constant dense<0.000000e+00> : vector<16x32xf32>
    %356 = tpu.matmul %25, %355, %cst_192 {dimension_numbers = #tpu.dot_dimension_numbers<[1], [0], [0], [1], [0, 0, 1, 1], [], []>} : vector<16x24xf32>, vector<24x32xf32>, vector<16x32xf32> -> vector<16x32xf32>
    %357 = arith.addf %356, %217 : vector<16x32xf32>
    %c1_193 = arith.constant 1 : index
    %c0_194 = arith.constant 0 : index
    %c0_195 = arith.constant 0 : index
    %358 = vector.load %arg34[%c1_193, %c0_194, %c0_195] : memref<2x1x32xf32, #tpu.memory_space<vmem>>, vector<1x1x32xf32>
    %359 = vector.shape_cast %358 : vector<1x1x32xf32> to vector<1x32xf32>
    %360 = vector.broadcast %359 : vector<1x32xf32> to vector<16x32xf32>
    %361 = arith.mulf %357, %360 : vector<16x32xf32>
    %c1_196 = arith.constant 1 : index
    %c0_197 = arith.constant 0 : index
    %c0_198 = arith.constant 0 : index
    %362 = vector.load %arg35[%c1_196, %c0_197, %c0_198] : memref<2x1x32xf32, #tpu.memory_space<vmem>>, vector<1x1x32xf32>
    %363 = vector.shape_cast %362 : vector<1x1x32xf32> to vector<1x32xf32>
    %364 = vector.broadcast %363 : vector<1x32xf32> to vector<16x32xf32>
    %365 = arith.addf %361, %364 : vector<16x32xf32>
    %366 = arith.addf %261, %365 : vector<16x32xf32>
    %c1_199 = arith.constant 1 : index
    %c0_200 = arith.constant 0 : index
    %c0_201 = arith.constant 0 : index
    %367 = vector.load %arg28[%c1_199, %c0_200, %c0_201] : memref<2x32x64xbf16, #tpu.memory_space<vmem>>, vector<1x32x64xbf16>
    %368 = vector.shape_cast %367 : vector<1x32x64xbf16> to vector<32x64xbf16>
    %369 = arith.truncf %366 : vector<16x32xf32> to vector<16x32xbf16>
    %cst_202 = arith.constant dense<0.000000e+00> : vector<16x64xf32>
    %370 = tpu.matmul %369, %368, %cst_202 {dimension_numbers = #tpu.dot_dimension_numbers<[1], [0], [0], [1], [0, 0, 1, 1], [], []>} : vector<16x32xbf16>, vector<32x64xbf16>, vector<16x64xf32> -> vector<16x64xf32>
    %c1_203 = arith.constant 1 : index
    %c0_204 = arith.constant 0 : index
    %c0_205 = arith.constant 0 : index
    %371 = vector.load %arg29[%c1_203, %c0_204, %c0_205] : memref<2x1x64xf32, #tpu.memory_space<vmem>>, vector<1x1x64xf32>
    %372 = vector.shape_cast %371 : vector<1x1x64xf32> to vector<1x64xf32>
    %373 = vector.broadcast %372 : vector<1x64xf32> to vector<16x64xf32>
    %374 = arith.addf %370, %373 : vector<16x64xf32>
    %cst_206 = arith.constant 0.000000e+00 : f32
    %375 = vector.broadcast %cst_206 : f32 to vector<16x64xf32>
    %376 = arith.maximumf %374, %375 : vector<16x64xf32>
    %c1_207 = arith.constant 1 : index
    %c0_208 = arith.constant 0 : index
    %c0_209 = arith.constant 0 : index
    %377 = vector.load %arg30[%c1_207, %c0_208, %c0_209] : memref<2x64x32xbf16, #tpu.memory_space<vmem>>, vector<1x64x32xbf16>
    %378 = vector.shape_cast %377 : vector<1x64x32xbf16> to vector<64x32xbf16>
    %379 = arith.truncf %376 : vector<16x64xf32> to vector<16x64xbf16>
    %cst_210 = arith.constant dense<0.000000e+00> : vector<16x32xf32>
    %380 = tpu.matmul %379, %378, %cst_210 {dimension_numbers = #tpu.dot_dimension_numbers<[1], [0], [0], [1], [0, 0, 1, 1], [], []>} : vector<16x64xbf16>, vector<64x32xbf16>, vector<16x32xf32> -> vector<16x32xf32>
    %c1_211 = arith.constant 1 : index
    %c0_212 = arith.constant 0 : index
    %c0_213 = arith.constant 0 : index
    %381 = vector.load %arg31[%c1_211, %c0_212, %c0_213] : memref<2x1x32xf32, #tpu.memory_space<vmem>>, vector<1x1x32xf32>
    %382 = vector.shape_cast %381 : vector<1x1x32xf32> to vector<1x32xf32>
    %383 = vector.broadcast %382 : vector<1x32xf32> to vector<16x32xf32>
    %384 = arith.addf %380, %383 : vector<16x32xf32>
    %385 = arith.addf %366, %384 : vector<16x32xf32>
    %c1_214 = arith.constant 1 : index
    %c0_215 = arith.constant 0 : index
    %c0_216 = arith.constant 0 : index
    %386 = vector.load %arg36[%c1_214, %c0_215, %c0_216] : memref<2x1x32xf32, #tpu.memory_space<vmem>>, vector<1x1x32xf32>
    %387 = vector.shape_cast %386 : vector<1x1x32xf32> to vector<1x32xf32>
    %388 = vector.broadcast %387 : vector<1x32xf32> to vector<16x32xf32>
    %389 = arith.mulf %385, %388 : vector<16x32xf32>
    %c1_217 = arith.constant 1 : index
    %c0_218 = arith.constant 0 : index
    %c0_219 = arith.constant 0 : index
    %390 = vector.load %arg37[%c1_217, %c0_218, %c0_219] : memref<2x1x32xf32, #tpu.memory_space<vmem>>, vector<1x1x32xf32>
    %391 = vector.shape_cast %390 : vector<1x1x32xf32> to vector<1x32xf32>
    %392 = vector.broadcast %391 : vector<1x32xf32> to vector<16x32xf32>
    %393 = arith.addf %389, %392 : vector<16x32xf32>
    %c0_220 = arith.constant 0 : index
    %c0_221 = arith.constant 0 : index
    %394 = vector.load %arg11[%c0_220, %c0_221] : memref<2x16xf32, #tpu.memory_space<vmem>>, vector<2x16xf32>
    %cst_222 = arith.constant dense<0.000000e+00> : vector<2x32xf32>
    %395 = tpu.matmul %394, %393, %cst_222 {dimension_numbers = #tpu.dot_dimension_numbers<[1], [0], [0], [1], [0, 0, 1, 1], [], []>} : vector<2x16xf32>, vector<16x32xf32>, vector<2x32xf32> -> vector<2x32xf32>
    %c0_223 = arith.constant 0 : index
    %c0_224 = arith.constant 0 : index
    %396 = vector.load %arg38[%c0_223, %c0_224] : memref<2x32xf32, #tpu.memory_space<vmem>>, vector<2x32xf32>
    tpu.vector_store %arg38[%c0_223, %c0_224], %395 {strides = array<i32>} : memref<2x32xf32, #tpu.memory_space<vmem>>, vector<2x32xf32>,
    return
  }
  func.func @transform_0(%arg0: i32) -> (i32, i32) {
    %c0_i32 = arith.constant 0 : i32
    %c0_i32_0 = arith.constant 0 : i32
    %c0_i32_1 = arith.constant 0 : i32
    return %c0_i32, %c0_i32_0 : i32, i32
  }
  func.func @transform_1(%arg0: i32) -> (i32, i32) {
    %c0_i32 = arith.constant 0 : i32
    %c0_i32_0 = arith.constant 0 : i32
    %c0_i32_1 = arith.constant 0 : i32
    return %c0_i32, %c0_i32_0 : i32, i32
  }
  func.func @transform_2(%arg0: i32) -> (i32, i32) {
    %c0_i32 = arith.constant 0 : i32
    %c0_i32_0 = arith.constant 0 : i32
    %c0_i32_1 = arith.constant 0 : i32
    return %c0_i32, %c0_i32_0 : i32, i32
  }
  func.func @transform_3(%arg0: i32) -> (i32, i32) {
    %c0_i32 = arith.constant 0 : i32
    %c0_i32_0 = arith.constant 0 : i32
    %c0_i32_1 = arith.constant 0 : i32
    return %c0_i32, %c0_i32_0 : i32, i32
  }
  func.func @transform_4(%arg0: i32) -> (i32, i32) {
    %c0_i32 = arith.constant 0 : i32
    %c0_i32_0 = arith.constant 0 : i32
    %c0_i32_1 = arith.constant 0 : i32
    return %c0_i32, %c0_i32_0 : i32, i32
  }
  func.func @transform_5(%arg0: i32) -> (i32, i32) {
    %c0_i32 = arith.constant 0 : i32
    %c0_i32_0 = arith.constant 0 : i32
    %c0_i32_1 = arith.constant 0 : i32
    return %c0_i32, %c0_i32_0 : i32, i32
  }
  func.func @transform_6(%arg0: i32) -> (i32, i32) {
    %c0_i32 = arith.constant 0 : i32
    %c0_i32_0 = arith.constant 0 : i32
    %c0_i32_1 = arith.constant 0 : i32
    return %c0_i32, %c0_i32_0 : i32, i32
  }
  func.func @transform_7(%arg0: i32) -> (i32, i32) {
    %c0_i32 = arith.constant 0 : i32
    %c0_i32_0 = arith.constant 0 : i32
    %c0_i32_1 = arith.constant 0 : i32
    return %c0_i32, %c0_i32_0 : i32, i32
  }
  func.func @transform_8(%arg0: i32) -> (i32, i32) {
    %c0_i32 = arith.constant 0 : i32
    %c0_i32_0 = arith.constant 0 : i32
    %c0_i32_1 = arith.constant 0 : i32
    return %c0_i32, %c0_i32_0 : i32, i32
  }
  func.func @transform_9(%arg0: i32) -> (i32, i32) {
    %c0_i32 = arith.constant 0 : i32
    %c0_i32_0 = arith.constant 0 : i32
    %c0_i32_1 = arith.constant 0 : i32
    return %c0_i32, %c0_i32_0 : i32, i32
  }
  func.func @transform_10(%arg0: i32) -> (i32, i32) {
    %c0_i32 = arith.constant 0 : i32
    %c0_i32_0 = arith.constant 0 : i32
    %c0_i32_1 = arith.constant 0 : i32
    return %c0_i32, %c0_i32_0 : i32, i32
  }
  func.func @transform_11(%arg0: i32) -> (i32, i32) {
    %c0_i32 = arith.constant 0 : i32
    %c0_i32_0 = arith.constant 0 : i32
    %c0_i32_1 = arith.constant 0 : i32
    return %c0_i32, %c0_i32_0 : i32, i32
  }
  func.func @transform_12(%arg0: i32) -> (i32, i32) {
    %c0_i32 = arith.constant 0 : i32
    %c0_i32_0 = arith.constant 0 : i32
    %c0_i32_1 = arith.constant 0 : i32
    return %c0_i32, %c0_i32_0 : i32, i32
  }
  func.func @transform_13(%arg0: i32) -> (i32, i32) {
    %c0_i32 = arith.constant 0 : i32
    %c0_i32_0 = arith.constant 0 : i32
    %c0_i32_1 = arith.constant 0 : i32
    return %c0_i32, %c0_i32_0 : i32, i32
  }
  func.func @transform_14(%arg0: i32) -> (i32, i32) {
    %c0_i32 = arith.constant 0 : i32
    %c0_i32_0 = arith.constant 0 : i32
    %c0_i32_1 = arith.constant 0 : i32
    return %c0_i32, %c0_i32_0 : i32, i32
  }
  func.func @transform_15(%arg0: i32) -> (i32, i32) {
    %c0_i32 = arith.constant 0 : i32
    %c0_i32_0 = arith.constant 0 : i32
    %c0_i32_1 = arith.constant 0 : i32
    return %c0_i32, %c0_i32_0 : i32, i32
  }
  func.func @transform_16(%arg0: i32) -> (i32, i32) {
    %c0_i32 = arith.constant 0 : i32
    %c0_i32_0 = arith.constant 0 : i32
    %c0_i32_1 = arith.constant 0 : i32
    return %c0_i32, %c0_i32_0 : i32, i32
  }
  func.func @transform_17(%arg0: i32) -> (i32, i32) {
    %c0_i32 = arith.constant 0 : i32
    %c0_i32_0 = arith.constant 0 : i32
    %c0_i32_1 = arith.constant 0 : i32
    return %c0_i32, %c0_i32_0 : i32, i32
  }
  func.func @transform_18(%arg0: i32) -> (i32, i32, i32) {
    %c0_i32 = arith.constant 0 : i32
    %c0_i32_0 = arith.constant 0 : i32
    %c0_i32_1 = arith.constant 0 : i32
    %c0_i32_2 = arith.constant 0 : i32
    return %c0_i32, %c0_i32_0, %c0_i32_1 : i32, i32, i32
  }
  func.func @transform_19(%arg0: i32) -> (i32, i32, i32) {
    %c0_i32 = arith.constant 0 : i32
    %c0_i32_0 = arith.constant 0 : i32
    %c0_i32_1 = arith.constant 0 : i32
    %c0_i32_2 = arith.constant 0 : i32
    return %c0_i32, %c0_i32_0, %c0_i32_1 : i32, i32, i32
  }
  func.func @transform_20(%arg0: i32) -> (i32, i32, i32) {
    %c0_i32 = arith.constant 0 : i32
    %c0_i32_0 = arith.constant 0 : i32
    %c0_i32_1 = arith.constant 0 : i32
    %c0_i32_2 = arith.constant 0 : i32
    return %c0_i32, %c0_i32_0, %c0_i32_1 : i32, i32, i32
  }
  func.func @transform_21(%arg0: i32) -> (i32, i32, i32) {
    %c0_i32 = arith.constant 0 : i32
    %c0_i32_0 = arith.constant 0 : i32
    %c0_i32_1 = arith.constant 0 : i32
    %c0_i32_2 = arith.constant 0 : i32
    return %c0_i32, %c0_i32_0, %c0_i32_1 : i32, i32, i32
  }
  func.func @transform_22(%arg0: i32) -> (i32, i32, i32) {
    %c0_i32 = arith.constant 0 : i32
    %c0_i32_0 = arith.constant 0 : i32
    %c0_i32_1 = arith.constant 0 : i32
    %c0_i32_2 = arith.constant 0 : i32
    return %c0_i32, %c0_i32_0, %c0_i32_1 : i32, i32, i32
  }
  func.func @transform_23(%arg0: i32) -> (i32, i32, i32) {
    %c0_i32 = arith.constant 0 : i32
    %c0_i32_0 = arith.constant 0 : i32
    %c0_i32_1 = arith.constant 0 : i32
    %c0_i32_2 = arith.constant 0 : i32
    return %c0_i32, %c0_i32_0, %c0_i32_1 : i32, i32, i32
  }
  func.func @transform_24(%arg0: i32) -> (i32, i32, i32) {
    %c0_i32 = arith.constant 0 : i32
    %c0_i32_0 = arith.constant 0 : i32
    %c0_i32_1 = arith.constant 0 : i32
    %c0_i32_2 = arith.constant 0 : i32
    return %c0_i32, %c0_i32_0, %c0_i32_1 : i32, i32, i32
  }
  func.func @transform_25(%arg0: i32) -> (i32, i32, i32) {
    %c0_i32 = arith.constant 0 : i32
    %c0_i32_0 = arith.constant 0 : i32
    %c0_i32_1 = arith.constant 0 : i32
    %c0_i32_2 = arith.constant 0 : i32
    return %c0_i32, %c0_i32_0, %c0_i32_1 : i32, i32, i32
  }
  func.func @transform_26(%arg0: i32) -> (i32, i32, i32) {
    %c0_i32 = arith.constant 0 : i32
    %c0_i32_0 = arith.constant 0 : i32
    %c0_i32_1 = arith.constant 0 : i32
    %c0_i32_2 = arith.constant 0 : i32
    return %c0_i32, %c0_i32_0, %c0_i32_1 : i32, i32, i32
  }
  func.func @transform_27(%arg0: i32) -> (i32, i32, i32) {
    %c0_i32 = arith.constant 0 : i32
    %c0_i32_0 = arith.constant 0 : i32
    %c0_i32_1 = arith.constant 0 : i32
    %c0_i32_2 = arith.constant 0 : i32
    return %c0_i32, %c0_i32_0, %c0_i32_1 : i32, i32, i32
  }
  func.func @transform_28(%arg0: i32) -> (i32, i32, i32) {
    %c0_i32 = arith.constant 0 : i32
    %c0_i32_0 = arith.constant 0 : i32
    %c0_i32_1 = arith.constant 0 : i32
    %c0_i32_2 = arith.constant 0 : i32
    return %c0_i32, %c0_i32_0, %c0_i32_1 : i32, i32, i32
  }
  func.func @transform_29(%arg0: i32) -> (i32, i32, i32) {
    %c0_i32 = arith.constant 0 : i32
    %c0_i32_0 = arith.constant 0 : i32
    %c0_i32_1 = arith.constant 0 : i32
    %c0_i32_2 = arith.constant 0 : i32
    return %c0_i32, %c0_i32_0, %c0_i32_1 : i32, i32, i32
  }
  func.func @transform_30(%arg0: i32) -> (i32, i32, i32) {
    %c0_i32 = arith.constant 0 : i32
    %c0_i32_0 = arith.constant 0 : i32
    %c0_i32_1 = arith.constant 0 : i32
    %c0_i32_2 = arith.constant 0 : i32
    return %c0_i32, %c0_i32_0, %c0_i32_1 : i32, i32, i32
  }
  func.func @transform_31(%arg0: i32) -> (i32, i32, i32) {
    %c0_i32 = arith.constant 0 : i32
    %c0_i32_0 = arith.constant 0 : i32
    %c0_i32_1 = arith.constant 0 : i32
    %c0_i32_2 = arith.constant 0 : i32
    return %c0_i32, %c0_i32_0, %c0_i32_1 : i32, i32, i32
  }
  func.func @transform_32(%arg0: i32) -> (i32, i32, i32) {
    %c0_i32 = arith.constant 0 : i32
    %c0_i32_0 = arith.constant 0 : i32
    %c0_i32_1 = arith.constant 0 : i32
    %c0_i32_2 = arith.constant 0 : i32
    return %c0_i32, %c0_i32_0, %c0_i32_1 : i32, i32, i32
  }
  func.func @transform_33(%arg0: i32) -> (i32, i32, i32) {
    %c0_i32 = arith.constant 0 : i32
    %c0_i32_0 = arith.constant 0 : i32
    %c0_i32_1 = arith.constant 0 : i32
    %c0_i32_2 = arith.constant 0 : i32
    return %c0_i32, %c0_i32_0, %c0_i32_1 : i32, i32, i32
  }
  func.func @transform_34(%arg0: i32) -> (i32, i32, i32) {
    %c0_i32 = arith.constant 0 : i32
    %c0_i32_0 = arith.constant 0 : i32
    %c0_i32_1 = arith.constant 0 : i32
    %c0_i32_2 = arith.constant 0 : i32
    return %c0_i32, %c0_i32_0, %c0_i32_1 : i32, i32, i32
  }
  func.func @transform_35(%arg0: i32) -> (i32, i32, i32) {
    %c0_i32 = arith.constant 0 : i32
    %c0_i32_0 = arith.constant 0 : i32
    %c0_i32_1 = arith.constant 0 : i32
    %c0_i32_2 = arith.constant 0 : i32
    return %c0_i32, %c0_i32_0, %c0_i32_1 : i32, i32, i32
  }
  func.func @transform_36(%arg0: i32) -> (i32, i32, i32) {
    %c0_i32 = arith.constant 0 : i32
    %c0_i32_0 = arith.constant 0 : i32
    %c0_i32_1 = arith.constant 0 : i32
    %c0_i32_2 = arith.constant 0 : i32
    return %c0_i32, %c0_i32_0, %c0_i32_1 : i32, i32, i32
  }
  func.func @transform_37(%arg0: i32) -> (i32, i32) {
    %c0_i32 = arith.constant 0 : i32
    %c0_i32_0 = arith.constant 0 : i32
    %c0_i32_1 = arith.constant 0 : i32
    return %c0_i32, %c0_i32_0 : i32, i32
  }
}

</mosaic_0001>

<bundles_post_ra>
// kernel: gps_forward.1
= control target key start
LH: loop header
LB: loop body
LE: loop exit
PB: predicated region body
PF: predicated region fallthrough
CT: control target
= control target key end

     0   :  { %s4379_s6 = smov 1   ;;  %s4380_s10 = smov 2   ;;  %s5902_s0 = inlined_call_operand.smem [shape: u32[38], index: -1, kind: input, shape index: {}] }
   0x1   :  { %s4459_s5 = sld [smem:[%s5902_s0]]   ;;  %s4381_s14 = smov 3  }
   0x2   :  { %s4464_s9 = sld [smem:[%s5902_s0 + %s4379_s6]]   ;;  %s4382_s18 = smov 4  }
   0x3   :  { %s4469_s13 = sld [smem:[%s5902_s0 + %s4380_s10]]   ;;  %s4383_s22 = smov 5  }
   0x4   :  { %s4474_s17 = sld [smem:[%s5902_s0 + %s4381_s14]]   ;;  %s4384_s26 = smov 6  }
   0x5   :  { %s4479_s21 = sld [smem:[%s5902_s0 + %s4382_s18]]   ;;  %s4385_s30 = smov 7  }
   0x6   :  { %s4484_s25 = sld [smem:[%s5902_s0 + %s4383_s22]]   ;;  %s4386_s4 = smov 8  }
   0x7   :  { %s4489_s29 = sld [smem:[%s5902_s0 + %s4384_s26]]   ;;  %s4387_s10 = smov 9  }
   0x8   :  { %s4494_s3 = sld [smem:[%s5902_s0 + %s4385_s30]]   ;;  %s4388_s15 = smov 10  }
   0x9   :  { %s4499_s8 = sld [smem:[%s5902_s0 + %s4386_s4]]   ;;  %s4389_s20 = smov 11  }
   0xa   :  { %s4504_s14 = sld [smem:[%s5902_s0 + %s4387_s10]]   ;;  %s4390_s26 = smov 12  }
   0xb   :  { %s4509_s19 = sld [smem:[%s5902_s0 + %s4388_s15]]   ;;  %s4391_s1 = smov 13  }
   0xc   :  { %s4514_s24 = sld [smem:[%s5902_s0 + %s4389_s20]]   ;;  %s4392_s7 = smov 14  }
   0xd   :  { %5964 = sst [smem:[#allocation5_spill]] %s4489_s29  ;;  %s4393_s15 = smov 15  }
   0xe   :  { %5965 = sst [smem:[#allocation6_spill]] %s4494_s3  ;;  %s4394_s22 = smov 16  }
   0xf   :  { %5966 = sst [smem:[#allocation7_spill]] %s4499_s8  ;;  %s4395_s28 = smov 17  }
  0x10   :  { %5967 = sst [smem:[#allocation8_spill]] %s4504_s14 }
  0x11   :  { %5968 = sst [smem:[#allocation9_spill]] %s4509_s19 }
  0x12   :  { %s4519_s30 = sld [smem:[%s5902_s0 + %s4390_s26]]  }
  0x13   :  { %s4524_s6 = sld [smem:[%s5902_s0 + %s4391_s1]]  }
  0x14   :  { %s4529_s12 = sld [smem:[%s5902_s0 + %s4392_s7]]   ;;  %s4396_s7 = smov 18  }
  0x15   :  { %s4534_s20 = sld [smem:[%s5902_s0 + %s4393_s15]]   ;;  %s4397_s15 = smov 19  }
  0x16   :  { %s4539_s27 = sld [smem:[%s5902_s0 + %s4394_s22]]   ;;  %s4398_s22 = smov 20  }
  0x17   :  { %s4544_s4 = sld [smem:[%s5902_s0 + %s4395_s28]]   ;;  %s4399_s28 = smov 21  }
  0x18   :  { %s4549_s19 = sld [smem:[%s5902_s0 + %s4396_s7]]   ;;  %s4400_s7 = smov 22  }
  0x19   :  { %s4554_s29 = sld [smem:[%s5902_s0 + %s4397_s15]]   ;;  %s4401_s15 = smov 23  }
  0x1a   :  { %s4559_s8 = sld [smem:[%s5902_s0 + %s4398_s22]]   ;;  %s4402_s22 = smov 24  }
  0x1b   :  { %s4564_s14 = sld [smem:[%s5902_s0 + %s4399_s28]]   ;;  %s4403_s28 = smov 25  }
  0x1c   :  { %s4569_s3 = sld [smem:[%s5902_s0 + %s4400_s7]]   ;;  %s4404_s7 = smov 26  }
  0x1f   :  { %5969 = sst [smem:[#allocation10_spill]] %s4554_s29 }
  0x20   :  { %5970 = sst [smem:[#allocation11_spill]] %s4559_s8 }
  0x21   :  { %5971 = sst [smem:[#allocation12_spill]] %s4564_s14 }
  0x22   :  { %5972 = sst [smem:[#allocation13_spill]] %s4569_s3 }
  0x23   :  { %s4574_s29 = sld [smem:[%s5902_s0 + %s4401_s15]]   ;;  %s4405_s15 = smov 27  }
  0x24   :  { %s4579_s8 = sld [smem:[%s5902_s0 + %s4402_s22]]   ;;  %s4406_s22 = smov 28  }
  0x25   :  { %s4584_s14 = sld [smem:[%s5902_s0 + %s4403_s28]]   ;;  %s4407_s28 = smov 29  }
  0x26   :  { %s4589_s3 = sld [smem:[%s5902_s0 + %s4404_s7]]   ;;  %s4408_s7 = smov 30  }
  0x29   :  { %5973 = sst [smem:[#allocation14_spill]] %s4574_s29 }
  0x2a   :  { %5974 = sst [smem:[#allocation15_spill]] %s4579_s8 }
  0x2b   :  { %5975 = sst [smem:[#allocation16_spill]] %s4584_s14 }
  0x2c   :  { %5976 = sst [smem:[#allocation17_spill]] %s4589_s3 }
  0x2d   :  { %s4594_s29 = sld [smem:[%s5902_s0 + %s4405_s15]]   ;;  %s4409_s15 = smov 31  }
  0x2e   :  { %s4599_s8 = sld [smem:[%s5902_s0 + %s4406_s22]]   ;;  %s4410_s22 = smov 32  }
  0x2f   :  { %s4604_s14 = sld [smem:[%s5902_s0 + %s4407_s28]]   ;;  %s4411_s28 = smov 33  }
  0x30   :  { %s4609_s3 = sld [smem:[%s5902_s0 + %s4408_s7]]   ;;  %s4412_s7 = smov 34  }
  0x33   :  { %5977 = sst [smem:[#allocation18_spill]] %s4594_s29 }
  0x34   :  { %5978 = sst [smem:[#allocation19_spill]] %s4599_s8 }
  0x35   :  { %5979 = sst [smem:[#allocation20_spill]] %s4604_s14 }
  0x36   :  { %5980 = sst [smem:[#allocation21_spill]] %s4609_s3 }
  0x37   :  { %s4614_s29 = sld [smem:[%s5902_s0 + %s4409_s15]]   ;;  %s4413_s15 = smov 35  }
  0x38   :  { %s4619_s8 = sld [smem:[%s5902_s0 + %s4410_s22]]   ;;  %s4414_s22 = smov 36  }
  0x39   :  { %s4624_s14 = sld [smem:[%s5902_s0 + %s4411_s28]]   ;;  %s4415_s28 = smov 37  }
  0x3a   :  { %s4629_s3 = sld [smem:[%s5902_s0 + %s4412_s7]]  }
  0x3d   :  { %5981 = sst [smem:[#allocation22_spill]] %s4614_s29 }
  0x3e   :  { %5982 = sst [smem:[#allocation23_spill]] %s4619_s8 }
  0x3f   :  { %5983 = sst [smem:[#allocation24_spill]] %s4624_s14 }
  0x40   :  { %s4634_s29 = sld [smem:[%s5902_s0 + %s4413_s15]]  }
  0x41   :  { %s4639_s8 = sld [smem:[%s5902_s0 + %s4414_s22]]  }
  0x42   :  { %s4644_s14 = sld [smem:[%s5902_s0 + %s4415_s28]]  }
  0x43   :  { %v3652_v0 = vld [vmem:[%s4514_s24 + $0x18] sm:$0xf]  ;;  %v3935_v1 = vld [vmem:[%s4514_s24 + $0x18] sm:$0x70]  ;;  %vm198_vm0 = vcmask 1046528   ;;  %vm279_vm1 = vcmask 1041408  }
  0x44   :  { %v3653_v2 = vor.u32 %v3935_v1, %v3652_v0  ;;  %v256_v3 = vld [vmem:[%s4534_s20 + $0x8] sm:$0x7]  ;;  %vm280_vm2 = vcmask 1042432   ;;  %v4416_v5 = vmov 65535   ;;  %v218_v7 = vld [vmem:[%s4524_s6] sm:$0xf] }
  0x45   :  { %v268_v4 = vunpack.c.l.b16 %v256_v3  ;;  %v281_v6 = vsel %vm279_vm1, 4294967295, %v4416_v5  ;;  %vm224_vm3 = vcmask 1043456   ;;  %v3934_v12 = vld [vmem:[%s4514_s24 + $0x10] sm:$0xff]  ;;  %v216_v13 = vld [vmem:[%s4464_s9] sm:$0xff]  ;;  %v217_v14 = vld [vmem:[%s4464_s9 + $0x8] sm:$0xff]  ;;  %vm220_vm4 = vcmask 64512  }
  0x46   :  { %v200_v8 = vsel %vm198_vm0, %v3653_v2, 0  ;;  %v282_v9 = vsel %vm280_vm2, %v281_v6, 0  ;;  %v226_v10 = vsel %vm224_vm3, %v218_v7, 0  ;;  %vm272_vm5 = vcmask 171008   ;;  %v3936_v17 = vld [vmem:[%s4534_s20] sm:$0xff]  ;;  %v3933_v18 = vld [vmem:[%s4514_s24 + $0x8] sm:$0xff] }
  0x47   :  { %206 = vmatpush.bf16.msra.mxu0 %v200_v8  ;;  %v270_v11 = vpack.c.b16 %v268_v4, %v268_v4  ;;  %235 = vmatpush.bf16.msra.mxu1 %v226_v10  ;;  %v219_v15 = vpack.c.bf16 %v217_v14, %v216_v13  ;;  %v250_v19 = vld [vmem:[%s4469_s13] sm:$0xff]  ;;  %v251_v20 = vld [vmem:[%s4469_s13 + $0x8] sm:$0xff]  ;;  %vm194_vm6 = vcmask 506880  }
  0x48   :  { %v3932_v21 = vld [vmem:[%s4514_s24] sm:$0xff]  ;;  %v157_v23 = vld [vmem:[%s4459_s5 + $0x8] sm:$0xff]  ;;  %v257_v24 = vpack.c.bf16 %v251_v20, %v250_v19 }
  0x49   :  { %v284_v16 = vand.u32 %v282_v9, %v270_v11  ;;  %v156_v22 = vld [vmem:[%s4459_s5] sm:$0xff] }
  0x4a   :  { %3655 = vmatmul.msk.bf16.vlgmr.msra.gmra.mxu1 %vm220_vm4, %v219_v15  ;;  %v166_v25 = vpack.c.bf16 %v157_v23, %v156_v22 }
  0x4b   :  { %292 = vmatpush.bf16.msra.mxu2 %v284_v16  ;;  %207 = vmatpush.bf16.msra.mxu0 %v3934_v12 }
  0x4f   :  { %293 = vmatpush.bf16.msra.mxu2 %v3936_v17  ;;  %208 = vmatpush.bf16.msra.mxu0 %v3933_v18 }
  0x52   :  { %3660 = vmatmul.msk.bf16.vlgmr.msra.gmra.mxu2 %vm272_vm5, %v257_v24 }
  0x53   :  { %209 = vmatpush.bf16.msra.mxu0 %v3932_v21 }
  0x54   :  { %80 = vsyncpa [#allocation3], 0  ;;  %v252_v26 = vld [vmem:[%s4469_s13 + $0x10] sm:$0xff]  ;;  %v253_v27 = vld [vmem:[%s4469_s13 + $0x18] sm:$0xff]  ;;  %vm370_vm7 = vcmask 261120   ;;  %vm404_vm8 = vcmask 130048  }
  0x55   :  { %v258_v28 = vpack.c.bf16 %v253_v27, %v252_v26  ;;  %v3938_v29 = vld [vmem:[%s4544_s4 + $0x8] sm:$0xff]  ;;  %v3937_v30 = vld [vmem:[%s4544_s4] sm:$0xff]  ;;  %v307_v56 = vld [vmem:[%s4474_s17 + $0x10] sm:$0xff]  ;;  %s5984_s0 = sld [smem:[#allocation10_spill]]  ;;  %s4418_s6 = smov 96   ;;  %vm767_vm1 = vcmask 31744  }
  0x56   :  { %3654 = vmatmul.msk.bf16.vlgmr.msra.gmra.mxu0 %vm194_vm6, %v166_v25  ;;  %383 = vmatpush.bf16.msra.mxu3 %v3938_v29  ;;  %v4112_v34 = vld [vmem:[%s4519_s30] ss:$0 sm:$0xff]  ;;  %v306_v51 = vld [vmem:[%s4474_s17 + $0x8] sm:$0xff]  ;;  %v308_v57 = vld [vmem:[%s4474_s17 + $0x18] sm:$0xff]  ;;  %s5985_s5 = sld [smem:[#allocation14_spill]]  ;;  %s4417_s30 = smov 84  }
  0x57   :  { %v4114_v36 = vld [vmem:[%s4539_s27] ss:$0 sm:$0xff]  ;;  %v310_v16 = vld [vmem:[%s4479_s21 + $0x8] sm:$0xff]  ;;  %v313_v19 = vld [vmem:[%s4484_s25 + $0x10] sm:$0xff]  ;;  %s5986_s9 = sld [smem:[#allocation11_spill]]  ;;  %s4420_s20 = smov 88  }
  0x58   :  { %v4113_v42 = vld [vmem:[%s4529_s12] ss:$0 sm:$0xff]  ;;  %v312_v18 = vld [vmem:[%s4484_s25 + $0x8] sm:$0xff]  ;;  %s5987_s13 = sld [smem:[#allocation15_spill]]  ;;  %s4419_s12 = smov 92  }
  0x59   :  { %v305_v49 = vld [vmem:[%s4474_s17] sm:$0xff]  ;;  %s5988_s24 = sld [smem:[#allocation12_spill]]  ;;  %s4421_s27 = smov 116  }
  0x5a   :  { %384 = vmatpush.bf16.msra.mxu3 %v3937_v30  ;;  %v4115_v0 = vld [vmem:[%s4549_s19] ss:$0 sm:$0xff]  ;;  %s4422_s4 = smov 80   ;;  %s4423_s7 = smov 124  }
  0x5b   :  { %v309_v15 = vld [vmem:[%s4479_s21] sm:$0xff]  ;;  %v3940_v20 = vld [vmem:[%s5984_s0 + $0x8] sm:$0xff]  ;;  %s5946_s10 = smov 76   ;;  %s4426_s11 = smov 120  }
  0x5c   :  { %v311_v17 = vld [vmem:[%s4484_s25] sm:$0xff]  ;;  %509 = vmatpush.bf16.msrb.mxu2 %v3940_v20  ;;  %v3944_v22 = vld [vmem:[%s5985_s5 + $0x8] sm:$0xff]  ;;  %s5989_s15 = sld [smem:[#allocation6_spill]]  ;;  %s5962_s16 = smov 68  }
  0x5d   :  { %v3939_v21 = vld [vmem:[%s5984_s0] sm:$0xff]  ;;  %s5944_s18 = smov 112   ;;  %s5920_s22 = smov 72  }
  0x5e   :  { %v3943_v23 = vld [vmem:[%s5985_s5] sm:$0xff]  ;;  %s5942_s23 = smov 100   ;;  %s5924_s26 = smov 108  }
  0x5f   :  { %s5926_s28 = smov 60   ;;  %s5940_s1 = smov 104  }
  0x60   :  { %510 = vmatpush.bf16.msrb.mxu2 %v3939_v21  ;;  %v3942_v21 = vld [vmem:[%s5988_s24 + $0x8] sm:$0xff]  ;;  %s5922_s2 = smov 64  }
  0x61   :  { %635 = vmatpush.bf16.msrb.mxu3 %v3942_v21 }
  0x62   :  { %3661 = vmatmul.msk.bf16.gmra.mxu2 %vm272_vm5, %v258_v28 }
  0xc7   :  { %v237_v31 = vpop.f32.mrf.mxu1 }
  0xcf   :  { %v239_v39 = vpop.f32.mrf.mxu1 }
  0xd3   :  { %v211_v32 = vpop.f32.mrf.mxu0 }
  0xd4   :  { %v212_v35 = vadd.f32 %v4112_v34, %v211_v32 }
  0xd5   :  { %v295_v33 = vpop.f32.mrf.mxu2 }
  0xd6   :  { %v242_v41 = vadd.f32 %v237_v31, %v212_v35  ;;  %v296_v43 = vadd.f32 %v4114_v36, %v295_v33 }
  0xd8   :  { %v4673_v48 = vadd.f32 %v4113_v42, %v242_v41 }
  0xdb   :  { %v213_v37 = vpop.f32.mrf.mxu0 }
  0xdc   :  { %v214_v38 = vadd.f32 %v4112_v34, %v213_v37  ;;  %v4116_v34 = vld [vmem:[%s5986_s9] ss:$0 sm:$0xff] }
  0xdd   :  { %v297_v40 = vpop.f32.mrf.mxu2 }
  0xde   :  { %v243_v44 = vadd.f32 %v239_v39, %v214_v38  ;;  %v298_v45 = vadd.f32 %v4114_v36, %v297_v40 }
  0xe0   :  { %v4671_v46 = vadd.f32 %v4113_v42, %v243_v44  ;;  %v352_v47 = vpack.c.bf16 %v298_v45, %v296_v43  ;;  %v4117_v45 = vld [vmem:[%s5987_s13] ss:$0 sm:$0xff] }
  0xe2   :  { %3670 = vmatmul.msk.bf16.vlgmr.msra.gmra.mxu3 %vm370_vm7, %v352_v47  ;;  %431 = vmatpush.msrb.mxu1 %v4671_v46 }
  0xe4   :  { %432 = vmatpush.msrb.mxu1 %v4673_v48 }
  0xe5   :  { %v300_v50 = vpop.f32.mrf.mxu2  ;;  %3672 = vmatmul.msk.f32.vlgmr.msrb.gmra.mxu1 %vm404_vm8, %v305_v49 }
  0xe6   :  { %v301_v53 = vadd.f32 %v4114_v36, %v300_v50  ;;  %726 = vmatpush.bf16.msra.mxu1 %v3944_v22 }
  0xea   :  { %727 = vmatpush.bf16.msra.mxu1 %v3943_v23 }
  0xed   :  { %v302_v52 = vpop.f32.mrf.mxu2  ;;  %3673 = vmatmul.msk.f32.gmra.mxu1 %vm404_vm8, %v306_v51 }
  0xee   :  { %v303_v54 = vadd.f32 %v4114_v36, %v302_v52 }
  0xf0   :  { %v353_v55 = vpack.c.bf16 %v303_v54, %v301_v53 }
  0xf2   :  { %3671 = vmatmul.msk.bf16.gmra.mxu3 %vm370_vm7, %v353_v55 }
  0xf5   :  { %3674 = vmatmul.msk.f32.gmra.mxu1 %vm404_vm8, %v307_v56 }
  0xfd   :  { %3675 = vmatmul.msk.f32.gmra.mxu1 %vm404_vm8, %v308_v57 }
 0x162   :  { %v434_v58 = vpop.f32.mrf.mxu1 }
 0x165   :  { %v4687_v59 = vpop.f32.mrf.mxu3 }
 0x166   :  { %v400_v6 = vadd.f32 %v4115_v0, %v4687_v59 }
 0x168   :  { %v435_v11 = vadd.f32 %v434_v58, %v400_v6 }
 0x16a   :  { %v437_v60 = vpop.f32.mrf.mxu1  ;;  %v446_v14 = vmax.f32 %v435_v11, 0.0 }
 0x16d   :  { %v4689_v61 = vpop.f32.mrf.mxu3 }
 0x16e   :  { %v401_v4 = vadd.f32 %v4115_v0, %v4689_v61 }
 0x170   :  { %v438_v9 = vadd.f32 %v437_v60, %v401_v4 }
 0x172   :  { %v440_v62 = vpop.f32.mrf.mxu1  ;;  %v447_v13 = vmax.f32 %v438_v9, 0.0 }
 0x175   :  { %v4691_v63 = vpop.f32.mrf.mxu3 }
 0x176   :  { %v402_v1 = vadd.f32 %v4115_v0, %v4691_v63 }
 0x178   :  { %v441_v7 = vadd.f32 %v440_v62, %v402_v1 }
 0x17a   :  { %v443_v3 = vpop.f32.mrf.mxu1  ;;  %v448_v12 = vmax.f32 %v441_v7, 0.0 }
 0x17d   :  { %v4695_v2 = vpop.f32.mrf.mxu3 }
 0x17e   :  { %v403_v5 = vadd.f32 %v4115_v0, %v4695_v2 }
 0x180   :  { %v444_v8 = vadd.f32 %v443_v3, %v403_v5 }
 0x182   :  { %v449_v10 = vmax.f32 %v444_v8, 0.0 }
 0x184   :  { %468 = vmatpush.msrb.mxu0 %v449_v10 }
 0x186   :  { %469 = vmatpush.msrb.mxu0 %v448_v12 }
 0x188   :  { %470 = vmatpush.msrb.mxu0 %v447_v13 }
 0x18a   :  { %471 = vmatpush.msrb.mxu0 %v446_v14 }
 0x18b   :  { %3676 = vmatmul.msk.f32.vlgmr.msrb.gmra.mxu0 %vm370_vm7, %v309_v15 }
 0x18c   :  { %680 = vmatpush.msra.mxu0 %v4671_v46 }
 0x18e   :  { %681 = vmatpush.msra.mxu0 %v4673_v48 }
 0x193   :  { %3677 = vmatmul.msk.f32.gmra.mxu0 %vm370_vm7, %v310_v16 }
 0x19b   :  { %3698 = vmatmul.msk.f32.vlgmr.msra.gmra.mxu0 %vm404_vm8, %v311_v17 }
 0x1a3   :  { %3699 = vmatmul.msk.f32.gmra.mxu0 %vm404_vm8, %v312_v18 }
 0x1ab   :  { %3700 = vmatmul.msk.f32.gmra.mxu0 %vm404_vm8, %v313_v19 }
 0x208   :  { %v473_v24 = vpop.f32.mrf.mxu0 }
 0x209   :  { %v474_v26 = vadd.f32 %v473_v24, %v4673_v48 }
 0x210   :  { %v476_v25 = vpop.f32.mrf.mxu0 }
 0x211   :  { %v477_v27 = vadd.f32 %v476_v25, %v4671_v46 }
 0x213   :  { %v483_v28 = vpack.c.bf16 %v477_v27, %v474_v26 }
 0x215   :  { %3686 = vmatmul.msk.bf16.vlgmr.msrb.gmra.mxu2 %vm370_vm7, %v483_v28  ;;  %v3941_v28 = vld [vmem:[%s5988_s24] sm:$0xff] }
 0x216   :  { %636 = vmatpush.bf16.msrb.mxu3 %v3941_v28 }
 0x218   :  { %v683_v29 = vpop.f32.mrf.mxu0 }
 0x220   :  { %v686_v30 = vpop.f32.mrf.mxu0 }
 0x221   :  { %v696_v31 = vpack.c.bf16 %v686_v30, %v683_v29 }
 0x223   :  { %3709 = vmatmul.msk.bf16.vlgmr.msra.gmra.mxu1 %vm370_vm7, %v696_v31 }
 0x228   :  { %v689_v32 = vpop.f32.mrf.mxu0 }
 0x229   :  { %v697_v33 = vpack.c.bf16 %v689_v32, %v689_v32 }
 0x233   :  { %3710 = vmatmul.msk.bf16.gmra.mxu1 %vm370_vm7, %v697_v33 }
 0x298   :  { %v512_v35 = vpop.f32.mrf.mxu2 }
 0x299   :  { %v4722_v36 = vadd.f32 %v4116_v34, %v512_v35 }
 0x29b   :  { %v4725_v37 = vmul.f32 0.70710677, %v4722_v36 }
 0x29d   :  { %v521_v38 = vmul.f32 %v4725_v37, %v4725_v37 }
 0x29f   :  { %v4729_v39 = vmin.f32 %v521_v38, 16.0 }
 0x2a0   :  { %v514_v40 = vpop.f32.mrf.mxu2  ;;  %v729_v41 = vpop.f32.mrf.mxu1 }
 0x2a1   :  { %v523_v42 = vmul.f32 2.1237322e-06, %v4729_v39  ;;  %v534_v43 = vmul.f32 3.8918573e-05, %v4729_v39  ;;  %v4733_v44 = vadd.f32 %v4116_v34, %v514_v40  ;;  %v4740_v52 = vadd.f32 %v4117_v45, %v729_v41 }
 0x2a3   :  { %v524_v47 = vadd.f32 0.00028619796, %v523_v42  ;;  %v535_v49 = vadd.f32 0.001143296, %v534_v43  ;;  %v4737_v50 = vmul.f32 0.70710677, %v4733_v44  ;;  %v744_v60 = vpack.c.bf16 %v4740_v52, %v4740_v52 }
 0x2a4   :  { %v518_v28 = vmul.f32 0.5, %v4733_v44 }
 0x2a5   :  { %v536_v51 = vmul.f32 %v535_v49, %v4729_v39  ;;  %v561_v53 = vmul.f32 %v4737_v50, %v4737_v50  ;;  %v525_v54 = vmul.f32 %v524_v47, %v4729_v39  ;;  %v758_v9 = vunpack.c.l.b16 %v744_v60 }
 0x2a7   :  { %v537_v55 = vadd.f32 0.014752088, %v536_v51  ;;  %v4745_v56 = vmin.f32 %v561_v53, 16.0  ;;  %v526_v3 = vadd.f32 0.0036580483, %v525_v54  ;;  %v738_v51 = vmul.f32 0.5, %v4740_v52 }
 0x2a8   :  { %v731_v57 = vpop.f32.mrf.mxu1 }
 0x2a9   :  { %v538_v58 = vmul.f32 %v537_v55, %v4729_v39  ;;  %v732_v62 = vadd.f32 %v4117_v45, %v731_v57  ;;  %v563_v0 = vmul.f32 2.1237322e-06, %v4745_v56  ;;  %v574_v1 = vmul.f32 3.8918573e-05, %v4745_v56 }
 0x2aa   :  { %v527_v13 = vmul.f32 %v526_v3, %v4729_v39 }
 0x2ab   :  { %v539_v4 = vadd.f32 0.112945676, %v538_v58  ;;  %v745_v5 = vpack.c.bf16 %v732_v62, %v732_v62  ;;  %v564_v6 = vadd.f32 0.00028619796, %v563_v0  ;;  %v575_v7 = vadd.f32 0.001143296, %v574_v1 }
 0x2ac   :  { %v528_v23 = vadd.f32 0.05243302, %v527_v13  ;;  %v739_v42 = vmul.f32 0.5, %v732_v62  ;;  %v741_v0 = vpack.c.bf16 %v738_v51, %v738_v51 }
 0x2ad   :  { %v540_v8 = vmul.f32 %v539_v4, %v4729_v39  ;;  %v759_v10 = vunpack.c.l.b16 %v745_v5  ;;  %v565_v11 = vmul.f32 %v564_v6, %v4745_v56  ;;  %v576_v12 = vmul.f32 %v575_v7, %v4745_v56 }
 0x2ae   :  { %v529_v30 = vmul.f32 %v528_v23, %v4729_v39  ;;  %v742_v54 = vpack.c.bf16 %v739_v42, %v739_v42 }
 0x2af   :  { %v541_v14 = vadd.f32 0.4994258, %v540_v8  ;;  %v4756_v15 = vpack.c.b16 %v759_v10, %v758_v9  ;;  %v566_v16 = vadd.f32 0.0036580483, %v565_v11  ;;  %v577_v17 = vadd.f32 0.014752088, %v576_v12 }
 0x2b0   :  { %v734_v18 = vpop.f32.mrf.mxu1  ;;  %v530_v41 = vadd.f32 0.18741608, %v529_v30  ;;  %v751_v5 = vunpack.c.l.b16 %v742_v54  ;;  %v750_v8 = vunpack.c.l.b16 %v741_v0 }
 0x2b1   :  { %v542_v19 = vmul.f32 %v541_v14, %v4729_v39  ;;  %v4759_v20 = vadd.f32 %v4117_v45, %v734_v18  ;;  %878 = vrot.lane.b32.xlu2 %v4756_v15, %s4417_s30  ;;  %v578_v22 = vmul.f32 %v577_v17, %v4745_v56  ;;  %763 = vrot.lane.b32.xlu1 %v4756_v15, %s4418_s6  ;;  %v4424_v18 = vmov 0  }
 0x2b2   :  { %v567_v26 = vmul.f32 %v566_v16, %v4745_v56  ;;  %v531_v53 = vmul.f32 %v530_v41, %v4729_v39  ;;  %v4793_v13 = vpack.c.b16 %v751_v5, %v750_v8  ;;  %4041 = vset.pattern.permute.xlu2 %v4424_v18  ;;  %4040 = vset.pattern.permute.xlu1 %v4424_v18 }
 0x2b3   :  { %v543_v24 = vadd.f32 1.0, %v542_v19  ;;  %v746_v25 = vpack.c.bf16 %v4759_v20, %v4759_v20  ;;  %v579_v27 = vadd.f32 0.112945676, %v578_v22  ;;  %4039 = vset.pattern.permute.xlu0 %v4424_v18 }
 0x2b4   :  { %v568_v32 = vadd.f32 0.05243302, %v567_v26  ;;  %v532_v1 = vadd.f32 1.1283791, %v531_v53 }
 0x2b5   :  { %4142 = vrcp.f32 %v543_v24  ;;  %v580_v29 = vmul.f32 %v579_v27, %v4745_v56  ;;  %v760_v31 = vunpack.c.l.b16 %v746_v25  ;;  %v555_v57 = vand.u32 2147483648, %v543_v24 }
 0x2b6   :  { %v569_v45 = vmul.f32 %v568_v32, %v4745_v56  ;;  %v553_v60 = vand.u32 2147483647, %v543_v24  ;;  %vm549_vm10 = vweird.f32 %v543_v24  ;;  %v533_v9 = vmul.f32 %v532_v1, %v4725_v37 }
 0x2b7   :  { %v581_v33 = vadd.f32 0.4994258, %v580_v29  ;;  %v4773_v35 = vpack.c.b16 %v760_v31, %v760_v31  ;;  %v556_v3 = vor.u32 1.1754944e-38, %v555_v57  ;;  %v517_v27 = vmul.f32 0.5, %v4722_v36 }
 0x2b8   :  { %v736_v34 = vpop.f32.mrf.mxu1  ;;  %v570_v58 = vadd.f32 0.18741608, %v569_v45  ;;  %vm554_vm12 = vcmp.eq.f32.partialorder %v553_v60, 8.507059e+37 }
 0x2b9   :  { %v582_v38 = vmul.f32 %v581_v33, %v4745_v56  ;;  %802 = vrot.lane.b32.xlu1 %v4756_v15, %s4419_s12  ;;  %842 = vrot.lane.b32.xlu2 %v4773_v35, %s4420_s20  ;;  %v317_v34 = vld [vmem:[%s5989_s15 + $0x8] sm:$0xff] }
 0x2ba   :  { %765 = vrot.lane.b32.xlu0 %v4773_v35, %s4418_s6  ;;  %v571_v4 = vmul.f32 %v570_v58, %v4745_v56 }
 0x2bb   :  { %v4143_v40 = vpop.eup %4142  ;;  %v583_v47 = vadd.f32 1.0, %v582_v38  ;;  %v316_v38 = vld [vmem:[%s5989_s15] sm:$0xff] }
 0x2bc   :  { %v545_v43 = vmul.f32 %v4143_v40, %v543_v24  ;;  %vm550_vm9 = vweird.f32 %v4143_v40  ;;  %v572_v11 = vadd.f32 1.1283791, %v571_v4 }
 0x2bd   :  { %4144 = vrcp.f32 %v583_v47  ;;  %vm551_vm11 = vmor %vm549_vm10, %vm550_vm9  ;;  %v595_v12 = vand.u32 2147483648, %v583_v47  ;;  %v593_v17 = vand.u32 2147483647, %v583_v47  ;;  %vm589_vm14 = vweird.f32 %v583_v47 }
 0x2be   :  { %v546_v49 = vsub.f32 1.0, %v545_v43  ;;  %v573_v21 = vmul.f32 %v572_v11, %v4737_v50  ;;  %v740_v50 = vmul.f32 0.5, %v4759_v20  ;;  %v318_v20 = vld [vmem:[%s5989_s15 + $0x10] sm:$0xff]  ;;  %s5936_s15 = smov 48   ;;  %vm1064_vm10 = vcmask 195584  }
 0x2bf   :  { %v596_v37 = vor.u32 1.1754944e-38, %v595_v12  ;;  %vm594_vm0 = vcmp.eq.f32.partialorder %v593_v17, 8.507059e+37 }
 0x2c0   :  { %v547_v55 = vmul.f32 %v4143_v40, %v546_v49  ;;  %v743_v33 = vpack.c.bf16 %v740_v50, %v740_v50 }
 0x2c1   :  { %840 = vrot.lane.b32.xlu1 %v4756_v15, %s4420_s20  ;;  %880 = vrot.lane.b32.xlu2 %v4773_v35, %s4417_s30 }
 0x2c2   :  { %v548_v62 = vadd.f32 %v4143_v40, %v547_v55  ;;  %804 = vrot.lane.b32.xlu0 %v4773_v35, %s4419_s12  ;;  %v752_v36 = vunpack.c.l.b16 %v743_v33 }
 0x2c3   :  { %v4145_v39 = vpop.eup %4144 }
 0x2c4   :  { %v552_v52 = vsel %vm551_vm11, %v4143_v40, %v548_v62  ;;  %v585_v6 = vmul.f32 %v4145_v39, %v583_v47  ;;  %vm590_vm13 = vweird.f32 %v4145_v39  ;;  %v4821_v44 = vpack.c.b16 %v752_v36, %v752_v36 }
 0x2c5   :  { %v557_v7 = vsel %vm554_vm12, %v556_v3, %v552_v52  ;;  %vm591_vm15 = vmor %vm589_vm14, %vm590_vm13 }
 0x2c6   :  { %v586_v10 = vsub.f32 1.0, %v585_v6  ;;  %v558_v14 = vmul.f32 %v557_v7, %v533_v9 }
 0x2c8   :  { %v587_v16 = vmul.f32 %v4145_v39, %v586_v10  ;;  %v3687_v19 = vclamps-f32 %v558_v14, 1.0 }
 0x2c9   :  { %874 = vrot.lane.b32.xlu1 %v4793_v13, %s4421_s27  ;;  %916 = vrot.lane.b32.xlu2 %v4756_v15, %s4422_s4 }
 0x2ca   :  { %v588_v56 = vadd.f32 %v4145_v39, %v587_v16  ;;  %798 = vrot.lane.b32.xlu0 %v4793_v13, %s4423_s7  ;;  %v601_v25 = vadd.f32 1.0, %v3687_v19 }
 0x2cc   :  { %v592_v22 = vsel %vm591_vm15, %v4145_v39, %v588_v56  ;;  %v603_v30 = vmul.f32 %v601_v25, %v517_v27  ;;  %vm1763_vm15 = vcmask 97280  }
 0x2cd   :  { %v597_v23 = vsel %vm594_vm0, %v596_v37, %v592_v22  ;;  %vm1770_vm0 = vcmask 162816  }
 0x2ce   :  { %v598_v24 = vmul.f32 %v597_v23, %v573_v21 }
 0x2d0   :  { %v3688_v26 = vclamps-f32 %v598_v24, 1.0 }
 0x2d1   :  { %956 = vrot.lane.b32.xlu1 %v4773_v35, %s5946_s10  ;;  %918 = vrot.lane.b32.xlu2 %v4773_v35, %s4422_s4 }
 0x2d2   :  { %v602_v29 = vadd.f32 1.0, %v3688_v26  ;;  %836 = vrot.lane.b32.xlu0 %v4793_v13, %s4426_s11 }
 0x2d4   :  { %v604_v31 = vmul.f32 %v602_v29, %v518_v28 }
 0x2d6   :  { %v609_v32 = vpack.c.bf16 %v604_v31, %v603_v30 }
 0x2d8   :  { %3697 = vmatmul.msk.bf16.vlgmr.msrb.gmra.mxu3 %vm370_vm7, %v609_v32 }
 0x2d9   :  { %1032 = vrot.lane.b32.xlu1 %v4773_v35, %s5962_s16  ;;  %912 = vrot.lane.b32.xlu2 %v4793_v13, %s5944_s18 }
 0x2da   :  { %954 = vrot.lane.b32.xlu0 %v4756_v15, %s5946_s10  ;;  %s4449_s10 = smov 32  }
 0x2e1   :  { %838 = vrot.lane.b32.xlu1 %v4821_v44, %s4426_s11  ;;  %994 = vrot.lane.b32.xlu2 %v4773_v35, %s5920_s22 }
 0x2e2   :  { %800 = vrot.lane.b32.xlu0 %v4821_v44, %s4423_s7 }
 0x2e9   :  { %992 = vrot.lane.b32.xlu1 %v4756_v15, %s5920_s22  ;;  %1030 = vrot.lane.b32.xlu2 %v4756_v15, %s5962_s16  ;;  %s5928_s22 = smov 56   ;;  %s6004_s16 = sld [smem:[#allocation21_spill]] }
 0x2ea   :  { %876 = vrot.lane.b32.xlu0 %v4821_v44, %s4421_s27 }
 0x2f1   :  { %1026 = vrot.lane.b32.xlu1 %v4793_v13, %s5942_s23  ;;  %332 = vperm.xlu2 %4041, %v318_v20  }
 0x2f2   :  { %950 = vrot.lane.b32.xlu0 %v4793_v13, %s5924_s26 }
 0x2f9   :  { %327 = vperm.xlu1 %4040, %v317_v34   ;;  %1403 = vrot.lane.b32.xlu2 %v4773_v35, %s5926_s28 }
 0x2fa   :  { %988 = vrot.lane.b32.xlu0 %v4793_v13, %s5940_s1 }
 0x301   :  { %1363 = vrot.lane.b32.xlu1 %v4773_v35, %s5922_s2  ;;  %914 = vrot.lane.b32.xlu2 %v4821_v44, %s5944_s18  ;;  %s5994_s18 = sld [smem:[#allocation16_spill]] }
 0x302   :  { %322 = vperm.xlu0 %4039, %v316_v38  }
 0x309   :  { %1361 = vrot.lane.b32.xlu1 %v4756_v15, %s5922_s2  ;;  %1443 = vrot.lane.b32.xlu2 %v4773_v35, %s5928_s22  ;;  %s5930_s2 = smov 44  }
 0x30a   :  { %952 = vrot.lane.b32.xlu0 %v4821_v44, %s5924_s26  ;;  %s5938_s26 = smov 52  }
 0x30b   :  { %v879_v40 = vpop.permute.xlu2 %878 }
 0x30c   :  { %v889_v51 = vsel %vm767_vm1, %v879_v40, 0 }
 0x311   :  { %990 = vrot.lane.b32.xlu1 %v4821_v44, %s5940_s1  ;;  %1028 = vrot.lane.b32.xlu2 %v4821_v44, %s5942_s23  ;;  %s5952_s1 = smov 20   ;;  %s5954_s23 = smov 24  }
 0x312   :  { %1401 = vrot.lane.b32.xlu0 %v4756_v15, %s5926_s28  ;;  %s5932_s28 = smov 40  }
 0x313   :  { %v843_v41 = vpop.permute.xlu2 %842 }
 0x314   :  { %v854_v42 = vsel %vm767_vm1, %v843_v41, 0 }
 0x315   :  { %862 = vmatpush.bf16.xpose.msrb.mxu0 %v854_v42 }
 0x319   :  { %1523 = vrot.lane.b32.xlu1 %v4773_v35, %s5936_s15  ;;  %1563 = vrot.lane.b32.xlu2 %v4773_v35, %s5930_s2 }
 0x31a   :  { %1483 = vrot.lane.b32.xlu0 %v4773_v35, %s5938_s26 }
 0x31b   :  { %v881_v43 = vpop.permute.xlu2 %880 }
 0x31c   :  { %v892_v45 = vsel %vm767_vm1, %v881_v43, 0 }
 0x31d   :  { %900 = vmatpush.bf16.xpose.msrb.mxu1 %v892_v45 }
 0x321   :  { %1561 = vrot.lane.b32.xlu1 %v4756_v15, %s5930_s2  ;;  %s5991_s2 = sld [smem:[#allocation7_spill]] }
 0x322   :  { %1441 = vrot.lane.b32.xlu0 %v4756_v15, %s5928_s22  ;;  %s5990_s22 = sld [smem:[#allocation8_spill]] }
 0x323   :  { %v764_v47 = vpop.permute.xlu1 %763  ;;  %v917_v49 = vpop.permute.xlu2 %916 }
 0x324   :  { %v775_v39 = vsel %vm767_vm1, %v764_v47, 0  ;;  %v927_v8 = vsel %vm767_vm1, %v917_v49, 0 }
 0x325   :  { %901 = vmatpush.bf16.xpose.msrb.mxu1 %v889_v51 }
 0x329   :  { %1603 = vrot.lane.b32.xlu1 %v4773_v35, %s5932_s28 }
 0x32a   :  { %1481 = vrot.lane.b32.xlu0 %v4756_v15, %s5938_s26  ;;  %s5948_s26 = smov 28  }
 0x32b   :  { %v803_v53 = vpop.permute.xlu1 %802  ;;  %v919_v54 = vpop.permute.xlu2 %918 }
 0x32c   :  { %v766_v55 = vpop.permute.xlu0 %765  ;;  %v930_v52 = vsel %vm767_vm1, %v919_v54, 0  ;;  %v813_v7 = vsel %vm767_vm1, %v803_v53, 0 }
 0x32d   :  { %v778_v57 = vsel %vm767_vm1, %v766_v55, 0 }
 0x32e   :  { %786 = vmatpush.bf16.xpose.msra.mxu2 %v778_v57 }
 0x332   :  { %1521 = vrot.lane.b32.xlu0 %v4756_v15, %s5936_s15  ;;  %s5950_s15 = smov 16  }
 0x333   :  { %v841_v58 = vpop.permute.xlu1 %840  ;;  %v913_v60 = vpop.permute.xlu2 %912 }
 0x334   :  { %v805_v62 = vpop.permute.xlu0 %804  ;;  %v851_v0 = vsel %vm767_vm1, %v841_v58, 0 }
 0x335   :  { %v816_v1 = vsel %vm767_vm1, %v805_v62, 0  ;;  %863 = vmatpush.bf16.xpose.msrb.mxu0 %v851_v0  ;;  %v341_v62 = vld [vmem:[%s5990_s22] sm:$0x1]  ;;  %s5934_s22 = smov 36  }
 0x336   :  { %787 = vmatpush.bf16.xpose.msra.mxu2 %v775_v39  ;;  %824 = vmatpush.bf16.xpose.msra.mxu3 %v816_v1  ;;  %vm342_vm2 = vcmp.gt.f32.partialorder %v341_v62, 0.5  ;;  %v4118_v1 = vld [vmem:[%s5991_s2] ss:$0 sm:$0xff]  ;;  %s5958_s2 = smov 8  }
 0x337   :  { %v343_v0 = vsel %vm342_vm2, 1, %v4424_v18  ;;  %vm1777_vm2 = vcmask 228352  }
 0x338   :  { %v344_v39 = vperm.slane %v343_v0, 0 }
 0x33a   :  { %vm4924_vm6 = vcmp.eq.s32.totalorder %v344_v39, 1 }
 0x33b   :  { %v875_v3 = vpop.permute.xlu1 %874  ;;  %v995_v4 = vpop.permute.xlu2 %994 }
 0x33c   :  { %v799_v5 = vpop.permute.xlu0 %798  ;;  %3717 = vmatmul.msk.bf16.vlgmr.msrb.gmra.mxu1 %vm767_vm1, %v875_v3  ;;  %v1006_v6 = vsel %vm767_vm1, %v995_v4, 0  ;;  %v4440_v4 = vmov -1e+09  }
 0x33d   :  { %3711 = vmatmul.msk.bf16.vlgmr.msra.gmra.mxu2 %vm767_vm1, %v4793_v13  ;;  %1014 = vmatpush.bf16.xpose.msra.mxu0 %v1006_v6 }
 0x33e   :  { %938 = vmatpush.bf16.xpose.msrb.mxu2 %v930_v52  ;;  %825 = vmatpush.bf16.xpose.msra.mxu3 %v813_v7 }
 0x343   :  { %v957_v9 = vpop.permute.xlu1 %956  ;;  %v1031_v11 = vpop.permute.xlu2 %1030 }
 0x344   :  { %v968_v10 = vsel %vm767_vm1, %v957_v9, 0  ;;  %v837_v12 = vpop.permute.xlu0 %836  ;;  %v1041_v23 = vsel %vm767_vm1, %v1031_v11, 0 }
 0x345   :  { %3713 = vmatmul.msk.bf16.vlgmr.msra.gmra.mxu3 %vm767_vm1, %v799_v5  ;;  %3715 = vmatmul.msk.bf16.vlgmr.msrb.gmra.mxu0 %vm767_vm1, %v837_v12 }
 0x346   :  { %939 = vmatpush.bf16.xpose.msrb.mxu2 %v927_v8  ;;  %976 = vmatpush.bf16.xpose.msrb.mxu3 %v968_v10 }
 0x34b   :  { %v1033_v14 = vpop.permute.xlu1 %1032  ;;  %v4896_v16 = vpop.permute.xlu2 %332 }
 0x34c   :  { %v1044_v13 = vsel %vm767_vm1, %v1033_v14, 0  ;;  %v955_v17 = vpop.permute.xlu0 %954  ;;  %vm340_vm13 = vcmp.eq.f32.partialorder %v4896_v16, %v4118_v1 }
 0x34d   :  { %3712 = vmatmul.msk.bf16.gmra.mxu2 %vm767_vm1, %v4821_v44  ;;  %v965_v56 = vsel %vm767_vm1, %v955_v17, 0  ;;  %1052 = vmatpush.bf16.xpose.msra.mxu1 %v1044_v13  ;;  %vm348_vm14 = vmand %vm340_vm13, %vm4924_vm6 }
 0x34e   :  { %977 = vmatpush.bf16.xpose.msrb.mxu3 %v965_v56 }
 0x353   :  { %v839_v37 = vpop.permute.xlu1 %838  ;;  %v1404_v19 = vpop.permute.xlu2 %1403 }
 0x354   :  { %v801_v21 = vpop.permute.xlu0 %800  ;;  %v1413_v22 = vsel %vm224_vm3, %v1404_v19, 0 }
 0x355   :  { %3714 = vmatmul.msk.bf16.gmra.mxu3 %vm767_vm1, %v801_v21  ;;  %3716 = vmatmul.msk.bf16.gmra.mxu0 %vm767_vm1, %v839_v37 }
 0x356   :  { %1053 = vmatpush.bf16.xpose.msra.mxu1 %v1041_v23  ;;  %1421 = vmatpush.bf16.msra.mxu3 %v1413_v22 }
 0x35b   :  { %v993_v24 = vpop.permute.xlu1 %992  ;;  %v915_v25 = vpop.permute.xlu2 %914 }
 0x35c   :  { %v877_v26 = vpop.permute.xlu0 %876  ;;  %v1003_v27 = vsel %vm767_vm1, %v993_v24, 0  ;;  %v4930_v3 = vpop.f32.mrf.mxu3 }
 0x35d   :  { %3718 = vmatmul.msk.bf16.gmra.mxu1 %vm767_vm1, %v877_v26  ;;  %3719 = vmatmul.msk.bf16.vlgmr.msrb.gmra.mxu2 %vm767_vm1, %v913_v60 }
 0x35e   :  { %1015 = vmatpush.bf16.xpose.msra.mxu0 %v1003_v27 }
 0x363   :  { %v1027_v28 = vpop.permute.xlu1 %1026  ;;  %v1444_v29 = vpop.permute.xlu2 %1443 }
 0x364   :  { %v951_v50 = vpop.permute.xlu0 %950  ;;  %v1453_v30 = vsel %vm224_vm3, %v1444_v29, 0  ;;  %v4939_v8 = vpop.f32.mrf.mxu3 }
 0x365   :  { %3721 = vmatmul.msk.bf16.vlgmr.msrb.gmra.mxu3 %vm767_vm1, %v951_v50 }
 0x366   :  { %1461 = vmatpush.bf16.msrb.mxu0 %v1453_v30 }
 0x36b   :  { %v328_v31 = vpop.permute.xlu1 %327  ;;  %v1029_v20 = vpop.permute.xlu2 %1028 }
 0x36c   :  { %v989_v32 = vpop.permute.xlu0 %988  ;;  %vm339_vm11 = vcmp.eq.f32.partialorder %v328_v31, %v4118_v1 }
 0x36d   :  { %3720 = vmatmul.msk.bf16.gmra.mxu2 %vm767_vm1, %v915_v25  ;;  %3723 = vmatmul.msk.bf16.vlgmr.msra.gmra.mxu0 %vm767_vm1, %v989_v32  ;;  %vm347_vm12 = vmand %vm339_vm11, %vm4924_vm6  ;;  %v4978_v32 = vsel %vm348_vm14, 0.0, %v4440_v4 }
 0x36e   :  { %3725 = vmatmul.msk.bf16.vlgmr.msra.gmra.mxu1 %vm767_vm1, %v1027_v28  ;;  %v4954_v37 = vsel %vm347_vm12, 0.0, %v4440_v4 }
 0x373   :  { %v1364_v33 = vpop.permute.xlu1 %1363  ;;  %v1564_v40 = vpop.permute.xlu2 %1563 }
 0x374   :  { %v1373_v36 = vsel %vm224_vm3, %v1364_v33, 0  ;;  %v323_v44 = vpop.permute.xlu0 %322  ;;  %v1573_v43 = vsel %vm224_vm3, %v1564_v40, 0 }
 0x375   :  { %1381 = vmatpush.bf16.msra.mxu2 %v1373_v36  ;;  %vm338_vm5 = vcmp.eq.f32.partialorder %v323_v44, %v4118_v1 }
 0x376   :  { %vm346_vm9 = vmand %vm338_vm5, %vm4924_vm6  ;;  %vm1947_vm5 = vcmask 523264  }
 0x377   :  { %v4932_v5 = vsel %vm346_vm9, 0.0, %v4440_v4 }
 0x37b   :  { %v1362_v34 = vpop.permute.xlu1 %1361 }
 0x37c   :  { %v953_v38 = vpop.permute.xlu0 %952  ;;  %1382 = vmatpush.bf16.msra.mxu2 %v1362_v34 }
 0x37d   :  { %3722 = vmatmul.msk.bf16.gmra.mxu3 %vm767_vm1, %v953_v38 }
 0x37e   :  { %3726 = vmatmul.msk.bf16.gmra.mxu1 %vm767_vm1, %v1029_v20 }
 0x383   :  { %v991_v41 = vpop.permute.xlu1 %990 }
 0x384   :  { %v1402_v42 = vpop.permute.xlu0 %1401  ;;  %3724 = vmatmul.msk.bf16.gmra.mxu0 %vm767_vm1, %v991_v41 }
 0x385   :  { %1422 = vmatpush.bf16.msra.mxu3 %v1402_v42 }
 0x389   :  { %1581 = vmatpush.bf16.msrb.mxu3 %v1573_v43 }
 0x38b   :  { %v1524_v45 = vpop.permute.xlu1 %1523 }
 0x38c   :  { %v1533_v47 = vsel %vm224_vm3, %v1524_v45, 0  ;;  %v1484_v49 = vpop.permute.xlu0 %1483 }
 0x38d   :  { %v1493_v51 = vsel %vm224_vm3, %v1484_v49, 0  ;;  %1541 = vmatpush.bf16.msrb.mxu2 %v1533_v47 }
 0x38e   :  { %1501 = vmatpush.bf16.msrb.mxu1 %v1493_v51 }
 0x393   :  { %v1562_v53 = vpop.permute.xlu1 %1561 }
 0x394   :  { %v1442_v54 = vpop.permute.xlu0 %1441  ;;  %1582 = vmatpush.bf16.msrb.mxu3 %v1562_v53 }
 0x395   :  { %1462 = vmatpush.bf16.msrb.mxu0 %v1442_v54 }
 0x39b   :  { %v1604_v55 = vpop.permute.xlu1 %1603 }
 0x39c   :  { %v1613_v57 = vsel %vm224_vm3, %v1604_v55, 0  ;;  %v1482_v58 = vpop.permute.xlu0 %1481 }
 0x39d   :  { %1502 = vmatpush.bf16.msrb.mxu1 %v1482_v58  ;;  %1621 = vmatpush.bf16.msra.mxu0 %v1613_v57 }
 0x3a4   :  { %v1522_v60 = vpop.permute.xlu0 %1521 }
 0x3a5   :  { %1542 = vmatpush.bf16.msrb.mxu2 %v1522_v60 }
 0x3b9   :  { %v903_v6 = vpop.f32.mrf.mxu1 }
 0x3ba   :  { %v4935_v7 = vadd.f32 %v903_v6, %v4932_v5 }
 0x3bc   :  { %v1092_v18 = vsel %vm1064_vm10, %v4935_v7, -inf }
 0x3bd   :  { %1093 = vmax.xlane.f32.xlu0 %v1092_v18 }
 0x3c0   :  { %v789_v9 = vpop.f32.mrf.mxu2 }
 0x3c1   :  { %v4949_v17 = vadd.f32 %v789_v9, %v4932_v5  ;;  %v905_v25 = vpop.f32.mrf.mxu1 }
 0x3c2   :  { %v865_v10 = vpop.f32.mrf.mxu0  ;;  %v4966_v28 = vadd.f32 %v905_v25, %v4954_v37 }
 0x3c3   :  { %v4942_v11 = vadd.f32 %v865_v10, %v4932_v5  ;;  %v1065_v24 = vsel %vm1064_vm10, %v4949_v17, -inf }
 0x3c4   :  { %v1095_v31 = vsel %vm1064_vm10, %v4966_v28, -inf }
 0x3c5   :  { %v1083_v12 = vsel %vm1064_vm10, %v4942_v11, -inf }
 0x3c6   :  { %1084 = vmax.xlane.f32.xlu1 %v1083_v12 }
 0x3c8   :  { %v791_v14 = vpop.f32.mrf.mxu2  ;;  %v827_v13 = vpop.f32.mrf.mxu3 }
 0x3c9   :  { %v4952_v56 = vadd.f32 %v827_v13, %v4932_v5  ;;  %v4969_v29 = vadd.f32 %v791_v14, %v4954_v37 }
 0x3ca   :  { %v867_v19 = vpop.f32.mrf.mxu0 }
 0x3cb   :  { %v4957_v21 = vadd.f32 %v867_v19, %v4954_v37  ;;  %v1074_v22 = vsel %vm1064_vm10, %v4952_v56, -inf  ;;  %v1068_v30 = vsel %vm1064_vm10, %v4969_v29, -inf }
 0x3cc   :  { %1075 = vmax.xlane.f32.xlu0 %v1074_v22 }
 0x3cd   :  { %v1086_v23 = vsel %vm1064_vm10, %v4957_v21, -inf }
 0x3ce   :  { %1087 = vmax.xlane.f32.xlu2 %v1086_v23  ;;  %1066 = vmax.xlane.f32.xlu1 %v1065_v24 }
 0x3d0   :  { %v794_v26 = vpop.f32.mrf.mxu2  ;;  %v829_v27 = vpop.f32.mrf.mxu3 }
 0x3d1   :  { %v4981_v44 = vadd.f32 %v829_v27, %v4954_v37  ;;  %v5001_v54 = vadd.f32 %v794_v26, %v4978_v32 }
 0x3d2   :  { %v870_v50 = vpop.f32.mrf.mxu0 }
 0x3d3   :  { %v4984_v16 = vadd.f32 %v870_v50, %v4978_v32  ;;  %v1077_v42 = vsel %vm1064_vm10, %v4981_v44, -inf  ;;  %v1071_v1 = vsel %vm1064_vm10, %v5001_v54, -inf }
 0x3d5   :  { %v1089_v41 = vsel %vm1064_vm10, %v4984_v16, -inf }
 0x3d6   :  { %1069 = vmax.xlane.f32.xlu2 %v1068_v30  ;;  %1096 = vmax.xlane.f32.xlu1 %v1095_v31 }
 0x3d8   :  { %v796_v33 = vpop.f32.mrf.mxu2  ;;  %v832_v36 = vpop.f32.mrf.mxu3 }
 0x3d9   :  { %v4987_v20 = vadd.f32 %v832_v36, %v4978_v32 }
 0x3da   :  { %v872_v34 = vpop.f32.mrf.mxu0  ;;  %v908_v38 = vpop.f32.mrf.mxu1 }
 0x3db   :  { %v1080_v40 = vsel %vm1064_vm10, %v4987_v20, -inf  ;;  %v4996_v47 = vadd.f32 %v908_v38, %v4978_v32 }
 0x3dc   :  { %1081 = vmax.xlane.f32.xlu0 %v1080_v40 }
 0x3dd   :  { %v1098_v51 = vsel %vm1064_vm10, %v4996_v47, -inf }
 0x3de   :  { %1090 = vmax.xlane.f32.xlu1 %v1089_v41  ;;  %1078 = vmax.xlane.f32.xlu2 %v1077_v42 }
 0x3e0   :  { %v834_v43 = vpop.f32.mrf.mxu3  ;;  %v941_v45 = vpop.f32.mrf.mxu2 }
 0x3e1   :  { %v5019_v6 = vadd.f32 %v941_v45, %v4932_v5 }
 0x3e2   :  { %v910_v49 = vpop.f32.mrf.mxu1 }
 0x3e3   :  { %v1101_v13 = vsel %vm1064_vm10, %v5019_v6, -inf }
 0x3e6   :  { %1099 = vmax.xlane.f32.xlu2 %v1098_v51 }
 0x3e8   :  { %v943_v53 = vpop.f32.mrf.mxu2  ;;  %v979_v62 = vpop.f32.mrf.mxu3 }
 0x3e9   :  { %v5016_v4 = vadd.f32 %v979_v62, %v4932_v5  ;;  %v5034_v24 = vadd.f32 %v943_v53, %v4954_v37 }
 0x3ea   :  { %v1017_v55 = vpop.f32.mrf.mxu0 }
 0x3eb   :  { %v5004_v57 = vadd.f32 %v1017_v55, %v4932_v5  ;;  %v1055_v58 = vpop.f32.mrf.mxu1  ;;  %v1110_v10 = vsel %vm1064_vm10, %v5016_v4, -inf  ;;  %v1104_v50 = vsel %vm1064_vm10, %v5034_v24, -inf }
 0x3ec   :  { %v5007_v60 = vadd.f32 %v1055_v58, %v4932_v5 }
 0x3ed   :  { %v1119_v0 = vsel %vm1064_vm10, %v5004_v57, -inf }
 0x3ee   :  { %1120 = vmax.xlane.f32.xlu1 %v1119_v0  ;;  %1072 = vmax.xlane.f32.xlu2 %v1071_v1  ;;  %v1128_v39 = vsel %vm1064_vm10, %v5007_v60, -inf }
 0x3ef   :  { %1129 = vmax.xlane.f32.xlu0 %v1128_v39 }
 0x3f0   :  { %v946_v52 = vpop.f32.mrf.mxu2  ;;  %v981_v19 = vpop.f32.mrf.mxu3 }
 0x3f1   :  { %v5037_v25 = vadd.f32 %v981_v19, %v4954_v37  ;;  %v5061_v51 = vadd.f32 %v946_v52, %v4978_v32 }
 0x3f2   :  { %v1019_v12 = vpop.f32.mrf.mxu0 }
 0x3f3   :  { %v1057_v18 = vpop.f32.mrf.mxu1  ;;  %v5031_v23 = vadd.f32 %v1019_v12, %v4954_v37  ;;  %v1113_v30 = vsel %vm1064_vm10, %v5037_v25, -inf  ;;  %v1107_v53 = vsel %vm1064_vm10, %v5061_v51, -inf }
 0x3f4   :  { %v5022_v9 = vadd.f32 %v1057_v18, %v4954_v37 }
 0x3f5   :  { %v1122_v27 = vsel %vm1064_vm10, %v5031_v23, -inf }
 0x3f6   :  { %v1131_v14 = vsel %vm1064_vm10, %v5022_v9, -inf  ;;  %1111 = vmax.xlane.f32.xlu2 %v1110_v10 }
 0x3f7   :  { %1132 = vmax.xlane.f32.xlu1 %v1131_v14  ;;  %1102 = vmax.xlane.f32.xlu0 %v1101_v13 }
 0x3f8   :  { %v948_v22 = vpop.f32.mrf.mxu2 }
 0x3fb   :  { %v1060_v26 = vpop.f32.mrf.mxu1 }
 0x3fc   :  { %v5056_v45 = vadd.f32 %v1060_v26, %v4978_v32 }
 0x3fe   :  { %1123 = vmax.xlane.f32.xlu2 %v1122_v27  ;;  %v1134_v49 = vsel %vm1064_vm10, %v5056_v45, -inf }
 0x3ff   :  { %1105 = vmax.xlane.f32.xlu1 %v1104_v50  ;;  %1114 = vmax.xlane.f32.xlu0 %v1113_v30 }
 0x400   :  { %v984_v31 = vpop.f32.mrf.mxu3 }
 0x401   :  { %v1022_v33 = vpop.f32.mrf.mxu0  ;;  %v5046_v36 = vadd.f32 %v984_v31, %v4978_v32 }
 0x402   :  { %v5049_v34 = vadd.f32 %v1022_v33, %v4978_v32 }
 0x403   :  { %v1062_v38 = vpop.f32.mrf.mxu1  ;;  %v1116_v41 = vsel %vm1064_vm10, %v5046_v36, -inf }
 0x404   :  { %v1125_v40 = vsel %vm1064_vm10, %v5049_v34, -inf }
 0x407   :  { %1117 = vmax.xlane.f32.xlu1 %v1116_v41  ;;  %1126 = vmax.xlane.f32.xlu0 %v1125_v40 }
 0x408   :  { %v986_v42 = vpop.f32.mrf.mxu3 }
 0x409   :  { %v1024_v43 = vpop.f32.mrf.mxu0 }
 0x40f   :  { %1135 = vmax.xlane.f32.xlu0 %v1134_v49 }
 0x417   :  { %1108 = vmax.xlane.f32.xlu0 %v1107_v53 }
 0x430   :  { %v1094_v55 = vpop.xlane.xlu0 %1093 }
 0x431   :  { %v1146_v0 = vsub.f32 %v4935_v7, %v1094_v55 }
 0x433   :  { %v1179_v39 = vmul.f32 1.442695, %v1146_v0 }
 0x439   :  { %v1085_v58 = vpop.xlane.xlu1 %1084 }
 0x43a   :  { %v1143_v62 = vsub.f32 %v4942_v11, %v1085_v58 }
 0x43c   :  { %v1173_v1 = vmul.f32 1.442695, %v1143_v62 }
 0x43e   :  { %4146 = vpow2.f32 %v1173_v1 }
 0x43f   :  { %v1076_v18 = vpop.xlane.xlu0 %1075  ;;  %4148 = vpow2.f32 %v1179_v39 }
 0x440   :  { %v1140_v10 = vsub.f32 %v4952_v56, %v1076_v18 }
 0x441   :  { %v1088_v12 = vpop.xlane.xlu2 %1087  ;;  %v1067_v14 = vpop.xlane.xlu1 %1066 }
 0x442   :  { %v1167_v52 = vmul.f32 1.442695, %v1140_v10  ;;  %v1144_v13 = vsub.f32 %v4957_v21, %v1088_v12  ;;  %v1137_v11 = vsub.f32 %v4949_v17, %v1067_v14 }
 0x444   :  { %v5069_v19 = vpop.eup %4146  ;;  %4150 = vpow2.f32 %v1167_v52  ;;  %v1175_v22 = vmul.f32 1.442695, %v1144_v13  ;;  %v1161_v26 = vmul.f32 1.442695, %v1137_v11 }
 0x445   :  { %v1227_v7 = vsel %vm1064_vm10, %v5069_v19, 0.0  ;;  %v5074_v27 = vpop.eup %4148 }
 0x446   :  { %4152 = vpow2.f32 %v1175_v22  ;;  %1228 = vadd.xlane.f32.xlu2 %v1227_v7  ;;  %v1236_v40 = vsel %vm1064_vm10, %v5074_v27, 0.0 }
 0x447   :  { %4154 = vpow2.f32 %v1161_v26 }
 0x449   :  { %v1070_v56 = vpop.xlane.xlu2 %1069  ;;  %v1097_v50 = vpop.xlane.xlu1 %1096 }
 0x44a   :  { %v5076_v30 = vpop.eup %4150  ;;  %v1147_v21 = vsub.f32 %v4966_v28, %v1097_v50  ;;  %v1138_v38 = vsub.f32 %v4969_v29, %v1070_v56 }
 0x44b   :  { %v1218_v31 = vsel %vm1064_vm10, %v5076_v30, 0.0 }
 0x44c   :  { %v5081_v33 = vpop.eup %4152  ;;  %v1181_v17 = vmul.f32 1.442695, %v1147_v21  ;;  %1219 = vadd.xlane.f32.xlu1 %v1218_v31  ;;  %v1163_v28 = vmul.f32 1.442695, %v1138_v38 }
 0x44d   :  { %v1230_v41 = vsel %vm1064_vm10, %v5081_v33, 0.0  ;;  %v5088_v49 = vpop.eup %4154 }
 0x44e   :  { %1237 = vadd.xlane.f32.xlu2 %v1236_v40  ;;  %1231 = vadd.xlane.f32.xlu0 %v1230_v41  ;;  %4156 = vpow2.f32 %v1181_v17  ;;  %v1209_v39 = vsel %vm1064_vm10, %v5088_v49, 0.0 }
 0x44f   :  { %v1082_v53 = vpop.xlane.xlu0 %1081  ;;  %4158 = vpow2.f32 %v1163_v28 }
 0x450   :  { %v1142_v1 = vsub.f32 %v4987_v20, %v1082_v53 }
 0x451   :  { %v1091_v42 = vpop.xlane.xlu1 %1090  ;;  %v1079_v43 = vpop.xlane.xlu2 %1078 }
 0x452   :  { %v1145_v55 = vsub.f32 %v4984_v16, %v1091_v42  ;;  %v1141_v58 = vsub.f32 %v4981_v44, %v1079_v43  ;;  %v1171_v16 = vmul.f32 1.442695, %v1142_v1 }
 0x454   :  { %v1177_v29 = vmul.f32 1.442695, %v1145_v55  ;;  %v1169_v62 = vmul.f32 1.442695, %v1141_v58  ;;  %v5092_v0 = vpop.eup %4156 }
 0x455   :  { %v1239_v18 = vsel %vm1064_vm10, %v5092_v0, 0.0  ;;  %v5100_v12 = vpop.eup %4158 }
 0x456   :  { %4160 = vpow2.f32 %v1177_v29  ;;  %1210 = vadd.xlane.f32.xlu2 %v1209_v39  ;;  %1240 = vadd.xlane.f32.xlu0 %v1239_v18  ;;  %v1212_v11 = vsel %vm1064_vm10, %v5100_v12, 0.0 }
 0x457   :  { %4162 = vpow2.f32 %v1169_v62 }
 0x458   :  { %4164 = vpow2.f32 %v1171_v16 }
 0x459   :  { %v1100_v10 = vpop.xlane.xlu2 %1099 }
 0x45a   :  { %v1148_v44 = vsub.f32 %v4996_v47, %v1100_v10 }
 0x45c   :  { %v5102_v14 = vpop.eup %4160  ;;  %v1183_v52 = vmul.f32 1.442695, %v1148_v44 }
 0x45d   :  { %v5104_v20 = vpop.eup %4162  ;;  %v1233_v13 = vsel %vm1064_vm10, %v5102_v14, 0.0 }
 0x45e   :  { %4166 = vpow2.f32 %v1183_v52  ;;  %v1221_v22 = vsel %vm1064_vm10, %v5104_v20, 0.0  ;;  %1234 = vadd.xlane.f32.xlu1 %v1233_v13  ;;  %1213 = vadd.xlane.f32.xlu0 %v1212_v11  ;;  %v5113_v50 = vpop.eup %4164 }
 0x45f   :  { %1222 = vadd.xlane.f32.xlu2 %v1221_v22  ;;  %v1224_v28 = vsel %vm1064_vm10, %v5113_v50, 0.0 }
 0x461   :  { %v1121_v47 = vpop.xlane.xlu1 %1120  ;;  %v1073_v7 = vpop.xlane.xlu2 %1072 }
 0x462   :  { %v1139_v26 = vsub.f32 %v5001_v54, %v1073_v7  ;;  %v1130_v56 = vpop.xlane.xlu0 %1129  ;;  %v1155_v38 = vsub.f32 %v5004_v57, %v1121_v47 }
 0x463   :  { %v1158_v21 = vsub.f32 %v5007_v60, %v1130_v56 }
 0x464   :  { %v5116_v31 = vpop.eup %4166  ;;  %v1165_v17 = vmul.f32 1.442695, %v1139_v26  ;;  %v1197_v54 = vmul.f32 1.442695, %v1155_v38 }
 0x465   :  { %v1203_v40 = vmul.f32 1.442695, %v1158_v21  ;;  %v1242_v41 = vsel %vm1064_vm10, %v5116_v31, 0.0 }
 0x466   :  { %4168 = vpow2.f32 %v1165_v17  ;;  %1243 = vadd.xlane.f32.xlu0 %v1242_v41 }
 0x467   :  { %1225 = vadd.xlane.f32.xlu2 %v1224_v28  ;;  %4170 = vpow2.f32 %v1203_v40 }
 0x468   :  { %4172 = vpow2.f32 %v1197_v54 }
 0x469   :  { %v1112_v42 = vpop.xlane.xlu2 %1111 }
 0x46a   :  { %v1133_v43 = vpop.xlane.xlu1 %1132  ;;  %v1103_v60 = vpop.xlane.xlu0 %1102  ;;  %v1152_v13 = vsub.f32 %v5016_v4, %v1112_v42 }
 0x46b   :  { %v1159_v53 = vsub.f32 %v5022_v9, %v1133_v43  ;;  %v1149_v58 = vsub.f32 %v5019_v6, %v1103_v60 }
 0x46c   :  { %v5124_v55 = vpop.eup %4168  ;;  %v1191_v47 = vmul.f32 1.442695, %v1152_v13 }
 0x46d   :  { %v1205_v57 = vmul.f32 1.442695, %v1159_v53  ;;  %v5127_v29 = vpop.eup %4170  ;;  %v1215_v62 = vsel %vm1064_vm10, %v5124_v55, 0.0  ;;  %v1185_v39 = vmul.f32 1.442695, %v1149_v58 }
 0x46e   :  { %1216 = vadd.xlane.f32.xlu1 %v1215_v62  ;;  %v1272_v1 = vsel %vm1064_vm10, %v5127_v29, 0.0  ;;  %v5134_v10 = vpop.eup %4172 }
 0x46f   :  { %4174 = vpow2.f32 %v1205_v57  ;;  %1273 = vadd.xlane.f32.xlu2 %v1272_v1  ;;  %v1263_v11 = vsel %vm1064_vm10, %v5134_v10, 0.0 }
 0x470   :  { %4176 = vpow2.f32 %v1185_v39 }
 0x471   :  { %v1124_v18 = vpop.xlane.xlu2 %1123 }
 0x472   :  { %v1106_v9 = vpop.xlane.xlu1 %1105  ;;  %v1156_v16 = vsub.f32 %v5031_v23, %v1124_v18  ;;  %v1115_v7 = vpop.xlane.xlu0 %1114 }
 0x473   :  { %v1150_v6 = vsub.f32 %v5034_v24, %v1106_v9  ;;  %v1153_v4 = vsub.f32 %v5037_v25, %v1115_v7 }
 0x474   :  { %v1199_v44 = vmul.f32 1.442695, %v1156_v16 }
 0x475   :  { %v5137_v52 = vpop.eup %4174  ;;  %v1187_v23 = vmul.f32 1.442695, %v1150_v6  ;;  %v1193_v17 = vmul.f32 1.442695, %v1153_v4 }
 0x476   :  { %4178 = vpow2.f32 %v1199_v44  ;;  %v1275_v22 = vsel %vm1064_vm10, %v5137_v52, 0.0  ;;  %1264 = vadd.xlane.f32.xlu1 %v1263_v11  ;;  %v5144_v26 = vpop.eup %4176 }
 0x477   :  { %1276 = vadd.xlane.f32.xlu0 %v1275_v22  ;;  %4180 = vpow2.f32 %v1187_v23  ;;  %v1245_v21 = vsel %vm1064_vm10, %v5144_v26, 0.0 }
 0x478   :  { %4182 = vpow2.f32 %v1191_v47 }
 0x479   :  { %4184 = vpow2.f32 %v1193_v17 }
 0x47a   :  { %v1118_v42 = vpop.xlane.xlu1 %1117  ;;  %v1127_v60 = vpop.xlane.xlu0 %1126 }
 0x47b   :  { %v1154_v43 = vsub.f32 %v5046_v36, %v1118_v42  ;;  %v1157_v1 = vsub.f32 %v5049_v34, %v1127_v60 }
 0x47c   :  { %v5146_v24 = vpop.eup %4178 }
 0x47d   :  { %v1266_v56 = vsel %vm1064_vm10, %v5146_v24, 0.0  ;;  %v5153_v38 = vpop.eup %4180  ;;  %v1195_v53 = vmul.f32 1.442695, %v1154_v43 }
 0x47e   :  { %1267 = vadd.xlane.f32.xlu2 %v1266_v56  ;;  %1246 = vadd.xlane.f32.xlu1 %v1245_v21  ;;  %v5155_v40 = vpop.eup %4182  ;;  %v1248_v41 = vsel %vm1064_vm10, %v5153_v38, 0.0 }
 0x47f   :  { %v1254_v25 = vsel %vm1064_vm10, %v5155_v40, 0.0  ;;  %v5161_v28 = vpop.eup %4184  ;;  %4186 = vpow2.f32 %v1195_v53 }
 0x480   :  { %v1257_v54 = vsel %vm1064_vm10, %v5161_v28, 0.0 }
 0x482   :  { %v1136_v57 = vpop.xlane.xlu0 %1135 }
 0x483   :  { %v1160_v44 = vsub.f32 %v5056_v45, %v1136_v57 }
 0x485   :  { %v5172_v58 = vpop.eup %4186  ;;  %v1207_v22 = vmul.f32 1.442695, %v1160_v44 }
 0x486   :  { %1249 = vadd.xlane.f32.xlu2 %v1248_v41  ;;  %1255 = vadd.xlane.f32.xlu1 %v1254_v25  ;;  %v1260_v62 = vsel %vm1064_vm10, %v5172_v58, 0.0 }
 0x48a   :  { %v1109_v39 = vpop.xlane.xlu0 %1108 }
 0x48b   :  { %1601 = vrot.lane.b32.xlu0 %v4756_v15, %s5932_s28  ;;  %v1151_v36 = vsub.f32 %v5061_v51, %v1109_v39  ;;  %s5956_s28 = smov 12  }
 0x48d   :  { %v1189_v9 = vmul.f32 1.442695, %v1151_v36 }
 0x48e   :  { %1258 = vadd.xlane.f32.xlu2 %v1257_v54 }
 0x49f   :  { %1641 = vrot.lane.b32.xlu1 %v4756_v15, %s5934_s22  ;;  %v1201_v15 = vmul.f32 1.442695, %v1157_v1 }
 0x4a6   :  { %1643 = vrot.lane.b32.xlu2 %v4773_v35, %s5934_s22  ;;  %s5960_s22 = smov 4  }
 0x4b5   :  { %1261 = vadd.xlane.f32.xlu0 %v1260_v62 }
 0x4b9   :  { %v1229_v18 = vpop.xlane.xlu2 %1228 }
 0x4ba   :  { %4188 = vrcp.f32 %v1229_v18 }
 0x4bb   :  { %4190 = vpow2.f32 %v1201_v15 }
 0x4bf   :  { %v1220_v23 = vpop.xlane.xlu1 %1219 }
 0x4c0   :  { %v4189_v6 = vpop.eup %4188 }
 0x4c1   :  { %v1238_v35 = vpop.xlane.xlu2 %1237  ;;  %v1232_v16 = vpop.xlane.xlu0 %1231  ;;  %v1311_v34 = vmul.f32 %v4189_v6, %v5069_v19 }
 0x4c2   :  { %4192 = vrcp.f32 %v1232_v16  ;;  %v5179_v13 = vpop.eup %4190 }
 0x4c3   :  { %4194 = vpow2.f32 %v1189_v9  ;;  %v1269_v51 = vsel %vm1064_vm10, %v5179_v13, 0.0  ;;  %v1335_v4 = vpack.c.bf16 %v1311_v34, %v1311_v34 }
 0x4c4   :  { %4196 = vrcp.f32 %v1238_v35 }
 0x4c5   :  { %v1436_v41 = vunpack.c.l.b16 %v1335_v4 }
 0x4c8   :  { %v4193_v11 = vpop.eup %4192 }
 0x4c9   :  { %v1211_v47 = vpop.xlane.xlu2 %1210  ;;  %v5184_v7 = vpop.eup %4194  ;;  %v1312_v56 = vmul.f32 %v4193_v11, %v5081_v33  ;;  %1270 = vadd.xlane.f32.xlu1 %v1269_v51 }
 0x4ca   :  { %v1241_v45 = vpop.xlane.xlu0 %1240  ;;  %v4197_v21 = vpop.eup %4196  ;;  %v1251_v19 = vsel %vm1064_vm10, %v5184_v7, 0.0 }
 0x4cb   :  { %4198 = vrcp.f32 %v1241_v45  ;;  %v1336_v17 = vpack.c.bf16 %v1312_v56, %v1312_v56  ;;  %v1314_v25 = vmul.f32 %v4197_v21, %v5074_v27 }
 0x4cc   :  { %4200 = vpow2.f32 %v1207_v22 }
 0x4cd   :  { %4202 = vrcp.f32 %v1220_v23  ;;  %v1437_v54 = vunpack.c.l.b16 %v1336_v17  ;;  %v1338_v53 = vpack.c.bf16 %v1314_v25, %v1314_v25 }
 0x4ce   :  { %4204 = vrcp.f32 %v1211_v47 }
 0x4cf   :  { %1252 = vadd.xlane.f32.xlu2 %v1251_v19  ;;  %v1439_v42 = vpack.c.b16 %v1437_v54, %v1436_v41  ;;  %v1476_v36 = vunpack.c.l.b16 %v1338_v53 }
 0x4d1   :  { %v4199_v43 = vpop.eup %4198  ;;  %v1235_v60 = vpop.xlane.xlu1 %1234  ;;  %3731 = vmatmul.msk.bf16.vlgmr.msrb.gmra.mxu0 %vm1064_vm10, %v1439_v42 }
 0x4d2   :  { %v5190_v33 = vpop.eup %4200  ;;  %v1315_v57 = vmul.f32 %v4199_v43, %v5092_v0  ;;  %v1223_v62 = vpop.xlane.xlu2 %1222  ;;  %4206 = vrcp.f32 %v1235_v60 }
 0x4d3   :  { %v1214_v1 = vpop.xlane.xlu0 %1213  ;;  %v4203_v39 = vpop.eup %4202  ;;  %4208 = vrcp.f32 %v1223_v62  ;;  %v1278_v35 = vsel %vm1064_vm10, %v5190_v33, 0.0 }
 0x4d4   :  { %v4205_v18 = vpop.eup %4204  ;;  %v1339_v27 = vpack.c.bf16 %v1315_v57, %v1315_v57  ;;  %4210 = vrcp.f32 %v1214_v1  ;;  %v1308_v15 = vmul.f32 %v4203_v39, %v5076_v30 }
 0x4d5   :  { %v1305_v16 = vmul.f32 %v4205_v18, %v5088_v49 }
 0x4d6   :  { %v1477_v9 = vunpack.c.l.b16 %v1339_v27  ;;  %v1332_v11 = vpack.c.bf16 %v1308_v15, %v1308_v15 }
 0x4d7   :  { %1279 = vadd.xlane.f32.xlu2 %v1278_v35  ;;  %v1329_v51 = vpack.c.bf16 %v1305_v16, %v1305_v16 }
 0x4d8   :  { %v4207_v0 = vpop.eup %4206  ;;  %v1479_v6 = vpack.c.b16 %v1477_v9, %v1476_v36  ;;  %v1396_v17 = vunpack.c.l.b16 %v1332_v11 }
 0x4d9   :  { %v4209_v44 = vpop.eup %4208  ;;  %v1313_v34 = vmul.f32 %v4207_v0, %v5102_v14  ;;  %v1356_v14 = vunpack.c.l.b16 %v1329_v51 }
 0x4da   :  { %v4211_v22 = vpop.eup %4210  ;;  %v1309_v23 = vmul.f32 %v4209_v44, %v5104_v20  ;;  %v1226_v47 = vpop.xlane.xlu2 %1225  ;;  %3733 = vmatmul.msk.bf16.vlgmr.msrb.gmra.mxu1 %vm1064_vm10, %v1479_v6 }
 0x4db   :  { %v1244_v30 = vpop.xlane.xlu0 %1243  ;;  %v1306_v4 = vmul.f32 %v4211_v22, %v5100_v12  ;;  %4212 = vrcp.f32 %v1226_v47  ;;  %v1337_v56 = vpack.c.bf16 %v1313_v34, %v1313_v34 }
 0x4dc   :  { %v1333_v49 = vpack.c.bf16 %v1309_v23, %v1309_v23  ;;  %4214 = vrcp.f32 %v1244_v30 }
 0x4dd   :  { %v1330_v45 = vpack.c.bf16 %v1306_v4, %v1306_v4  ;;  %v1438_v21 = vunpack.c.l.b16 %v1337_v56 }
 0x4de   :  { %v1397_v19 = vunpack.c.l.b16 %v1333_v49 }
 0x4df   :  { %v1357_v41 = vunpack.c.l.b16 %v1330_v45  ;;  %v1440_v25 = vpack.c.b16 %v1438_v21, %v1438_v21 }
 0x4e0   :  { %v1399_v54 = vpack.c.b16 %v1397_v19, %v1396_v17 }
 0x4e1   :  { %v4213_v20 = vpop.eup %4212  ;;  %v1359_v42 = vpack.c.b16 %v1357_v41, %v1356_v14  ;;  %v1217_v60 = vpop.xlane.xlu1 %1216  ;;  %3732 = vmatmul.msk.bf16.gmra.mxu0 %vm1064_vm10, %v1440_v25 }
 0x4e2   :  { %v4215_v43 = vpop.eup %4214  ;;  %3729 = vmatmul.msk.bf16.vlgmr.msra.gmra.mxu3 %vm1064_vm10, %v1399_v54  ;;  %4216 = vrcp.f32 %v1217_v60  ;;  %v1310_v53 = vmul.f32 %v4213_v20, %v5113_v50  ;;  %v1274_v18 = vpop.xlane.xlu2 %1273 }
 0x4e3   :  { %3727 = vmatmul.msk.bf16.vlgmr.msra.gmra.mxu2 %vm1064_vm10, %v1359_v42  ;;  %v1316_v12 = vmul.f32 %v4215_v43, %v5116_v31 }
 0x4e4   :  { %v1334_v1 = vpack.c.bf16 %v1310_v53, %v1310_v53 }
 0x4e5   :  { %v1340_v57 = vpack.c.bf16 %v1316_v12, %v1316_v12 }
 0x4e6   :  { %v1398_v9 = vunpack.c.l.b16 %v1334_v1 }
 0x4e7   :  { %v1478_v62 = vunpack.c.l.b16 %v1340_v57 }
 0x4e8   :  { %v4217_v39 = vpop.eup %4216  ;;  %v1400_v0 = vpack.c.b16 %v1398_v9, %v1398_v9 }
 0x4e9   :  { %v1480_v27 = vpack.c.b16 %v1478_v62, %v1478_v62  ;;  %v1265_v15 = vpop.xlane.xlu1 %1264  ;;  %v1307_v36 = vmul.f32 %v4217_v39, %v5124_v55 }
 0x4ea   :  { %4218 = vrcp.f32 %v1265_v15  ;;  %v1277_v55 = vpop.xlane.xlu0 %1276 }
 0x4eb   :  { %3734 = vmatmul.msk.bf16.gmra.mxu1 %vm1064_vm10, %v1480_v27  ;;  %v1331_v35 = vpack.c.bf16 %v1307_v36, %v1307_v36 }
 0x4ed   :  { %v1358_v16 = vunpack.c.l.b16 %v1331_v35 }
 0x4ef   :  { %v1360_v6 = vpack.c.b16 %v1358_v16, %v1358_v16 }
 0x4f0   :  { %v4219_v44 = vpop.eup %4218 }
 0x4f1   :  { %v1268_v31 = vpop.xlane.xlu2 %1267  ;;  %v1247_v50 = vpop.xlane.xlu1 %1246  ;;  %v1323_v34 = vmul.f32 %v4219_v44, %v5134_v10 }
 0x4f2   :  { %3730 = vmatmul.msk.bf16.gmra.mxu3 %vm1064_vm10, %v1400_v0  ;;  %4220 = vrcp.f32 %v1268_v31 }
 0x4f3   :  { %3728 = vmatmul.msk.bf16.gmra.mxu2 %vm1064_vm10, %v1360_v6  ;;  %4222 = vrcp.f32 %v1247_v50  ;;  %v1347_v11 = vpack.c.bf16 %v1323_v34, %v1323_v34 }
 0x4f5   :  { %v1596_v56 = vunpack.c.l.b16 %v1347_v11 }
 0x4f8   :  { %v4221_v22 = vpop.eup %4220 }
 0x4f9   :  { %v1324_v23 = vmul.f32 %v4221_v22, %v5146_v24  ;;  %v1250_v47 = vpop.xlane.xlu2 %1249  ;;  %v4223_v30 = vpop.eup %4222 }
 0x4fa   :  { %4224 = vrcp.f32 %v1250_v47  ;;  %v1256_v51 = vpop.xlane.xlu1 %1255  ;;  %v1317_v45 = vmul.f32 %v4223_v30, %v5144_v26 }
 0x4fb   :  { %v1348_v4 = vpack.c.bf16 %v1324_v23, %v1324_v23  ;;  %4226 = vrcp.f32 %v1256_v51 }
 0x4fc   :  { %4228 = vrcp.f32 %v1277_v55  ;;  %v1341_v19 = vpack.c.bf16 %v1317_v45, %v1317_v45 }
 0x4fd   :  { %v1597_v49 = vunpack.c.l.b16 %v1348_v4  ;;  %v1602_v21 = vpop.permute.xlu0 %1601  ;;  %4230 = vrcp.f32 %v1274_v18 }
 0x4fe   :  { %1622 = vmatpush.bf16.msra.mxu0 %v1602_v21  ;;  %v1516_v20 = vunpack.c.l.b16 %v1341_v19 }
 0x4ff   :  { %v1599_v17 = vpack.c.b16 %v1597_v49, %v1596_v56 }
 0x500   :  { %v4225_v10 = vpop.eup %4224 }
 0x501   :  { %v1318_v14 = vmul.f32 %v4225_v10, %v5153_v38  ;;  %v1259_v24 = vpop.xlane.xlu2 %1258  ;;  %3739 = vmatmul.msk.bf16.vlgmr.msra.gmra.mxu0 %vm1064_vm10, %v1599_v17  ;;  %v4227_v41 = vpop.eup %4226 }
 0x502   :  { %4232 = vrcp.f32 %v1259_v24  ;;  %v4229_v54 = vpop.eup %4228  ;;  %v1320_v26 = vmul.f32 %v4227_v41, %v5155_v40 }
 0x503   :  { %v1342_v25 = vpack.c.bf16 %v1318_v14, %v1318_v14  ;;  %v4231_v43 = vpop.eup %4230  ;;  %v1327_v53 = vmul.f32 %v4229_v54, %v5137_v52 }
 0x504   :  { %v1344_v57 = vpack.c.bf16 %v1320_v26, %v1320_v26  ;;  %v1326_v1 = vmul.f32 %v4231_v43, %v5127_v29 }
 0x505   :  { %v1517_v42 = vunpack.c.l.b16 %v1342_v25  ;;  %v1351_v27 = vpack.c.bf16 %v1327_v53, %v1327_v53 }
 0x506   :  { %v1556_v15 = vunpack.c.l.b16 %v1344_v57  ;;  %v1350_v36 = vpack.c.bf16 %v1326_v1, %v1326_v1 }
 0x507   :  { %v1519_v60 = vpack.c.b16 %v1517_v42, %v1516_v20  ;;  %v1637_v35 = vunpack.c.l.b16 %v1351_v27 }
 0x508   :  { %v4233_v12 = vpop.eup %4232  ;;  %v1636_v52 = vunpack.c.l.b16 %v1350_v36 }
 0x509   :  { %v1321_v62 = vmul.f32 %v4233_v12, %v5161_v28  ;;  %v1644_v38 = vpop.permute.xlu2 %1643  ;;  %3735 = vmatmul.msk.bf16.vlgmr.msrb.gmra.mxu2 %vm1064_vm10, %v1519_v60 }
 0x50a   :  { %v1653_v39 = vsel %vm224_vm3, %v1644_v38, 0  ;;  %v1639_v28 = vpack.c.b16 %v1637_v35, %v1636_v52 }
 0x50b   :  { %v1345_v18 = vpack.c.bf16 %v1321_v62, %v1321_v62  ;;  %1661 = vmatpush.bf16.msra.mxu1 %v1653_v39 }
 0x50d   :  { %v1557_v40 = vunpack.c.l.b16 %v1345_v18 }
 0x50f   :  { %v1559_v9 = vpack.c.b16 %v1557_v40, %v1556_v15 }
 0x511   :  { %3737 = vmatmul.msk.bf16.vlgmr.msrb.gmra.mxu3 %vm1064_vm10, %v1559_v9  ;;  %v1642_v16 = vpop.permute.xlu1 %1641 }
 0x512   :  { %1662 = vmatpush.bf16.msra.mxu1 %v1642_v16 }
 0x515   :  { %3741 = vmatmul.msk.bf16.vlgmr.msra.gmra.mxu1 %vm1064_vm10, %v1639_v28 }
 0x528   :  { %v1262_v0 = vpop.xlane.xlu0 %1261 }
 0x529   :  { %4234 = vrcp.f32 %v1262_v0 }
 0x52f   :  { %v4235_v29 = vpop.eup %4234 }
 0x530   :  { %v1322_v6 = vmul.f32 %v4235_v29, %v5172_v58 }
 0x532   :  { %v1346_v31 = vpack.c.bf16 %v1322_v6, %v1322_v6 }
 0x534   :  { %v1558_v44 = vunpack.c.l.b16 %v1346_v31  ;;  %v4122_v31 = vld [vmem:[%s4549_s19 + $0x1] ss:$0 sm:$0xff]  ;;  %s5995_s19 = sld [smem:[#allocation17_spill]] }
 0x536   :  { %v1560_v50 = vpack.c.b16 %v1558_v44, %v1558_v44 }
 0x538   :  { %3738 = vmatmul.msk.bf16.gmra.mxu3 %vm1064_vm10, %v1560_v50 }
 0x53c   :  { %v1271_v34 = vpop.xlane.xlu1 %1270 }
 0x53d   :  { %4236 = vrcp.f32 %v1271_v34 }
 0x542   :  { %v1253_v55 = vpop.xlane.xlu2 %1252 }
 0x543   :  { %4238 = vrcp.f32 %v1253_v55  ;;  %v4237_v22 = vpop.eup %4236 }
 0x544   :  { %v1325_v11 = vmul.f32 %v4237_v22, %v5179_v13 }
 0x546   :  { %v1349_v23 = vpack.c.bf16 %v1325_v11, %v1325_v11 }
 0x548   :  { %v1598_v30 = vunpack.c.l.b16 %v1349_v23 }
 0x549   :  { %v4239_v47 = vpop.eup %4238 }
 0x54a   :  { %v1280_v51 = vpop.xlane.xlu2 %1279  ;;  %v1319_v4 = vmul.f32 %v4239_v47, %v5184_v7  ;;  %v1600_v58 = vpack.c.b16 %v1598_v30, %v1598_v30  ;;  %v3946_v47 = vld [vmem:[%s5994_s18 + $0x8] sm:$0xff]  ;;  %v3945_v30 = vld [vmem:[%s5994_s18] sm:$0xff] }
 0x54b   :  { %4240 = vrcp.f32 %v1280_v51  ;;  %1815 = vmatpush.bf16.msra.mxu2 %v3946_v47 }
 0x54c   :  { %v1343_v56 = vpack.c.bf16 %v1319_v4, %v1319_v4  ;;  %3740 = vmatmul.msk.bf16.gmra.mxu0 %vm1064_vm10, %v1600_v58 }
 0x54e   :  { %v1518_v49 = vunpack.c.l.b16 %v1343_v56  ;;  %v1464_v45 = vpop.f32.mrf.mxu0 }
 0x54f   :  { %1816 = vmatpush.bf16.msra.mxu2 %v3945_v30 }
 0x550   :  { %v1520_v21 = vpack.c.b16 %v1518_v49, %v1518_v49 }
 0x551   :  { %v4241_v17 = vpop.eup %4240 }
 0x552   :  { %v1328_v10 = vmul.f32 %v4241_v17, %v5190_v33  ;;  %3736 = vmatmul.msk.bf16.gmra.mxu2 %vm1064_vm10, %v1520_v21 }
 0x554   :  { %v1352_v13 = vpack.c.bf16 %v1328_v10, %v1328_v10 }
 0x556   :  { %v1638_v19 = vunpack.c.l.b16 %v1352_v13  ;;  %v1466_v14 = vpop.f32.mrf.mxu0 }
 0x557   :  { %v1504_v24 = vpop.f32.mrf.mxu1  ;;  %v4042_v41 = vpack.i.bf16 %v1466_v14, %v1464_v45 }
 0x558   :  { %v1640_v25 = vpack.c.b16 %v1638_v19, %v1638_v19 }
 0x559   :  { %4043 = vrot.lane.b32.xlu1 %v4042_v41, %s5958_s2 }
 0x55a   :  { %3742 = vmatmul.msk.bf16.gmra.mxu1 %vm1064_vm10, %v1640_v25 }
 0x55e   :  { %v1469_v7 = vpop.f32.mrf.mxu0 }
 0x55f   :  { %v1506_v54 = vpop.f32.mrf.mxu1 }
 0x560   :  { %v4047_v20 = vpack.i.bf16 %v1506_v54, %v1504_v24 }
 0x562   :  { %4048 = vrot.lane.b32.xlu2 %v4047_v20, %s5956_s28 }
 0x565   :  { %v1424_v33 = vpop.f32.mrf.mxu3 }
 0x566   :  { %v5234_v42 = vpop.f32.mrf.mxu2  ;;  %v1471_v26 = vpop.f32.mrf.mxu0 }
 0x568   :  { %v1509_v43 = vpop.f32.mrf.mxu1 }
 0x56d   :  { %v1426_v60 = vpop.f32.mrf.mxu3 }
 0x56e   :  { %v1386_v12 = vpop.f32.mrf.mxu2  ;;  %v4052_v53 = vpack.i.bf16 %v1426_v60, %v1424_v33 }
 0x570   :  { %v1511_v57 = vpop.f32.mrf.mxu1  ;;  %4053 = vrot.lane.b32.xlu0 %v4052_v53, %s5960_s22 }
 0x575   :  { %v1429_v62 = vpop.f32.mrf.mxu3 }
 0x576   :  { %v5237_v38 = vpop.f32.mrf.mxu2 }
 0x57d   :  { %v1431_v1 = vpop.f32.mrf.mxu3 }
 0x57e   :  { %v1391_v39 = vpop.f32.mrf.mxu2  ;;  %v1624_v27 = vpop.f32.mrf.mxu0 }
 0x586   :  { %v1626_v35 = vpop.f32.mrf.mxu0 }
 0x587   :  { %v4062_v0 = vpack.i.bf16 %v1626_v35, %v1624_v27 }
 0x58c   :  { %v1544_v18 = vpop.f32.mrf.mxu2 }
 0x592   :  { %v1664_v15 = vpop.f32.mrf.mxu1 }
 0x594   :  { %v1546_v40 = vpop.f32.mrf.mxu2  ;;  %v1584_v36 = vpop.f32.mrf.mxu3 }
 0x595   :  { %v4057_v9 = vpack.i.bf16 %v1546_v40, %v1544_v18 }
 0x597   :  { %4058 = vrot.lane.b32.xlu0 %v4057_v9, %s5950_s15 }
 0x59a   :  { %v1666_v52 = vpop.f32.mrf.mxu1 }
 0x59b   :  { %v4067_v16 = vpack.i.bf16 %v1666_v52, %v1664_v15 }
 0x59c   :  { %v1586_v28 = vpop.f32.mrf.mxu3 }
 0x59d   :  { %v4072_v29 = vpack.i.bf16 %v1586_v28, %v1584_v36  ;;  %4068 = vrot.lane.b32.xlu2 %v4067_v16, %s5948_s26 }
 0x59f   :  { %4073 = vrot.lane.b32.xlu1 %v4072_v29, %s5952_s1  ;;  %4063 = vrot.lane.b32.xlu0 %v4062_v0, %s5954_s23 }
 0x5a5   :  { %1704 = vrot.lane.b32.xlu2 %v1509_v43, %s5956_s28  ;;  %s6001_s28 = sld [smem:[#allocation23_spill]] }
 0x5a7   :  { %1680 = vrot.lane.b32.xlu1 %v1429_v62, %s5960_s22  ;;  %1692 = vrot.lane.b32.xlu0 %v1469_v7, %s5958_s2  ;;  %s6002_s2 = sld [smem:[#allocation20_spill]] }
 0x5a8   :  { %s6003_s22 = sld [smem:[#allocation19_spill]] }
 0x5bb   :  { %v1589_v6 = vpop.f32.mrf.mxu3 }
 0x5bc   :  { %1728 = vrot.lane.b32.xlu0 %v1589_v6, %s5952_s1  ;;  %v4049_v56 = vpop.permute.xlu2 %4048  ;;  %s5999_s1 = sld [smem:[#allocation24_spill]] }
 0x5bd   :  { %v4051_v24 = vunpack.i.h.bf16 %v4049_v56  ;;  %v4050_v41 = vunpack.i.l.bf16 %v4049_v56 }
 0x5c3   :  { %v1591_v44 = vpop.f32.mrf.mxu3 }
 0x5c4   :  { %1983 = vrot.lane.b32.xlu0 %v4122_v31, %s4449_s10  ;;  %s5996_s10 = sld [smem:[#allocation5_spill]] }
 0x5c9   :  { %v1629_v50 = vpop.f32.mrf.mxu0 }
 0x5ca   :  { %1740 = vrot.lane.b32.xlu2 %v1629_v50, %s5954_s23  ;;  %s6000_s23 = sld [smem:[#allocation22_spill]] }
 0x5cb   :  { %v4044_v49 = vpop.permute.xlu1 %4043 }
 0x5cc   :  { %v4046_v10 = vunpack.i.h.bf16 %v4044_v49  ;;  %v4045_v13 = vunpack.i.l.bf16 %v4044_v49 }
 0x5d1   :  { %v1631_v34 = vpop.f32.mrf.mxu0 }
 0x5d5   :  { %v1549_v55 = vpop.f32.mrf.mxu2 }
 0x5d6   :  { %1716 = vrot.lane.b32.xlu1 %v1549_v55, %s5950_s15  ;;  %s5998_s15 = sld [smem:[#allocation13_spill]] }
 0x5d7   :  { %v1669_v22 = vpop.f32.mrf.mxu1 }
 0x5dd   :  { %v1551_v11 = vpop.f32.mrf.mxu2 }
 0x5de   :  { %1752 = vrot.lane.b32.xlu1 %v1669_v22, %s5948_s26  ;;  %s5997_s26 = sld [smem:[#allocation18_spill]] }
 0x5df   :  { %v1671_v23 = vpop.f32.mrf.mxu1 }
 0x5e2   :  { %v4054_v51 = vpop.permute.xlu0 %4053 }
 0x5e3   :  { %v4056_v4 = vunpack.i.h.bf16 %v4054_v51  ;;  %v4055_v58 = vunpack.i.l.bf16 %v4054_v51 }
 0x5e5   :  { %v1758_v21 = vsel %vm767_vm1, %v1386_v12, %v4056_v4  ;;  %v1757_v17 = vsel %vm767_vm1, %v5234_v42, %v4055_v58  ;;  %v4123_v4 = vld [vmem:[%s5995_s19] ss:$0 sm:$0xff] }
 0x5e6   :  { %v1761_v19 = vsel %vm220_vm4, %v1758_v21, %v4046_v10  ;;  %v1760_v14 = vsel %vm220_vm4, %v1757_v17, %v4045_v13  ;;  %v314_v21 = vld [vmem:[%s5996_s10] sm:$0xff]  ;;  %v315_v10 = vld [vmem:[%s5996_s10 + $0x8] sm:$0xff] }
 0x5e7   :  { %v1764_v20 = vsel %vm1763_vm15, %v1760_v14, %v4050_v41  ;;  %v1765_v33 = vsel %vm1763_vm15, %v1761_v19, %v4051_v24  ;;  %v3948_v13 = vld [vmem:[%s5997_s26 + $0x8] sm:$0xff]  ;;  %v3947_v19 = vld [vmem:[%s5997_s26] sm:$0xff] }
 0x5e8   :  { %1900 = vmatpush.bf16.msrb.mxu0 %v3948_v13  ;;  %v4119_v14 = vld [vmem:[%s5998_s15] ss:$0 sm:$0xff] }
 0x5e9   :  { %v639_v41 = vadd.f32 %v4119_v14, %v4930_v3 }
 0x5ec   :  { %1901 = vmatpush.bf16.msrb.mxu0 %v3947_v19 }
 0x5f7   :  { %v4069_v54 = vpop.permute.xlu2 %4068 }
 0x5f8   :  { %v4071_v1 = vunpack.i.h.bf16 %v4069_v54  ;;  %v4070_v39 = vunpack.i.l.bf16 %v4069_v54  ;;  %v4124_v54 = vld [vmem:[%s5999_s1] ss:$0 sm:$0xff] }
 0x609   :  { %v4059_v45 = vpop.permute.xlu0 %4058 }
 0x60a   :  { %v4061_v25 = vunpack.i.h.bf16 %v4059_v45  ;;  %v4060_v7 = vunpack.i.l.bf16 %v4059_v45 }
 0x60c   :  { %v1767_v57 = vsel %vm404_vm8, %v1764_v20, %v4060_v7  ;;  %v1768_v62 = vsel %vm404_vm8, %v1765_v33, %v4061_v25  ;;  %v641_v25 = vadd.f32 %v4119_v14, %v4939_v8  ;;  %v643_v20 = vadd.f32 %v639_v41, %v4673_v48  ;;  %v4120_v33 = vld [vmem:[%s6000_s23] ss:$0 sm:$0xff] }
 0x611   :  { %v4074_v26 = vpop.permute.xlu1 %4073  ;;  %v4064_v43 = vpop.permute.xlu0 %4063 }
 0x612   :  { %v4076_v42 = vunpack.i.h.bf16 %v4074_v26  ;;  %v4075_v60 = vunpack.i.l.bf16 %v4074_v26  ;;  %v4066_v12 = vunpack.i.h.bf16 %v4064_v43  ;;  %v4065_v53 = vunpack.i.l.bf16 %v4064_v43 }
 0x613   :  { %v644_v26 = vadd.f32 %v641_v25, %v4671_v46 }
 0x614   :  { %v1771_v18 = vsel %vm1770_vm0, %v1767_v57, %v4075_v60  ;;  %v1772_v27 = vsel %vm1770_vm0, %v1768_v62, %v4076_v42  ;;  %v4125_v42 = vld [vmem:[%s4629_s3] ss:$0 sm:$0xff] }
 0x615   :  { %v1774_v15 = vsel %vm1064_vm10, %v1771_v18, %v4065_v53  ;;  %v1775_v40 = vsel %vm1064_vm10, %v1772_v27, %v4066_v12  ;;  %v649_v12 = vmul.f32 %v4120_v33, %v643_v20  ;;  %v4121_v53 = vld [vmem:[%s6001_s28] ss:$0 sm:$0xff]  ;;  %v650_v57 = vmul.f32 %v4120_v33, %v644_v26 }
 0x616   :  { %v1778_v36 = vsel %vm1777_vm2, %v1774_v15, %v4070_v39  ;;  %v1779_v9 = vsel %vm1777_vm2, %v1775_v40, %v4071_v1  ;;  %v3952_v40 = vld [vmem:[%s6002_s2 + $0x18] sm:$0xff]  ;;  %v4346_v26 = vld [vmem:[%s4479_s21] sm:$0xff] }
 0x617   :  { %v1785_v35 = vpack.c.bf16 %v1779_v9, %v1778_v36  ;;  %v655_v1 = vadd.f32 %v4121_v53, %v649_v12  ;;  %v3951_v36 = vld [vmem:[%s6002_s2 + $0x10] sm:$0xff]  ;;  %v3950_v9 = vld [vmem:[%s6002_s2 + $0x8] sm:$0xff] }
 0x618   :  { %v4350_v12 = vld [vmem:[%s4484_s25 + $0x10] sm:$0xff] }
 0x619   :  { %3751 = vmatmul.msk.bf16.vlgmr.msra.gmra.mxu2 %vm370_vm7, %v1785_v35  ;;  %v1693_v52 = vpop.permute.xlu0 %1692  ;;  %v1681_v44 = vpop.permute.xlu1 %1680 }
 0x61a   :  { %v1759_v50 = vsel %vm767_vm1, %v5237_v38, %v1681_v44 }
 0x62e   :  { %v1729_v16 = vpop.permute.xlu0 %1728 }
 0x636   :  { %v1984_v28 = vpop.permute.xlu0 %1983 }
 0x637   :  { %v1989_v0 = vadd.f32 %v1984_v28, %v4695_v2  ;;  %v1988_v29 = vadd.f32 %v1984_v28, %v4691_v63  ;;  %v1987_v6 = vadd.f32 %v1984_v28, %v4689_v61  ;;  %v1986_v31 = vadd.f32 %v1984_v28, %v4687_v59  ;;  %v1705_v63 = vpop.permute.xlu2 %1704 }
 0x638   :  { %v1762_v2 = vsel %vm220_vm4, %v1759_v50, %v1693_v52  ;;  %v4126_v52 = vld [vmem:[%s6003_s22] ss:$0 sm:$0xff] }
 0x639   :  { %2000 = vrot.lane.b32.xlu2 %v1989_v0, %s4418_s6  ;;  %1998 = vrot.lane.b32.xlu1 %v1988_v29, %s4418_s6  ;;  %v1766_v61 = vsel %vm1763_vm15, %v1762_v2, %v1705_v63  ;;  %v4127_v50 = vld [vmem:[%s6004_s16] ss:$0 sm:$0xff] }
 0x63a   :  { %1996 = vrot.lane.b32.xlu0 %v1987_v6, %s4418_s6 }
 0x63f   :  { %v1741_v11 = vpop.permute.xlu2 %1740 }
 0x641   :  { %1994 = vrot.lane.b32.xlu2 %v1986_v31, %s4418_s6 }
 0x648   :  { %v1717_v34 = vpop.permute.xlu1 %1716 }
 0x649   :  { %v1769_v55 = vsel %vm404_vm8, %v1766_v61, %v1717_v34  ;;  %v4128_v61 = vld [vmem:[%s4634_s29] ss:$0 sm:$0xff] }
 0x64a   :  { %v1773_v22 = vsel %vm1770_vm0, %v1769_v55, %v1729_v16 }
 0x64b   :  { %v1776_v23 = vsel %vm1064_vm10, %v1773_v22, %v1741_v11 }
 0x650   :  { %v1753_v59 = vpop.permute.xlu1 %1752 }
 0x651   :  { %v1780_v47 = vsel %vm1777_vm2, %v1776_v23, %v1753_v59  ;;  %v4129_v59 = vld [vmem:[%s4639_s8] ss:$0 sm:$0xff] }
 0x652   :  { %v1786_v30 = vpack.c.bf16 %v1780_v47, %v1780_v47 }
 0x654   :  { %3752 = vmatmul.msk.bf16.gmra.mxu2 %vm370_vm7, %v1786_v30 }
 0x69c   :  { %v1818_v38 = vpop.f32.mrf.mxu2 }
 0x69d   :  { %v1819_v45 = vadd.f32 %v4123_v4, %v1818_v38  ;;  %v4342_v38 = vld [vmem:[%s4474_s17] sm:$0xff] }
 0x6a4   :  { %v1820_v51 = vpop.f32.mrf.mxu2 }
 0x6a5   :  { %v1821_v49 = vadd.f32 %v4123_v4, %v1820_v51  ;;  %v4343_v51 = vld [vmem:[%s4474_s17 + $0x8] sm:$0xff] }
 0x6ac   :  { %v1997_v14 = vpop.permute.xlu0 %1996 }
 0x6d7   :  { %v1823_v58 = vpop.f32.mrf.mxu2 }
 0x6d8   :  { %v1824_v56 = vadd.f32 %v4123_v4, %v1823_v58  ;;  %v4344_v4 = vld [vmem:[%s4474_s17 + $0x10] sm:$0xff]  ;;  %v4345_v58 = vld [vmem:[%s4474_s17 + $0x18] sm:$0xff]  ;;  %s6005_s17 = smov 68  }
 0x6da   :  { %1846 = vmatpush.msra.mxu3 %v1824_v56 }
 0x6dc   :  { %1847 = vmatpush.msra.mxu3 %v1821_v49 }
 0x6de   :  { %1848 = vmatpush.msra.mxu3 %v1819_v45 }
 0x6df   :  { %v1825_v17 = vpop.f32.mrf.mxu2  ;;  %3753 = vmatmul.msk.f32.vlgmr.msra.gmra.mxu3 %vm1064_vm10, %v314_v21  ;;  %v2001_v21 = vpop.permute.xlu2 %2000 }
 0x6e0   :  { %1955 = vmatpush.bf16.msrb.mxu3 %v3952_v40  ;;  %v1999_v17 = vpop.permute.xlu1 %1998 }
 0x6e4   :  { %1956 = vmatpush.bf16.msrb.mxu3 %v3951_v36 }
 0x6e7   :  { %3754 = vmatmul.msk.f32.gmra.mxu3 %vm1064_vm10, %v315_v10  ;;  %v1995_v25 = vpop.permute.xlu2 %1994 }
 0x6e8   :  { %1957 = vmatpush.bf16.msrb.mxu3 %v3950_v9 }
 0x762   :  { %v1850_v24 = vpop.f32.mrf.mxu3 }
 0x763   :  { %v1851_v7 = vadd.f32 %v1850_v24, %v4673_v48  ;;  %v656_v48 = vadd.f32 %v4121_v53, %v650_v57  ;;  %v3954_v53 = vld [vmem:[%s5984_s0 + $0x18] sm:$0xff]  ;;  %v3953_v57 = vld [vmem:[%s5984_s0 + $0x10] sm:$0xff]  ;;  %s6008_s0 = smov 112  }
 0x764   :  { %2094 = vmatpush.bf16.msrb.mxu2 %v3954_v53 }
 0x765   :  { %v1860_v43 = vmul.f32 %v4124_v54, %v1851_v7 }
 0x767   :  { %v1866_v8 = vadd.f32 %v4125_v42, %v1860_v43  ;;  %v4347_v43 = vld [vmem:[%s4479_s21 + $0x8] sm:$0xff]  ;;  %s6006_s21 = smov 76  }
 0x768   :  { %2095 = vmatpush.bf16.msrb.mxu2 %v3953_v57  ;;  %v3955_v57 = vld [vmem:[%s5988_s24 + $0x10] sm:$0xff] }
 0x769   :  { %v1868_v18 = vadd.f32 %v1866_v8, %v655_v1  ;;  %v3957_v8 = vld [vmem:[%s5985_s5 + $0x10] sm:$0xff] }
 0x76a   :  { %v1853_v60 = vpop.f32.mrf.mxu3 }
 0x76b   :  { %v1854_v3 = vadd.f32 %v1853_v60, %v4671_v46  ;;  %v3949_v46 = vld [vmem:[%s6002_s2] sm:$0xff]  ;;  %v4349_v60 = vld [vmem:[%s4484_s25 + $0x8] sm:$0xff] }
 0x76c   :  { %1958 = vmatpush.bf16.msrb.mxu3 %v3949_v46  ;;  %v4130_v46 = vld [vmem:[%s5986_s9 + $0x1] ss:$0 sm:$0xff]  ;;  %s6010_s9 = smov 104  }
 0x76d   :  { %v1861_v62 = vmul.f32 %v4124_v54, %v1854_v3  ;;  %v3958_v3 = vld [vmem:[%s5985_s5 + $0x18] sm:$0xff]  ;;  %s6009_s5 = smov 100  }
 0x76e   :  { %2308 = vmatpush.bf16.msra.mxu2 %v3958_v3 }
 0x76f   :  { %v1867_v39 = vadd.f32 %v4125_v42, %v1861_v62  ;;  %v4348_v42 = vld [vmem:[%s4484_s25] sm:$0xff]  ;;  %s6007_s25 = smov 72  }
 0x771   :  { %v1869_v27 = vadd.f32 %v1867_v39, %v656_v48 }
 0x772   :  { %2309 = vmatpush.bf16.msra.mxu2 %v3957_v8 }
 0x773   :  { %v1874_v15 = vpack.c.bf16 %v1869_v27, %v1868_v18 }
 0x775   :  { %3763 = vmatmul.msk.bf16.vlgmr.msrb.gmra.mxu0 %vm370_vm7, %v1874_v15 }
 0x7f2   :  { %v1903_v35 = vpop.f32.mrf.mxu0 }
 0x7f3   :  { %v1904_v16 = vadd.f32 %v4126_v52, %v1903_v35 }
 0x7f5   :  { %v1908_v29 = vmax.f32 %v1904_v16, 0.0 }
 0x7fa   :  { %v1905_v28 = vpop.f32.mrf.mxu0 }
 0x7fb   :  { %v1906_v0 = vadd.f32 %v4126_v52, %v1905_v28 }
 0x7fd   :  { %v1909_v6 = vmax.f32 %v1906_v0, 0.0 }
 0x7ff   :  { %v1918_v31 = vpack.c.bf16 %v1909_v6, %v1908_v29 }
 0x801   :  { %3780 = vmatmul.msk.bf16.vlgmr.msrb.gmra.mxu3 %vm1947_vm5, %v1918_v31 }
 0x884   :  { %v1960_v44 = vpop.f32.mrf.mxu3 }
 0x885   :  { %v1961_v2 = vadd.f32 %v4127_v50, %v1960_v44 }
 0x887   :  { %v1965_v34 = vadd.f32 %v1961_v2, %v1868_v18 }
 0x889   :  { %v1971_v11 = vmul.f32 %v4128_v61, %v1965_v34 }
 0x88b   :  { %v5316_v30 = vadd.f32 %v4129_v59, %v1971_v11 }
 0x88c   :  { %v1962_v63 = vpop.f32.mrf.mxu3 }
 0x88d   :  { %v1963_v55 = vadd.f32 %v4127_v50, %v1962_v63 }
 0x88f   :  { %v1966_v22 = vadd.f32 %v1963_v55, %v1869_v27 }
 0x891   :  { %v1972_v23 = vmul.f32 %v4128_v61, %v1966_v22 }
 0x893   :  { %v5314_v47 = vadd.f32 %v4129_v59, %v1972_v23 }
 0x895   :  { %2020 = vmatpush.msrb.mxu1 %v5314_v47 }
 0x897   :  { %2021 = vmatpush.msrb.mxu1 %v5316_v30 }
 0x898   :  { %3782 = vmatmul.msk.f32.vlgmr.msrb.gmra.mxu1 %vm404_vm8, %v4342_v38 }
 0x8a0   :  { %3783 = vmatmul.msk.f32.gmra.mxu1 %vm404_vm8, %v4343_v51 }
 0x8a8   :  { %3784 = vmatmul.msk.f32.gmra.mxu1 %vm404_vm8, %v4344_v4 }
 0x8b0   :  { %3785 = vmatmul.msk.f32.gmra.mxu1 %vm404_vm8, %v4345_v58 }
 0x915   :  { %v2023_v56 = vpop.f32.mrf.mxu1 }
 0x916   :  { %v2024_v7 = vadd.f32 %v2023_v56, %v1995_v25  ;;  %v4131_v56 = vld [vmem:[%s5987_s13 + $0x1] ss:$0 sm:$0xff]  ;;  %s6011_s13 = smov 108  }
 0x918   :  { %v2035_v33 = vmax.f32 %v2024_v7, 0.0 }
 0x91d   :  { %v2026_v49 = vpop.f32.mrf.mxu1 }
 0x91e   :  { %v2027_v24 = vadd.f32 %v2026_v49, %v1997_v14 }
 0x920   :  { %v2036_v20 = vmax.f32 %v2027_v24, 0.0 }
 0x925   :  { %v2029_v45 = vpop.f32.mrf.mxu1 }
 0x926   :  { %v2030_v13 = vadd.f32 %v2029_v45, %v1999_v17 }
 0x928   :  { %v2037_v54 = vmax.f32 %v2030_v13, 0.0 }
 0x92d   :  { %v2032_v10 = vpop.f32.mrf.mxu1 }
 0x92e   :  { %v2033_v19 = vadd.f32 %v2032_v10, %v2001_v21 }
 0x930   :  { %v2038_v41 = vmax.f32 %v2033_v19, 0.0 }
 0x932   :  { %2051 = vmatpush.msra.mxu0 %v2038_v41 }
 0x934   :  { %2052 = vmatpush.msra.mxu0 %v2037_v54 }
 0x936   :  { %2053 = vmatpush.msra.mxu0 %v2036_v20  ;;  %v3956_v20 = vld [vmem:[%s5988_s24 + $0x18] sm:$0xff]  ;;  %s6012_s24 = smov 52  }
 0x937   :  { %2222 = vmatpush.bf16.msra.mxu3 %v3956_v20 }
 0x938   :  { %2054 = vmatpush.msra.mxu0 %v2035_v33 }
 0x939   :  { %3786 = vmatmul.msk.f32.vlgmr.msra.gmra.mxu0 %vm370_vm7, %v4346_v26 }
 0x93a   :  { %2260 = vmatpush.msrb.mxu0 %v5314_v47 }
 0x93b   :  { %2223 = vmatpush.bf16.msra.mxu3 %v3955_v57 }
 0x93c   :  { %2261 = vmatpush.msrb.mxu0 %v5316_v30 }
 0x941   :  { %3787 = vmatmul.msk.f32.gmra.mxu0 %vm370_vm7, %v4347_v43 }
 0x949   :  { %3820 = vmatmul.msk.f32.vlgmr.msrb.gmra.mxu0 %vm404_vm8, %v4348_v42 }
 0x951   :  { %3821 = vmatmul.msk.f32.gmra.mxu0 %vm404_vm8, %v4349_v60 }
 0x959   :  { %3822 = vmatmul.msk.f32.gmra.mxu0 %vm404_vm8, %v4350_v12 }
 0x9b6   :  { %v2056_v62 = vpop.f32.mrf.mxu0 }
 0x9b7   :  { %v2057_v48 = vadd.f32 %v2056_v62, %v5316_v30 }
 0x9be   :  { %v2059_v1 = vpop.f32.mrf.mxu0 }
 0x9bf   :  { %v2060_v39 = vadd.f32 %v2059_v1, %v5314_v47 }
 0x9c1   :  { %v2067_v18 = vpack.c.bf16 %v2060_v39, %v2057_v48 }
 0x9c3   :  { %3801 = vmatmul.msk.bf16.vlgmr.msrb.gmra.mxu2 %vm370_vm7, %v2067_v18 }
 0x9c6   :  { %v2263_v27 = vpop.f32.mrf.mxu0 }
 0x9ce   :  { %v2266_v15 = vpop.f32.mrf.mxu0 }
 0x9cf   :  { %v2277_v40 = vpack.c.bf16 %v2266_v15, %v2263_v27 }
 0x9d3   :  { %3836 = vmatmul.msk.bf16.vlgmr.msra.gmra.mxu2 %vm370_vm7, %v2277_v40 }
 0x9d6   :  { %v2269_v36 = vpop.f32.mrf.mxu0 }
 0x9d7   :  { %v2278_v9 = vpack.c.bf16 %v2269_v36, %v2269_v36 }
 0x9e3   :  { %3837 = vmatmul.msk.bf16.gmra.mxu2 %vm370_vm7, %v2278_v9 }
 0xa46   :  { %v2097_v35 = vpop.f32.mrf.mxu2 }
 0xa47   :  { %v5350_v52 = vadd.f32 %v4130_v46, %v2097_v35 }
 0xa49   :  { %v5353_v16 = vmul.f32 0.70710677, %v5350_v52 }
 0xa4b   :  { %v2106_v28 = vmul.f32 %v5353_v16, %v5353_v16 }
 0xa4d   :  { %v5357_v0 = vmin.f32 %v2106_v28, 16.0 }
 0xa4e   :  { %v2099_v29 = vpop.f32.mrf.mxu2 }
 0xa4f   :  { %v2108_v6 = vmul.f32 2.1237322e-06, %v5357_v0  ;;  %v2119_v31 = vmul.f32 3.8918573e-05, %v5357_v0  ;;  %v5361_v44 = vadd.f32 %v4130_v46, %v2099_v29 }
 0xa51   :  { %v2109_v50 = vadd.f32 0.00028619796, %v2108_v6  ;;  %v2120_v2 = vadd.f32 0.001143296, %v2119_v31  ;;  %v5364_v63 = vmul.f32 0.70710677, %v5361_v44 }
 0xa53   :  { %v2121_v34 = vmul.f32 %v2120_v2, %v5357_v0  ;;  %v2146_v61 = vmul.f32 %v5364_v63, %v5364_v63  ;;  %v2110_v55 = vmul.f32 %v2109_v50, %v5357_v0 }
 0xa55   :  { %v2122_v22 = vadd.f32 0.014752088, %v2121_v34  ;;  %v5370_v11 = vmin.f32 %v2146_v61, 16.0  ;;  %v2111_v4 = vadd.f32 0.0036580483, %v2110_v55 }
 0xa56   :  { %v2311_v59 = vpop.f32.mrf.mxu2 }
 0xa57   :  { %v2123_v23 = vmul.f32 %v2122_v22, %v5357_v0  ;;  %v2148_v38 = vmul.f32 2.1237322e-06, %v5370_v11  ;;  %v2159_v51 = vmul.f32 3.8918573e-05, %v5370_v11  ;;  %v2112_v13 = vmul.f32 %v2111_v4, %v5357_v0 }
 0xa58   :  { %v2312_v14 = vadd.f32 %v4131_v56, %v2311_v59 }
 0xa59   :  { %v2124_v58 = vadd.f32 0.112945676, %v2123_v23  ;;  %v2149_v49 = vadd.f32 0.00028619796, %v2148_v38  ;;  %v2160_v45 = vadd.f32 0.001143296, %v2159_v51 }
 0xa5a   :  { %v2113_v26 = vadd.f32 0.05243302, %v2112_v13  ;;  %v2326_v42 = vpack.c.bf16 %v2312_v14, %v2312_v14 }
 0xa5b   :  { %v2125_v21 = vmul.f32 %v2124_v58, %v5357_v0  ;;  %v2150_v17 = vmul.f32 %v2149_v49, %v5370_v11  ;;  %v2161_v10 = vmul.f32 %v2160_v45, %v5370_v11  ;;  %v2320_v49 = vmul.f32 0.5, %v2312_v14 }
 0xa5c   :  { %v2114_v8 = vmul.f32 %v2113_v26, %v5357_v0  ;;  %v2340_v62 = vunpack.c.l.b16 %v2326_v42 }
 0xa5d   :  { %v2126_v19 = vadd.f32 0.4994258, %v2125_v21  ;;  %v2151_v24 = vadd.f32 0.0036580483, %v2150_v17  ;;  %v2162_v41 = vadd.f32 0.014752088, %v2161_v10 }
 0xa5e   :  { %v2313_v25 = vpop.f32.mrf.mxu2  ;;  %v2115_v9 = vadd.f32 0.18741608, %v2114_v8  ;;  %v2103_v8 = vmul.f32 0.5, %v5361_v44 }
 0xa5f   :  { %v2127_v7 = vmul.f32 %v2126_v19, %v5357_v0  ;;  %v2314_v54 = vadd.f32 %v4131_v56, %v2313_v25  ;;  %v2163_v33 = vmul.f32 %v2162_v41, %v5370_v11  ;;  %v2152_v12 = vmul.f32 %v2151_v24, %v5370_v11 }
 0xa60   :  { %v2116_v50 = vmul.f32 %v2115_v9, %v5357_v0  ;;  %v2323_v41 = vpack.c.bf16 %v2320_v49, %v2320_v49 }
 0xa61   :  { %v2128_v43 = vadd.f32 1.0, %v2127_v7  ;;  %v2327_v60 = vpack.c.bf16 %v2314_v54, %v2314_v54  ;;  %v2164_v53 = vadd.f32 0.112945676, %v2163_v33  ;;  %v2153_v48 = vadd.f32 0.05243302, %v2152_v12 }
 0xa62   :  { %v2117_v38 = vadd.f32 1.1283791, %v2116_v50  ;;  %v2321_v51 = vmul.f32 0.5, %v2314_v54  ;;  %v2332_v20 = vunpack.c.l.b16 %v2323_v41 }
 0xa63   :  { %4242 = vrcp.f32 %v2128_v43  ;;  %v2165_v3 = vmul.f32 %v2164_v53, %v5370_v11  ;;  %v2341_v1 = vunpack.c.l.b16 %v2327_v60  ;;  %v2154_v28 = vmul.f32 %v2153_v48, %v5370_v11 }
 0xa64   :  { %v2140_v61 = vand.u32 2147483648, %v2128_v43  ;;  %v2138_v59 = vand.u32 2147483647, %v2128_v43  ;;  %vm2134_vm9 = vweird.f32 %v2128_v43  ;;  %v2118_v17 = vmul.f32 %v2117_v38, %v5353_v16 }
 0xa65   :  { %v2166_v39 = vadd.f32 0.4994258, %v2165_v3  ;;  %v5387_v27 = vpack.c.b16 %v2341_v1, %v2340_v62  ;;  %v2155_v55 = vadd.f32 0.18741608, %v2154_v28  ;;  %v2324_v13 = vpack.c.bf16 %v2321_v51, %v2321_v51 }
 0xa66   :  { %v2316_v18 = vpop.f32.mrf.mxu2  ;;  %v2141_v58 = vor.u32 1.1754944e-38, %v2140_v61  ;;  %vm2139_vm12 = vcmp.eq.f32.partialorder %v2138_v59, 8.507059e+37  ;;  %v2102_v3 = vmul.f32 0.5, %v5350_v52 }
 0xa67   :  { %v5389_v15 = vadd.f32 %v4131_v56, %v2316_v18  ;;  %v2167_v40 = vmul.f32 %v2166_v39, %v5370_v11  ;;  %2345 = vrot.lane.b32.xlu2 %v5387_v27, %s4418_s6  ;;  %v2156_v56 = vmul.f32 %v2155_v55, %v5370_v11  ;;  %v2333_v14 = vunpack.c.l.b16 %v2324_v13 }
 0xa69   :  { %v4243_v36 = vpop.eup %4242  ;;  %v2328_v46 = vpack.c.bf16 %v5389_v15, %v5389_v15  ;;  %v2168_v29 = vadd.f32 1.0, %v2167_v40  ;;  %v2157_v19 = vadd.f32 1.1283791, %v2156_v56  ;;  %v5415_v12 = vpack.c.b16 %v2333_v14, %v2332_v20 }
 0xa6a   :  { %v2130_v35 = vmul.f32 %v4243_v36, %v2128_v43  ;;  %vm2135_vm6 = vweird.f32 %v4243_v36  ;;  %v2322_v52 = vmul.f32 0.5, %v5389_v15 }
 0xa6b   :  { %v2342_v6 = vunpack.c.l.b16 %v2328_v46  ;;  %4244 = vrcp.f32 %v2168_v29  ;;  %vm2136_vm11 = vmor %vm2134_vm9, %vm2135_vm6  ;;  %v2180_v24 = vand.u32 2147483648, %v2168_v29  ;;  %v2178_v54 = vand.u32 2147483647, %v2168_v29 }
 0xa6c   :  { %v2131_v31 = vsub.f32 1.0, %v2130_v35  ;;  %vm2174_vm14 = vweird.f32 %v2168_v29  ;;  %v2158_v26 = vmul.f32 %v2157_v19, %v5364_v63  ;;  %v2325_v44 = vpack.c.bf16 %v2322_v52, %v2322_v52 }
 0xa6d   :  { %v5398_v2 = vpack.c.b16 %v2342_v6, %v2342_v6  ;;  %v2181_v16 = vor.u32 1.1754944e-38, %v2180_v24  ;;  %vm2179_vm9 = vcmp.eq.f32.partialorder %v2178_v54, 8.507059e+37 }
 0xa6e   :  { %v2132_v34 = vmul.f32 %v4243_v36, %v2131_v31  ;;  %v2318_v22 = vpop.f32.mrf.mxu2  ;;  %v2334_v39 = vunpack.c.l.b16 %v2325_v44 }
 0xa6f   :  { %2461 = vrot.lane.b32.xlu0 %v5398_v2, %s4417_s30  ;;  %2347 = vrot.lane.b32.xlu1 %v5398_v2, %s4418_s6  ;;  %s6014_s6 = smov 48  }
 0xa70   :  { %v2133_v23 = vadd.f32 %v4243_v36, %v2132_v34  ;;  %2421 = vrot.lane.b32.xlu2 %v5387_v27, %s4420_s20  ;;  %v5439_v18 = vpack.c.b16 %v2334_v39, %v2334_v39 }
 0xa71   :  { %v4245_v0 = vpop.eup %4244 }
 0xa72   :  { %v2137_v4 = vsel %vm2136_vm11, %v4243_v36, %v2133_v23  ;;  %v2170_v45 = vmul.f32 %v4245_v0, %v2168_v29  ;;  %vm2175_vm13 = vweird.f32 %v4245_v0 }
 0xa73   :  { %v2142_v21 = vsel %vm2139_vm12, %v2141_v58, %v2137_v4  ;;  %vm2176_vm6 = vmor %vm2174_vm14, %vm2175_vm13 }
 0xa74   :  { %v2171_v10 = vsub.f32 1.0, %v2170_v45  ;;  %v2143_v25 = vmul.f32 %v2142_v21, %v2118_v17 }
 0xa76   :  { %v2172_v7 = vmul.f32 %v4245_v0, %v2171_v10  ;;  %v3802_v33 = vclamps-f32 %v2143_v25, 1.0 }
 0xa77   :  { %2383 = vrot.lane.b32.xlu0 %v5387_v27, %s4419_s12  ;;  %2459 = vrot.lane.b32.xlu1 %v5387_v27, %s4417_s30  ;;  %s6013_s30 = smov 64  }
 0xa78   :  { %v2173_v11 = vadd.f32 %v4245_v0, %v2172_v7  ;;  %2423 = vrot.lane.b32.xlu2 %v5398_v2, %s4420_s20  ;;  %v2186_v53 = vadd.f32 1.0, %v3802_v33  ;;  %s6016_s20 = smov 44  }
 0xa7a   :  { %v2177_v43 = vsel %vm2176_vm6, %v4245_v0, %v2173_v11  ;;  %v2188_v63 = vmul.f32 %v2186_v53, %v2102_v3 }
 0xa7b   :  { %v2182_v42 = vsel %vm2179_vm9, %v2181_v16, %v2177_v43 }
 0xa7c   :  { %v2183_v60 = vmul.f32 %v2182_v42, %v2158_v26 }
 0xa7e   :  { %v3803_v57 = vclamps-f32 %v2183_v60, 1.0 }
 0xa7f   :  { %2385 = vrot.lane.b32.xlu0 %v5398_v2, %s4419_s12  ;;  %2455 = vrot.lane.b32.xlu1 %v5415_v12, %s4421_s27  ;;  %s6015_s12 = smov 60  }
 0xa80   :  { %v2187_v62 = vadd.f32 1.0, %v3803_v57  ;;  %2497 = vrot.lane.b32.xlu2 %v5387_v27, %s4422_s4 }
 0xa82   :  { %v2189_v1 = vmul.f32 %v2187_v62, %v2103_v8 }
 0xa84   :  { %v2195_v48 = vpack.c.bf16 %v2189_v1, %v2188_v63 }
 0xa86   :  { %3817 = vmatmul.msk.bf16.vlgmr.msra.gmra.mxu3 %vm370_vm7, %v2195_v48 }
 0xa87   :  { %2417 = vrot.lane.b32.xlu0 %v5415_v12, %s4426_s11  ;;  %2379 = vrot.lane.b32.xlu1 %v5415_v12, %s4423_s7 }
 0xa88   :  { %2499 = vrot.lane.b32.xlu2 %v5398_v2, %s4422_s4  ;;  %s6018_s4 = smov 36  }
 0xa8f   :  { %2613 = vrot.lane.b32.xlu0 %v5398_v2, %s6005_s17  ;;  %2611 = vrot.lane.b32.xlu1 %v5387_v27, %s6005_s17  ;;  %s6021_s17 = smov 8  }
 0xa90   :  { %2537 = vrot.lane.b32.xlu2 %v5398_v2, %s6006_s21 }
 0xa97   :  { %2575 = vrot.lane.b32.xlu0 %v5398_v2, %s6007_s25  ;;  %2457 = vrot.lane.b32.xlu1 %v5439_v18, %s4421_s27  ;;  %s6017_s27 = smov 56  }
 0xa98   :  { %2493 = vrot.lane.b32.xlu2 %v5415_v12, %s6008_s0 }
 0xa9f   :  { %2381 = vrot.lane.b32.xlu0 %v5439_v18, %s4423_s7  ;;  %2419 = vrot.lane.b32.xlu1 %v5439_v18, %s4426_s11  ;;  %s6019_s7 = smov 40   ;;  %s6020_s11 = smov 4  }
 0xaa0   :  { %2573 = vrot.lane.b32.xlu2 %v5387_v27, %s6007_s25  ;;  %s6023_s25 = smov 24  }
 0xaa7   :  { %2535 = vrot.lane.b32.xlu0 %v5387_v27, %s6006_s21  ;;  %2607 = vrot.lane.b32.xlu1 %v5415_v12, %s6009_s5  ;;  %s6022_s21 = smov 12  }
 0xaa8   :  { %2495 = vrot.lane.b32.xlu2 %v5439_v18, %s6008_s0  ;;  %s6024_s0 = smov 20  }
 0xaaf   :  { %2569 = vrot.lane.b32.xlu0 %v5415_v12, %s6010_s9  ;;  %2531 = vrot.lane.b32.xlu1 %v5415_v12, %s6011_s13 }
 0xab0   :  { %3063 = vrot.lane.b32.xlu2 %v5398_v2, %s6012_s24 }
 0xab7   :  { %2941 = vrot.lane.b32.xlu0 %v5387_v27, %s6013_s30  ;;  %2609 = vrot.lane.b32.xlu1 %v5439_v18, %s6009_s5  ;;  %s6025_s5 = smov 16  }
 0xab8   :  { %3103 = vrot.lane.b32.xlu2 %v5398_v2, %s6014_s6 }
 0xabf   :  { %2533 = vrot.lane.b32.xlu0 %v5439_v18, %s6011_s13  ;;  %2943 = vrot.lane.b32.xlu1 %v5398_v2, %s6013_s30 }
 0xac0   :  { %2571 = vrot.lane.b32.xlu2 %v5439_v18, %s6010_s9  ;;  %s6026_s9 = smov 28  }
 0xac1   :  { %v2346_v15 = vpop.permute.xlu2 %2345 }
 0xac2   :  { %v2356_v55 = vsel %vm767_vm1, %v2346_v15, 0 }
 0xac7   :  { %3061 = vrot.lane.b32.xlu0 %v5387_v27, %s6012_s24  ;;  %2983 = vrot.lane.b32.xlu1 %v5398_v2, %s6015_s12 }
 0xac8   :  { %3143 = vrot.lane.b32.xlu2 %v5398_v2, %s6016_s20 }
 0xaca   :  { %v2422_v40 = vpop.permute.xlu2 %2421 }
 0xacb   :  { %v2432_v35 = vsel %vm767_vm1, %v2422_v40, 0 }
 0xacf   :  { %2981 = vrot.lane.b32.xlu0 %v5387_v27, %s6015_s12  ;;  %3023 = vrot.lane.b32.xlu1 %v5398_v2, %s6017_s27 }
 0xad2   :  { %v2424_v36 = vpop.permute.xlu2 %2423 }
 0xad3   :  { %v2435_v9 = vsel %vm767_vm1, %v2424_v36, 0 }
 0xad4   :  { %2443 = vmatpush.bf16.xpose.msra.mxu0 %v2435_v9 }
 0xad7   :  { %3021 = vrot.lane.b32.xlu0 %v5387_v27, %s6017_s27  ;;  %3223 = vrot.lane.b32.xlu1 %v5398_v2, %s6018_s4 }
 0xada   :  { %v2498_v46 = vpop.permute.xlu2 %2497 }
 0xadc   :  { %2444 = vmatpush.bf16.xpose.msra.mxu0 %v2432_v35 }
 0xadf   :  { %3101 = vrot.lane.b32.xlu0 %v5387_v27, %s6014_s6 }
 0xae1   :  { %v2462_v28 = vpop.permute.xlu0 %2461  ;;  %v2348_v29 = vpop.permute.xlu1 %2347 }
 0xae2   :  { %v2473_v6 = vsel %vm767_vm1, %v2462_v28, 0  ;;  %v2359_v31 = vsel %vm767_vm1, %v2348_v29, 0  ;;  %v2500_v50 = vpop.permute.xlu2 %2499 }
 0xae3   :  { %2367 = vmatpush.bf16.xpose.msrb.mxu3 %v2359_v31  ;;  %2481 = vmatpush.bf16.xpose.msrb.mxu2 %v2473_v6  ;;  %v2511_v59 = vsel %vm767_vm1, %v2500_v50, 0 }
 0xae7   :  { %3183 = vrot.lane.b32.xlu0 %v5398_v2, %s6019_s7  ;;  %v2508_v2 = vsel %vm767_vm1, %v2498_v46, 0 }
 0xae9   :  { %v2384_v34 = vpop.permute.xlu0 %2383  ;;  %v2460_v61 = vpop.permute.xlu1 %2459 }
 0xaea   :  { %v2470_v22 = vsel %vm767_vm1, %v2460_v61, 0  ;;  %v2538_v23 = vpop.permute.xlu2 %2537  ;;  %v2394_v56 = vsel %vm767_vm1, %v2384_v34, 0 }
 0xaeb   :  { %2368 = vmatpush.bf16.xpose.msrb.mxu3 %v2356_v55  ;;  %2482 = vmatpush.bf16.xpose.msrb.mxu2 %v2470_v22  ;;  %v2549_v45 = vsel %vm767_vm1, %v2538_v23, 0 }
 0xaf1   :  { %v2386_v38 = vpop.permute.xlu0 %2385  ;;  %v2456_v51 = vpop.permute.xlu1 %2455 }
 0xaf2   :  { %v2397_v0 = vsel %vm767_vm1, %v2386_v38, 0  ;;  %3838 = vmatmul.msk.bf16.vlgmr.msrb.gmra.mxu3 %vm767_vm1, %v5415_v12  ;;  %3844 = vmatmul.msk.bf16.vlgmr.msrb.gmra.mxu2 %vm767_vm1, %v2456_v51  ;;  %v2494_v4 = vpop.permute.xlu2 %2493 }
 0xaf3   :  { %2519 = vmatpush.bf16.xpose.msra.mxu3 %v2511_v59  ;;  %2405 = vmatpush.bf16.xpose.msra.mxu1 %v2397_v0 }
 0xaf9   :  { %v2418_v58 = vpop.permute.xlu0 %2417  ;;  %v2380_v49 = vpop.permute.xlu1 %2379 }
 0xafa   :  { %3842 = vmatmul.msk.bf16.vlgmr.msra.gmra.mxu0 %vm767_vm1, %v2418_v58  ;;  %v2574_v21 = vpop.permute.xlu2 %2573 }
 0xafb   :  { %2520 = vmatpush.bf16.xpose.msra.mxu3 %v2508_v2  ;;  %2406 = vmatpush.bf16.xpose.msra.mxu1 %v2394_v56  ;;  %v2584_v20 = vsel %vm767_vm1, %v2574_v21, 0 }
 0xb01   :  { %v2614_v17 = vpop.permute.xlu0 %2613  ;;  %v2612_v13 = vpop.permute.xlu1 %2611 }
 0xb02   :  { %v2625_v10 = vsel %vm767_vm1, %v2614_v17, 0  ;;  %3839 = vmatmul.msk.bf16.gmra.mxu3 %vm767_vm1, %v5439_v18  ;;  %3840 = vmatmul.msk.bf16.vlgmr.msra.gmra.mxu1 %vm767_vm1, %v2380_v49  ;;  %v2496_v19 = vpop.permute.xlu2 %2495  ;;  %v2622_v7 = vsel %vm767_vm1, %v2612_v13, 0 }
 0xb03   :  { %2557 = vmatpush.bf16.xpose.msrb.mxu1 %v2549_v45  ;;  %2633 = vmatpush.bf16.xpose.msra.mxu2 %v2625_v10 }
 0xb09   :  { %v2576_v24 = vpop.permute.xlu0 %2575  ;;  %v2458_v25 = vpop.permute.xlu1 %2457 }
 0xb0a   :  { %v2587_v41 = vsel %vm767_vm1, %v2576_v24, 0  ;;  %v3064_v54 = vpop.permute.xlu2 %3063  ;;  %3845 = vmatmul.msk.bf16.gmra.mxu2 %vm767_vm1, %v2458_v25  ;;  %v5537_v31 = vpop.f32.mrf.mxu3 }
 0xb0b   :  { %2595 = vmatpush.bf16.xpose.msrb.mxu0 %v2587_v41  ;;  %v3073_v11 = vsel %vm224_vm3, %v3064_v54, 0  ;;  %2634 = vmatpush.bf16.xpose.msra.mxu2 %v2622_v7 }
 0xb11   :  { %v2382_v14 = vpop.permute.xlu0 %2381  ;;  %v2420_v16 = vpop.permute.xlu1 %2419 }
 0xb12   :  { %3841 = vmatmul.msk.bf16.gmra.mxu1 %vm767_vm1, %v2382_v14  ;;  %3846 = vmatmul.msk.bf16.vlgmr.msra.gmra.mxu3 %vm767_vm1, %v2494_v4  ;;  %v3104_v12 = vpop.permute.xlu2 %3103  ;;  %v5539_v50 = vpop.f32.mrf.mxu3 }
 0xb13   :  { %3081 = vmatpush.bf16.msrb.mxu2 %v3073_v11  ;;  %3843 = vmatmul.msk.bf16.gmra.mxu0 %vm767_vm1, %v2420_v16  ;;  %v3113_v1 = vsel %vm224_vm3, %v3104_v12, 0 }
 0xb14   :  { %2596 = vmatpush.bf16.xpose.msrb.mxu0 %v2584_v20 }
 0xb19   :  { %v2536_v33 = vpop.permute.xlu0 %2535  ;;  %v2608_v43 = vpop.permute.xlu1 %2607 }
 0xb1a   :  { %v2546_v26 = vsel %vm767_vm1, %v2536_v33, 0  ;;  %3852 = vmatmul.msk.bf16.vlgmr.msra.gmra.mxu2 %vm767_vm1, %v2608_v43  ;;  %v2572_v8 = vpop.permute.xlu2 %2571 }
 0xb1b   :  { %2558 = vmatpush.bf16.xpose.msrb.mxu1 %v2546_v26 }
 0xb21   :  { %v2570_v42 = vpop.permute.xlu0 %2569  ;;  %v2532_v60 = vpop.permute.xlu1 %2531 }
 0xb22   :  { %3847 = vmatmul.msk.bf16.gmra.mxu3 %vm767_vm1, %v2496_v19  ;;  %3848 = vmatmul.msk.bf16.vlgmr.msrb.gmra.mxu1 %vm767_vm1, %v2532_v60  ;;  %v3144_v39 = vpop.permute.xlu2 %3143 }
 0xb23   :  { %3850 = vmatmul.msk.bf16.vlgmr.msrb.gmra.mxu0 %vm767_vm1, %v2570_v42  ;;  %v3153_v15 = vsel %vm224_vm3, %v3144_v39, 0 }
 0xb29   :  { %v2942_v53 = vpop.permute.xlu0 %2941  ;;  %v2610_v57 = vpop.permute.xlu1 %2609 }
 0xb2a   :  { %3853 = vmatmul.msk.bf16.gmra.mxu2 %vm767_vm1, %v2610_v57 }
 0xb31   :  { %v2534_v3 = vpop.permute.xlu0 %2533  ;;  %v2944_v62 = vpop.permute.xlu1 %2943 }
 0xb32   :  { %v2953_v63 = vsel %vm224_vm3, %v2944_v62, 0  ;;  %3849 = vmatmul.msk.bf16.gmra.mxu1 %vm767_vm1, %v2534_v3 }
 0xb33   :  { %3851 = vmatmul.msk.bf16.gmra.mxu0 %vm767_vm1, %v2572_v8  ;;  %2961 = vmatpush.bf16.msrb.mxu3 %v2953_v63 }
 0xb37   :  { %2962 = vmatpush.bf16.msrb.mxu3 %v2942_v53 }
 0xb39   :  { %v3062_v48 = vpop.permute.xlu0 %3061  ;;  %v2984_v52 = vpop.permute.xlu1 %2983 }
 0xb3a   :  { %3082 = vmatpush.bf16.msrb.mxu2 %v3062_v48  ;;  %v2993_v44 = vsel %vm224_vm3, %v2984_v52, 0 }
 0xb3b   :  { %3121 = vmatpush.bf16.msra.mxu3 %v3113_v1  ;;  %3001 = vmatpush.bf16.msra.mxu1 %v2993_v44 }
 0xb41   :  { %v2982_v18 = vpop.permute.xlu0 %2981  ;;  %v3024_v40 = vpop.permute.xlu1 %3023 }
 0xb42   :  { %3002 = vmatpush.bf16.msra.mxu1 %v2982_v18  ;;  %v3033_v36 = vsel %vm224_vm3, %v3024_v40, 0 }
 0xb43   :  { %3041 = vmatpush.bf16.msra.mxu0 %v3033_v36 }
 0xb46   :  { %3161 = vmatpush.bf16.msrb.mxu1 %v3153_v15 }
 0xb49   :  { %v3022_v9 = vpop.permute.xlu0 %3021  ;;  %v3224_v46 = vpop.permute.xlu1 %3223 }
 0xb4a   :  { %3042 = vmatpush.bf16.msra.mxu0 %v3022_v9  ;;  %v3233_v35 = vsel %vm224_vm3, %v3224_v46, 0 }
 0xb4b   :  { %3241 = vmatpush.bf16.msra.mxu2 %v3233_v35 }
 0xb51   :  { %v3102_v28 = vpop.permute.xlu0 %3101 }
 0xb52   :  { %3122 = vmatpush.bf16.msra.mxu3 %v3102_v28 }
 0xb59   :  { %v3184_v29 = vpop.permute.xlu0 %3183 }
 0xb5a   :  { %v3193_v6 = vsel %vm224_vm3, %v3184_v29, 0  ;;  %vm3583_vm3 = vcmask 254976  }
 0xb5b   :  { %3201 = vmatpush.bf16.msrb.mxu0 %v3193_v6 }
 0xb75   :  { %v2370_v34 = vpop.f32.mrf.mxu3  ;;  %v2484_v61 = vpop.f32.mrf.mxu2 }
 0xb76   :  { %v5542_v55 = vadd.f32 %v2484_v61, %v4932_v5  ;;  %v5552_v0 = vadd.f32 %v2370_v34, %v4932_v5 }
 0xb77   :  { %v2446_v22 = vpop.f32.mrf.mxu0 }
 0xb78   :  { %v5545_v59 = vadd.f32 %v2446_v22, %v4932_v5  ;;  %v2672_v23 = vsel %vm1064_vm10, %v5542_v55, -inf  ;;  %v2645_v56 = vsel %vm1064_vm10, %v5552_v0, -inf }
 0xb79   :  { %2673 = vmax.xlane.f32.xlu2 %v2672_v23 }
 0xb7a   :  { %v2663_v38 = vsel %vm1064_vm10, %v5545_v59, -inf }
 0xb7b   :  { %2664 = vmax.xlane.f32.xlu1 %v2663_v38 }
 0xb7d   :  { %v2372_v51 = vpop.f32.mrf.mxu3  ;;  %v2486_v45 = vpop.f32.mrf.mxu2 }
 0xb7e   :  { %v5565_v10 = vadd.f32 %v2486_v45, %v4954_v37  ;;  %v5577_v54 = vadd.f32 %v2372_v51, %v4954_v37 }
 0xb7f   :  { %v2408_v2 = vpop.f32.mrf.mxu1  ;;  %v2448_v49 = vpop.f32.mrf.mxu0 }
 0xb80   :  { %v5555_v4 = vadd.f32 %v2408_v2, %v4932_v5  ;;  %v5562_v17 = vadd.f32 %v2448_v49, %v4954_v37  ;;  %v2675_v25 = vsel %vm1064_vm10, %v5565_v10, -inf  ;;  %v2648_v26 = vsel %vm1064_vm10, %v5577_v54, -inf }
 0xb82   :  { %v2654_v58 = vsel %vm1064_vm10, %v5555_v4, -inf  ;;  %v2666_v41 = vsel %vm1064_vm10, %v5562_v17, -inf }
 0xb83   :  { %2655 = vmax.xlane.f32.xlu0 %v2654_v58  ;;  %2646 = vmax.xlane.f32.xlu1 %v2645_v56 }
 0xb85   :  { %v2375_v21 = vpop.f32.mrf.mxu3 }
 0xb86   :  { %v5595_v57 = vadd.f32 %v2375_v21, %v4978_v32 }
 0xb87   :  { %v2410_v13 = vpop.f32.mrf.mxu1 }
 0xb88   :  { %v5568_v19 = vadd.f32 %v2410_v13, %v4954_v37  ;;  %v2651_v63 = vsel %vm1064_vm10, %v5595_v57, -inf }
 0xb8a   :  { %v2657_v24 = vsel %vm1064_vm10, %v5568_v19, -inf }
 0xb8b   :  { %2658 = vmax.xlane.f32.xlu2 %v2657_v24  ;;  %2667 = vmax.xlane.f32.xlu0 %v2666_v41 }
 0xb8c   :  { %2676 = vmax.xlane.f32.xlu1 %v2675_v25 }
 0xb8d   :  { %v2377_v7 = vpop.f32.mrf.mxu3  ;;  %v2489_v11 = vpop.f32.mrf.mxu2 }
 0xb8e   :  { %v5580_v14 = vadd.f32 %v2489_v11, %v4978_v32 }
 0xb8f   :  { %v2413_v16 = vpop.f32.mrf.mxu1 }
 0xb90   :  { %v2451_v20 = vpop.f32.mrf.mxu0  ;;  %v2678_v42 = vsel %vm1064_vm10, %v5580_v14, -inf  ;;  %v5592_v12 = vadd.f32 %v2413_v16, %v4978_v32 }
 0xb91   :  { %v5583_v33 = vadd.f32 %v2451_v20, %v4978_v32 }
 0xb92   :  { %v2660_v62 = vsel %vm1064_vm10, %v5592_v12, -inf }
 0xb93   :  { %v2669_v43 = vsel %vm1064_vm10, %v5583_v33, -inf  ;;  %2649 = vmax.xlane.f32.xlu0 %v2648_v26 }
 0xb94   :  { %2670 = vmax.xlane.f32.xlu2 %v2669_v43  ;;  %2679 = vmax.xlane.f32.xlu1 %v2678_v42 }
 0xb95   :  { %v2522_v60 = vpop.f32.mrf.mxu3  ;;  %v2491_v53 = vpop.f32.mrf.mxu2 }
 0xb96   :  { %v5617_v28 = vadd.f32 %v2522_v60, %v4932_v5 }
 0xb97   :  { %v2415_v3 = vpop.f32.mrf.mxu1 }
 0xb98   :  { %v2453_v8 = vpop.f32.mrf.mxu0 }
 0xb9b   :  { %2661 = vmax.xlane.f32.xlu0 %v2660_v62 }
 0xb9c   :  { %2652 = vmax.xlane.f32.xlu2 %v2651_v63 }
 0xb9d   :  { %v2524_v1 = vpop.f32.mrf.mxu3  ;;  %v2636_v48 = vpop.f32.mrf.mxu2 }
 0xb9e   :  { %v5602_v52 = vadd.f32 %v2636_v48, %v4932_v5  ;;  %v5632_v2 = vadd.f32 %v2524_v1, %v4954_v37 }
 0xb9f   :  { %v2560_v44 = vpop.f32.mrf.mxu1 }
 0xba0   :  { %v2598_v39 = vpop.f32.mrf.mxu0  ;;  %v5605_v18 = vadd.f32 %v2560_v44, %v4932_v5  ;;  %v2708_v40 = vsel %vm1064_vm10, %v5602_v52, -inf  ;;  %v2684_v45 = vsel %vm1064_vm10, %v5632_v2, -inf }
 0xba1   :  { %v5608_v15 = vadd.f32 %v2598_v39, %v4932_v5  ;;  %v2681_v5 = vsel %vm1064_vm10, %v5617_v28, -inf }
 0xba2   :  { %v2690_v36 = vsel %vm1064_vm10, %v5605_v18, -inf }
 0xba3   :  { %v2699_v9 = vsel %vm1064_vm10, %v5608_v15, -inf  ;;  %2691 = vmax.xlane.f32.xlu0 %v2690_v36 }
 0xba4   :  { %2709 = vmax.xlane.f32.xlu2 %v2708_v40  ;;  %2700 = vmax.xlane.f32.xlu1 %v2699_v9 }
 0xba5   :  { %v2527_v46 = vpop.f32.mrf.mxu3  ;;  %v2638_v35 = vpop.f32.mrf.mxu2 }
 0xba6   :  { %v5635_v58 = vadd.f32 %v2638_v35, %v4954_v37  ;;  %v5645_v41 = vadd.f32 %v2527_v46, %v4978_v32 }
 0xba7   :  { %v2562_v29 = vpop.f32.mrf.mxu1 }
 0xba8   :  { %v2600_v6 = vpop.f32.mrf.mxu0  ;;  %v5620_v34 = vadd.f32 %v2562_v29, %v4954_v37  ;;  %v2711_v21 = vsel %vm1064_vm10, %v5635_v58, -inf  ;;  %v2687_v11 = vsel %vm1064_vm10, %v5645_v41, -inf }
 0xba9   :  { %v5623_v61 = vadd.f32 %v2600_v6, %v4954_v37 }
 0xbaa   :  { %v2693_v22 = vsel %vm1064_vm10, %v5620_v34, -inf }
 0xbab   :  { %v2702_v23 = vsel %vm1064_vm10, %v5623_v61, -inf }
 0xbac   :  { %2694 = vmax.xlane.f32.xlu2 %v2693_v22  ;;  %2703 = vmax.xlane.f32.xlu0 %v2702_v23 }
 0xbad   :  { %2682 = vmax.xlane.f32.xlu1 %v2681_v5  ;;  %v2529_v38 = vpop.f32.mrf.mxu3  ;;  %v2641_v51 = vpop.f32.mrf.mxu2 }
 0xbae   :  { %v5657_v26 = vadd.f32 %v2641_v51, %v4978_v32 }
 0xbaf   :  { %v2565_v56 = vpop.f32.mrf.mxu1 }
 0xbb0   :  { %v2603_v49 = vpop.f32.mrf.mxu0  ;;  %v5642_v24 = vadd.f32 %v2565_v56, %v4978_v32  ;;  %v2714_v43 = vsel %vm1064_vm10, %v5657_v26, -inf }
 0xbb1   :  { %v5652_v16 = vadd.f32 %v2603_v49, %v4978_v32 }
 0xbb2   :  { %v2696_v7 = vsel %vm1064_vm10, %v5642_v24, -inf }
 0xbb3   :  { %v2705_v20 = vsel %vm1064_vm10, %v5652_v16, -inf }
 0xbb4   :  { %2685 = vmax.xlane.f32.xlu0 %v2684_v45 }
 0xbb5   :  { %2712 = vmax.xlane.f32.xlu1 %v2711_v21  ;;  %v2643_v13 = vpop.f32.mrf.mxu2 }
 0xbb7   :  { %v2567_v25 = vpop.f32.mrf.mxu1 }
 0xbb8   :  { %v2605_v37 = vpop.f32.mrf.mxu0 }
 0xbbc   :  { %2697 = vmax.xlane.f32.xlu0 %v2696_v7 }
 0xbbd   :  { %2688 = vmax.xlane.f32.xlu1 %v2687_v11 }
 0xbc4   :  { %2706 = vmax.xlane.f32.xlu0 %v2705_v20 }
 0xbcc   :  { %2715 = vmax.xlane.f32.xlu0 %v2714_v43 }
 0xbec   :  { %v2674_v42 = vpop.xlane.xlu2 %2673 }
 0xbed   :  { %v2726_v3 = vsub.f32 %v5542_v55, %v2674_v42 }
 0xbee   :  { %v2665_v60 = vpop.xlane.xlu1 %2664 }
 0xbef   :  { %v2723_v53 = vsub.f32 %v5545_v59, %v2665_v60  ;;  %v2759_v62 = vmul.f32 1.442695, %v2726_v3 }
 0xbf1   :  { %v2753_v8 = vmul.f32 1.442695, %v2723_v53 }
 0xbf3   :  { %4246 = vpow2.f32 %v2753_v8 }
 0xbf4   :  { %4248 = vpow2.f32 %v2759_v62 }
 0xbf6   :  { %v2656_v63 = vpop.xlane.xlu0 %2655  ;;  %v2647_v1 = vpop.xlane.xlu1 %2646 }
 0xbf7   :  { %v2720_v48 = vsub.f32 %v5555_v4, %v2656_v63  ;;  %v2717_v39 = vsub.f32 %v5552_v0, %v2647_v1 }
 0xbf9   :  { %v5664_v44 = vpop.eup %4246  ;;  %v2747_v32 = vmul.f32 1.442695, %v2720_v48  ;;  %v2741_v59 = vmul.f32 1.442695, %v2717_v39 }
 0xbfa   :  { %v2807_v40 = vsel %vm1064_vm10, %v5664_v44, 0.0  ;;  %v5669_v9 = vpop.eup %4248 }
 0xbfb   :  { %4250 = vpow2.f32 %v2747_v32  ;;  %2808 = vadd.xlane.f32.xlu0 %v2807_v40  ;;  %v2816_v22 = vsel %vm1064_vm10, %v5669_v9, 0.0 }
 0xbfc   :  { %4252 = vpow2.f32 %v2741_v59 }
 0xbfe   :  { %v2659_v55 = vpop.xlane.xlu2 %2658  ;;  %v2668_v36 = vpop.xlane.xlu0 %2667 }
 0xbff   :  { %v2721_v46 = vsub.f32 %v5568_v19, %v2659_v55  ;;  %v2677_v35 = vpop.xlane.xlu1 %2676  ;;  %v2724_v6 = vsub.f32 %v5562_v17, %v2668_v36 }
 0xc00   :  { %v2727_v17 = vsub.f32 %v5565_v10, %v2677_v35 }
 0xc01   :  { %v5672_v4 = vpop.eup %4250  ;;  %v2749_v29 = vmul.f32 1.442695, %v2721_v46  ;;  %v2755_v23 = vmul.f32 1.442695, %v2724_v6 }
 0xc02   :  { %v2798_v0 = vsel %vm1064_vm10, %v5672_v4, 0.0  ;;  %v5679_v38 = vpop.eup %4252 }
 0xc03   :  { %4254 = vpow2.f32 %v2749_v29  ;;  %2799 = vadd.xlane.f32.xlu2 %v2798_v0  ;;  %2817 = vadd.xlane.f32.xlu0 %v2816_v22  ;;  %v2789_v25 = vsel %vm1064_vm10, %v5679_v38, 0.0 }
 0xc04   :  { %4256 = vpow2.f32 %v2755_v23 }
 0xc06   :  { %v2650_v5 = vpop.xlane.xlu0 %2649 }
 0xc07   :  { %v2718_v19 = vsub.f32 %v5577_v54, %v2650_v5  ;;  %v2680_v51 = vpop.xlane.xlu1 %2679  ;;  %v2671_v56 = vpop.xlane.xlu2 %2670  ;;  %v2761_v54 = vmul.f32 1.442695, %v2727_v17 }
 0xc08   :  { %v2728_v21 = vsub.f32 %v5580_v14, %v2680_v51  ;;  %v2725_v14 = vsub.f32 %v5583_v33, %v2671_v56 }
 0xc09   :  { %v5682_v49 = vpop.eup %4254  ;;  %v2743_v45 = vmul.f32 1.442695, %v2718_v19 }
 0xc0a   :  { %v2801_v13 = vsel %vm1064_vm10, %v5682_v49, 0.0  ;;  %v2763_v37 = vmul.f32 1.442695, %v2728_v21  ;;  %v5690_v11 = vpop.eup %4256  ;;  %v2757_v3 = vmul.f32 1.442695, %v2725_v14 }
 0xc0b   :  { %4258 = vpow2.f32 %v2743_v45  ;;  %2802 = vadd.xlane.f32.xlu1 %v2801_v13  ;;  %2790 = vadd.xlane.f32.xlu2 %v2789_v25  ;;  %v2810_v53 = vsel %vm1064_vm10, %v5690_v11, 0.0 }
 0xc0c   :  { %4260 = vpow2.f32 %v2761_v54 }
 0xc0d   :  { %4262 = vpow2.f32 %v2763_v37 }
 0xc0e   :  { %v2662_v7 = vpop.xlane.xlu0 %2661 }
 0xc0f   :  { %v2722_v20 = vsub.f32 %v5592_v12, %v2662_v7  ;;  %v2653_v42 = vpop.xlane.xlu2 %2652 }
 0xc10   :  { %v2719_v48 = vsub.f32 %v5595_v57, %v2653_v42 }
 0xc11   :  { %v5693_v10 = vpop.eup %4258  ;;  %v2751_v43 = vmul.f32 1.442695, %v2722_v20 }
 0xc12   :  { %v2792_v60 = vsel %vm1064_vm10, %v5693_v10, 0.0  ;;  %v5700_v8 = vpop.eup %4260  ;;  %v2745_v36 = vmul.f32 1.442695, %v2719_v48 }
 0xc13   :  { %4264 = vpow2.f32 %v2751_v43  ;;  %2793 = vadd.xlane.f32.xlu1 %v2792_v60  ;;  %2811 = vadd.xlane.f32.xlu2 %v2810_v53  ;;  %v5702_v62 = vpop.eup %4262  ;;  %v2819_v40 = vsel %vm1064_vm10, %v5700_v8, 0.0 }
 0xc14   :  { %4266 = vpow2.f32 %v2757_v3 }
 0xc16   :  { %v2692_v12 = vpop.xlane.xlu0 %2691 }
 0xc17   :  { %v2732_v33 = vsub.f32 %v5605_v18, %v2692_v12  ;;  %v2701_v63 = vpop.xlane.xlu1 %2700  ;;  %v2822_v18 = vsel %vm1064_vm10, %v5702_v62, 0.0  ;;  %v2710_v55 = vpop.xlane.xlu2 %2709 }
 0xc18   :  { %v2735_v59 = vsub.f32 %v5608_v15, %v2701_v63  ;;  %v2738_v5 = vsub.f32 %v5602_v52, %v2710_v55 }
 0xc19   :  { %v5705_v1 = vpop.eup %4264  ;;  %v2771_v32 = vmul.f32 1.442695, %v2732_v33 }
 0xc1a   :  { %v2804_v39 = vsel %vm1064_vm10, %v5705_v1, 0.0  ;;  %v5715_v46 = vpop.eup %4266  ;;  %v2777_v57 = vmul.f32 1.442695, %v2735_v59 }
 0xc1b   :  { %2805 = vadd.xlane.f32.xlu0 %v2804_v39  ;;  %2820 = vadd.xlane.f32.xlu2 %v2819_v40  ;;  %4268 = vpow2.f32 %v2771_v32  ;;  %v2813_v22 = vsel %vm1064_vm10, %v5715_v46, 0.0 }
 0xc1c   :  { %2823 = vadd.xlane.f32.xlu1 %v2822_v18  ;;  %4270 = vpow2.f32 %v2745_v36 }
 0xc1d   :  { %4272 = vpow2.f32 %v2777_v57 }
 0xc1f   :  { %v2704_v35 = vpop.xlane.xlu0 %2703 }
 0xc20   :  { %v2736_v29 = vsub.f32 %v5623_v61, %v2704_v35  ;;  %v2683_v6 = vpop.xlane.xlu1 %2682  ;;  %v2695_v61 = vpop.xlane.xlu2 %2694 }
 0xc21   :  { %v2729_v0 = vsub.f32 %v5617_v28, %v2683_v6  ;;  %v5721_v23 = vpop.eup %4268  ;;  %v2783_v28 = vmul.f32 1.442695, %v2738_v5  ;;  %v2733_v45 = vsub.f32 %v5620_v34, %v2695_v61 }
 0xc22   :  { %v2779_v15 = vmul.f32 1.442695, %v2736_v29  ;;  %v2834_v19 = vsel %vm1064_vm10, %v5721_v23, 0.0  ;;  %v5726_v56 = vpop.eup %4270 }
 0xc23   :  { %2814 = vadd.xlane.f32.xlu2 %v2813_v22  ;;  %v2765_v51 = vmul.f32 1.442695, %v2729_v0  ;;  %v5728_v17 = vpop.eup %4272  ;;  %v2795_v52 = vsel %vm1064_vm10, %v5726_v56, 0.0  ;;  %v2773_v54 = vmul.f32 1.442695, %v2733_v45 }
 0xc24   :  { %4274 = vpow2.f32 %v2779_v15  ;;  %2835 = vadd.xlane.f32.xlu1 %v2834_v19  ;;  %v2843_v25 = vsel %vm1064_vm10, %v5728_v17, 0.0 }
 0xc25   :  { %4276 = vpow2.f32 %v2765_v51 }
 0xc26   :  { %4278 = vpow2.f32 %v2783_v28 }
 0xc27   :  { %v2686_v37 = vpop.xlane.xlu0 %2685  ;;  %4280 = vpow2.f32 %v2773_v54 }
 0xc28   :  { %v2730_v20 = vsub.f32 %v5632_v2, %v2686_v37  ;;  %v2713_v60 = vpop.xlane.xlu1 %2712 }
 0xc29   :  { %v2739_v3 = vsub.f32 %v5635_v58, %v2713_v60 }
 0xc2a   :  { %v5733_v21 = vpop.eup %4274  ;;  %v2767_v42 = vmul.f32 1.442695, %v2730_v20 }
 0xc2b   :  { %2796 = vadd.xlane.f32.xlu2 %v2795_v52  ;;  %v2846_v13 = vsel %vm1064_vm10, %v5733_v21, 0.0  ;;  %v5739_v7 = vpop.eup %4276  ;;  %v2785_v2 = vmul.f32 1.442695, %v2739_v3 }
 0xc2c   :  { %2847 = vadd.xlane.f32.xlu0 %v2846_v13  ;;  %2844 = vadd.xlane.f32.xlu1 %v2843_v25  ;;  %v5741_v34 = vpop.eup %4278  ;;  %v2825_v14 = vsel %vm1064_vm10, %v5739_v7, 0.0  ;;  %4282 = vpow2.f32 %v2767_v42 }
 0xc2d   :  { %v2852_v43 = vsel %vm1064_vm10, %v5741_v34, 0.0  ;;  %v5748_v53 = vpop.eup %4280  ;;  %4284 = vpow2.f32 %v2785_v2 }
 0xc2e   :  { %v2837_v12 = vsel %vm1064_vm10, %v5748_v53, 0.0 }
 0xc2f   :  { %v2698_v32 = vpop.xlane.xlu0 %2697 }
 0xc30   :  { %v2734_v39 = vsub.f32 %v5642_v24, %v2698_v32  ;;  %v2689_v59 = vpop.xlane.xlu1 %2688 }
 0xc31   :  { %v2731_v18 = vsub.f32 %v5645_v41, %v2689_v59 }
 0xc32   :  { %v5753_v33 = vpop.eup %4282  ;;  %v2775_v40 = vmul.f32 1.442695, %v2734_v39 }
 0xc33   :  { %2826 = vadd.xlane.f32.xlu2 %v2825_v14  ;;  %v2828_v63 = vsel %vm1064_vm10, %v5753_v33, 0.0  ;;  %v5759_v48 = vpop.eup %4284  ;;  %v2769_v57 = vmul.f32 1.442695, %v2731_v18 }
 0xc34   :  { %2853 = vadd.xlane.f32.xlu1 %v2852_v43  ;;  %v2855_v58 = vsel %vm1064_vm10, %v5759_v48, 0.0  ;;  %4286 = vpow2.f32 %v2775_v40 }
 0xc35   :  { %4288 = vpow2.f32 %v2769_v57 }
 0xc37   :  { %v2707_v36 = vpop.xlane.xlu0 %2706 }
 0xc38   :  { %v2737_v29 = vsub.f32 %v5652_v16, %v2707_v36 }
 0xc3a   :  { %v5769_v55 = vpop.eup %4286  ;;  %v2781_v24 = vmul.f32 1.442695, %v2737_v29 }
 0xc3b   :  { %2838 = vadd.xlane.f32.xlu2 %v2837_v12  ;;  %v2840_v35 = vsel %vm1064_vm10, %v5769_v55, 0.0  ;;  %v5774_v0 = vpop.eup %4288 }
 0xc3c   :  { %4290 = vpow2.f32 %v2781_v24  ;;  %v2831_v41 = vsel %vm1064_vm10, %v5774_v0, 0.0 }
 0xc3f   :  { %v2716_v6 = vpop.xlane.xlu0 %2715 }
 0xc40   :  { %3181 = vrot.lane.b32.xlu0 %v5387_v27, %s6019_s7 }
 0xc42   :  { %v5779_v19 = vpop.eup %4290 }
 0xc43   :  { %2829 = vadd.xlane.f32.xlu2 %v2828_v63  ;;  %v2849_v16 = vsel %vm1064_vm10, %v5779_v19, 0.0 }
 0xc4b   :  { %2856 = vadd.xlane.f32.xlu2 %v2855_v58 }
 0xc4d   :  { %3221 = vrot.lane.b32.xlu1 %v5387_v27, %s6018_s4 }
 0xc63   :  { %3141 = vrot.lane.b32.xlu2 %v5387_v27, %s6016_s20  ;;  %v2740_v27 = vsub.f32 %v5657_v26, %v2716_v6 }
 0xc65   :  { %v2787_v22 = vmul.f32 1.442695, %v2740_v27 }
 0xc6a   :  { %2841 = vadd.xlane.f32.xlu0 %v2840_v35 }
 0xc6e   :  { %v2809_v5 = vpop.xlane.xlu0 %2808 }
 0xc76   :  { %v2800_v15 = vpop.xlane.xlu2 %2799  ;;  %v2818_v52 = vpop.xlane.xlu0 %2817 }
 0xc77   :  { %2832 = vadd.xlane.f32.xlu1 %v2831_v41  ;;  %4292 = vrcp.f32 %v2800_v15 }
 0xc78   :  { %4294 = vpow2.f32 %v2787_v22 }
 0xc7d   :  { %v4293_v28 = vpop.eup %4292 }
 0xc7e   :  { %v2791_v51 = vpop.xlane.xlu2 %2790  ;;  %v2803_v61 = vpop.xlane.xlu1 %2802  ;;  %v2888_v26 = vmul.f32 %v4293_v28, %v5672_v4 }
 0xc7f   :  { %2850 = vadd.xlane.f32.xlu1 %v2849_v16  ;;  %4296 = vrcp.f32 %v2803_v61  ;;  %v5784_v45 = vpop.eup %4294 }
 0xc80   :  { %4298 = vrcp.f32 %v2809_v5  ;;  %v2912_v20 = vpack.c.bf16 %v2888_v26, %v2888_v26  ;;  %v2858_v2 = vsel %vm1064_vm10, %v5784_v45, 0.0 }
 0xc81   :  { %4300 = vrcp.f32 %v2791_v51 }
 0xc82   :  { %v2976_v3 = vunpack.c.l.b16 %v2912_v20 }
 0xc85   :  { %v4297_v13 = vpop.eup %4296 }
 0xc86   :  { %v2812_v25 = vpop.xlane.xlu2 %2811  ;;  %v2794_v54 = vpop.xlane.xlu1 %2793  ;;  %v2889_v14 = vmul.f32 %v4297_v13, %v5682_v49 }
 0xc87   :  { %v4299_v37 = vpop.eup %4298  ;;  %4302 = vrcp.f32 %v2812_v25 }
 0xc88   :  { %v4301_v43 = vpop.eup %4300  ;;  %4304 = vrcp.f32 %v2794_v54  ;;  %v2913_v42 = vpack.c.bf16 %v2889_v14, %v2889_v14  ;;  %v2891_v60 = vmul.f32 %v4299_v37, %v5664_v44 }
 0xc89   :  { %4306 = vrcp.f32 %v2818_v52  ;;  %v2885_v4 = vmul.f32 %v4301_v43, %v5679_v38 }
 0xc8a   :  { %v2977_v12 = vunpack.c.l.b16 %v2913_v42  ;;  %v2915_v39 = vpack.c.bf16 %v2891_v60, %v2891_v60 }
 0xc8b   :  { %v2909_v18 = vpack.c.bf16 %v2885_v4, %v2885_v4 }
 0xc8c   :  { %2859 = vadd.xlane.f32.xlu2 %v2858_v2  ;;  %v2979_v58 = vpack.c.b16 %v2977_v12, %v2976_v3  ;;  %v3016_v29 = vunpack.c.l.b16 %v2915_v39 }
 0xc8d   :  { %v4303_v63 = vpop.eup %4302  ;;  %v2936_v15 = vunpack.c.l.b16 %v2909_v18 }
 0xc8e   :  { %v4305_v32 = vpop.eup %4304  ;;  %v2892_v49 = vmul.f32 %v4303_v63, %v5690_v11  ;;  %v2806_v40 = vpop.xlane.xlu0 %2805  ;;  %3856 = vmatmul.msk.bf16.vlgmr.msra.gmra.mxu1 %vm1064_vm10, %v2979_v58 }
 0xc8f   :  { %v2821_v59 = vpop.xlane.xlu2 %2820  ;;  %v2886_v44 = vmul.f32 %v4305_v32, %v5693_v10  ;;  %4308 = vrcp.f32 %v2806_v40  ;;  %v2824_v38 = vpop.xlane.xlu1 %2823 }
 0xc90   :  { %v4307_v36 = vpop.eup %4306  ;;  %v2916_v57 = vpack.c.bf16 %v2892_v49, %v2892_v49  ;;  %4310 = vrcp.f32 %v2821_v59 }
 0xc91   :  { %v2910_v35 = vpack.c.bf16 %v2886_v44, %v2886_v44  ;;  %v2894_v6 = vmul.f32 %v4307_v36, %v5669_v9 }
 0xc92   :  { %v3017_v24 = vunpack.c.l.b16 %v2916_v57 }
 0xc93   :  { %v2937_v27 = vunpack.c.l.b16 %v2910_v35  ;;  %v2918_v61 = vpack.c.bf16 %v2894_v6, %v2894_v6 }
 0xc94   :  { %v3019_v11 = vpack.c.b16 %v3017_v24, %v3016_v29 }
 0xc95   :  { %v4309_v41 = vpop.eup %4308  ;;  %v2939_v22 = vpack.c.b16 %v2937_v27, %v2936_v15  ;;  %v3056_v13 = vunpack.c.l.b16 %v2918_v61 }
 0xc96   :  { %v4311_v5 = vpop.eup %4310  ;;  %v2890_v10 = vmul.f32 %v4309_v41, %v5705_v1  ;;  %3858 = vmatmul.msk.bf16.vlgmr.msra.gmra.mxu0 %vm1064_vm10, %v3019_v11 }
 0xc97   :  { %v2815_v51 = vpop.xlane.xlu2 %2814  ;;  %v2895_v16 = vmul.f32 %v4311_v5, %v5700_v8  ;;  %3854 = vmatmul.msk.bf16.vlgmr.msrb.gmra.mxu3 %vm1064_vm10, %v2939_v22  ;;  %v2836_v9 = vpop.xlane.xlu1 %2835 }
 0xc98   :  { %4312 = vrcp.f32 %v2815_v51  ;;  %v2914_v28 = vpack.c.bf16 %v2890_v10, %v2890_v10 }
 0xc99   :  { %4314 = vrcp.f32 %v2824_v38  ;;  %v2919_v26 = vpack.c.bf16 %v2895_v16, %v2895_v16 }
 0xc9a   :  { %v2978_v52 = vunpack.c.l.b16 %v2914_v28 }
 0xc9b   :  { %v3057_v25 = vunpack.c.l.b16 %v2919_v26 }
 0xc9c   :  { %v2980_v54 = vpack.c.b16 %v2978_v52, %v2978_v52 }
 0xc9d   :  { %v3059_v20 = vpack.c.b16 %v3057_v25, %v3056_v13 }
 0xc9e   :  { %v4313_v37 = vpop.eup %4312  ;;  %3857 = vmatmul.msk.bf16.gmra.mxu1 %vm1064_vm10, %v2980_v54 }
 0xc9f   :  { %v4315_v1 = vpop.eup %4314  ;;  %v2893_v14 = vmul.f32 %v4313_v37, %v5715_v46  ;;  %v2797_v43 = vpop.xlane.xlu2 %2796  ;;  %3860 = vmatmul.msk.bf16.vlgmr.msrb.gmra.mxu2 %vm1064_vm10, %v3059_v20 }
 0xca0   :  { %4316 = vrcp.f32 %v2797_v43  ;;  %v2848_v42 = vpop.xlane.xlu0 %2847  ;;  %v2845_v60 = vpop.xlane.xlu1 %2844  ;;  %v2896_v3 = vmul.f32 %v4315_v1, %v5702_v62 }
 0xca1   :  { %v2917_v8 = vpack.c.bf16 %v2893_v14, %v2893_v14  ;;  %4318 = vrcp.f32 %v2848_v42 }
 0xca2   :  { %4320 = vrcp.f32 %v2845_v60  ;;  %v2920_v63 = vpack.c.bf16 %v2896_v3, %v2896_v3 }
 0xca3   :  { %v3018_v4 = vunpack.c.l.b16 %v2917_v8 }
 0xca4   :  { %v3058_v18 = vunpack.c.l.b16 %v2920_v63 }
 0xca5   :  { %v3020_v12 = vpack.c.b16 %v3018_v4, %v3018_v4 }
 0xca6   :  { %v4317_v2 = vpop.eup %4316  ;;  %v3060_v57 = vpack.c.b16 %v3058_v18, %v3058_v18 }
 0xca7   :  { %v2887_v58 = vmul.f32 %v4317_v2, %v5726_v56  ;;  %3859 = vmatmul.msk.bf16.gmra.mxu0 %vm1064_vm10, %v3020_v12  ;;  %v2827_v46 = vpop.xlane.xlu2 %2826  ;;  %v4319_v32 = vpop.eup %4318 }
 0xca8   :  { %v4321_v39 = vpop.eup %4320  ;;  %v2904_v40 = vmul.f32 %v4319_v32, %v5733_v21  ;;  %4322 = vrcp.f32 %v2827_v46 }
 0xca9   :  { %v2911_v49 = vpack.c.bf16 %v2887_v58, %v2887_v58  ;;  %v2903_v59 = vmul.f32 %v4321_v39, %v5728_v17  ;;  %v2854_v17 = vpop.xlane.xlu1 %2853 }
 0xcaa   :  { %v2928_v38 = vpack.c.bf16 %v2904_v40, %v2904_v40 }
 0xcab   :  { %v2938_v62 = vunpack.c.l.b16 %v2911_v49  ;;  %v2927_v36 = vpack.c.bf16 %v2903_v59, %v2903_v59 }
 0xcac   :  { %v3177_v56 = vunpack.c.l.b16 %v2928_v38 }
 0xcad   :  { %v2940_v44 = vpack.c.b16 %v2938_v62, %v2938_v62  ;;  %v3176_v29 = vunpack.c.l.b16 %v2927_v36 }
 0xcae   :  { %v4323_v15 = vpop.eup %4322 }
 0xcaf   :  { %v2839_v35 = vpop.xlane.xlu2 %2838  ;;  %3855 = vmatmul.msk.bf16.gmra.mxu3 %vm1064_vm10, %v2940_v44  ;;  %3861 = vmatmul.msk.bf16.gmra.mxu2 %vm1064_vm10, %v3060_v57  ;;  %v3179_v21 = vpack.c.b16 %v3177_v56, %v3176_v29  ;;  %v2897_v11 = vmul.f32 %v4323_v15, %v5739_v7 }
 0xcb0   :  { %4324 = vrcp.f32 %v2839_v35 }
 0xcb1   :  { %4326 = vrcp.f32 %v2836_v9  ;;  %v2921_v51 = vpack.c.bf16 %v2897_v11, %v2897_v11 }
 0xcb2   :  { %v3182_v24 = vpop.permute.xlu0 %3181 }
 0xcb3   :  { %3202 = vmatpush.bf16.msrb.mxu0 %v3182_v24  ;;  %v3096_v25 = vunpack.c.l.b16 %v2921_v51 }
 0xcb6   :  { %v4325_v27 = vpop.eup %4324 }
 0xcb7   :  { %v2830_v6 = vpop.xlane.xlu2 %2829  ;;  %3866 = vmatmul.msk.bf16.vlgmr.msrb.gmra.mxu0 %vm1064_vm10, %v3179_v21  ;;  %v4327_v41 = vpop.eup %4326  ;;  %v2901_v22 = vmul.f32 %v4325_v27, %v5748_v53 }
 0xcb8   :  { %4328 = vrcp.f32 %v2830_v6  ;;  %v2900_v10 = vmul.f32 %v4327_v41, %v5721_v23 }
 0xcb9   :  { %4330 = vrcp.f32 %v2854_v17  ;;  %v2925_v9 = vpack.c.bf16 %v2901_v22, %v2901_v22 }
 0xcba   :  { %v2924_v13 = vpack.c.bf16 %v2900_v10, %v2900_v10 }
 0xcbb   :  { %v3137_v37 = vunpack.c.l.b16 %v2925_v9 }
 0xcbc   :  { %v3136_v1 = vunpack.c.l.b16 %v2924_v13 }
 0xcbe   :  { %v4329_v5 = vpop.eup %4328  ;;  %v3139_v43 = vpack.c.b16 %v3137_v37, %v3136_v1 }
 0xcbf   :  { %v2898_v61 = vmul.f32 %v4329_v5, %v5753_v33  ;;  %v2857_v16 = vpop.xlane.xlu2 %2856  ;;  %v4331_v28 = vpop.eup %4330 }
 0xcc0   :  { %4332 = vrcp.f32 %v2857_v16  ;;  %v3222_v52 = vpop.permute.xlu1 %3221  ;;  %v2906_v7 = vmul.f32 %v4331_v28, %v5741_v34 }
 0xcc1   :  { %v2922_v26 = vpack.c.bf16 %v2898_v61, %v2898_v61  ;;  %3242 = vmatpush.bf16.msra.mxu2 %v3222_v52 }
 0xcc2   :  { %v2930_v23 = vpack.c.bf16 %v2906_v7, %v2906_v7 }
 0xcc3   :  { %v3097_v54 = vunpack.c.l.b16 %v2922_v26 }
 0xcc4   :  { %v3216_v42 = vunpack.c.l.b16 %v2930_v23 }
 0xcc5   :  { %v3099_v53 = vpack.c.b16 %v3097_v54, %v3096_v25 }
 0xcc6   :  { %v4333_v20 = vpop.eup %4332 }
 0xcc7   :  { %v2907_v14 = vmul.f32 %v4333_v20, %v5759_v48  ;;  %v3142_v33 = vpop.permute.xlu2 %3141  ;;  %3862 = vmatmul.msk.bf16.vlgmr.msra.gmra.mxu3 %vm1064_vm10, %v3099_v53 }
 0xcc8   :  { %3162 = vmatpush.bf16.msrb.mxu1 %v3142_v33 }
 0xcc9   :  { %v2931_v8 = vpack.c.bf16 %v2907_v14, %v2907_v14 }
 0xccb   :  { %v3217_v60 = vunpack.c.l.b16 %v2931_v8  ;;  %3864 = vmatmul.msk.bf16.vlgmr.msrb.gmra.mxu1 %vm1064_vm10, %v3139_v43 }
 0xccd   :  { %v3219_v3 = vpack.c.b16 %v3217_v60, %v3216_v42 }
 0xccf   :  { %3868 = vmatmul.msk.bf16.vlgmr.msra.gmra.mxu2 %vm1064_vm10, %v3219_v3 }
 0xcdd   :  { %v2842_v34 = vpop.xlane.xlu0 %2841 }
 0xcde   :  { %4334 = vrcp.f32 %v2842_v34 }
 0xce4   :  { %v4335_v4 = vpop.eup %4334 }
 0xce5   :  { %v2902_v12 = vmul.f32 %v4335_v4, %v5769_v55 }
 0xce7   :  { %v2926_v2 = vpack.c.bf16 %v2902_v12, %v2902_v12 }
 0xce9   :  { %v3138_v48 = vunpack.c.l.b16 %v2926_v2  ;;  %v3960_v2 = vld [vmem:[%s5994_s18 + $0x18] sm:$0xff] }
 0xcea   :  { %v2833_v63 = vpop.xlane.xlu1 %2832  ;;  %3394 = vmatpush.bf16.msrb.mxu3 %v3960_v2 }
 0xceb   :  { %4336 = vrcp.f32 %v2833_v63  ;;  %v3140_v58 = vpack.c.b16 %v3138_v48, %v3138_v48  ;;  %v3959_v48 = vld [vmem:[%s5994_s18 + $0x10] sm:$0xff] }
 0xced   :  { %3865 = vmatmul.msk.bf16.gmra.mxu1 %vm1064_vm10, %v3140_v58 }
 0xcee   :  { %3395 = vmatpush.bf16.msrb.mxu3 %v3959_v48  ;;  %v4351_v48 = vld [vmem:[%s5996_s10] sm:$0xff] }
 0xcf1   :  { %v4337_v46 = vpop.eup %4336 }
 0xcf2   :  { %v2899_v32 = vmul.f32 %v4337_v46, %v5774_v0  ;;  %v2851_v39 = vpop.xlane.xlu1 %2850 }
 0xcf3   :  { %4338 = vrcp.f32 %v2851_v39 }
 0xcf4   :  { %v2923_v49 = vpack.c.bf16 %v2899_v32, %v2899_v32 }
 0xcf6   :  { %v3098_v40 = vunpack.c.l.b16 %v2923_v49 }
 0xcf8   :  { %v3100_v59 = vpack.c.b16 %v3098_v40, %v3098_v40 }
 0xcf9   :  { %v4339_v18 = vpop.eup %4338 }
 0xcfa   :  { %v2905_v62 = vmul.f32 %v4339_v18, %v5779_v19  ;;  %3863 = vmatmul.msk.bf16.gmra.mxu3 %vm1064_vm10, %v3100_v59 }
 0xcfc   :  { %v2929_v55 = vpack.c.bf16 %v2905_v62, %v2905_v62 }
 0xcfe   :  { %v3178_v38 = vunpack.c.l.b16 %v2929_v55 }
 0xcff   :  { %v2860_v44 = vpop.xlane.xlu2 %2859 }
 0xd00   :  { %4340 = vrcp.f32 %v2860_v44  ;;  %v3180_v36 = vpack.c.b16 %v3178_v38, %v3178_v38 }
 0xd02   :  { %3867 = vmatmul.msk.bf16.gmra.mxu0 %vm1064_vm10, %v3180_v36 }
 0xd06   :  { %v4341_v57 = vpop.eup %4340 }
 0xd07   :  { %v2908_v0 = vmul.f32 %v4341_v57, %v5784_v45 }
 0xd09   :  { %v2932_v35 = vpack.c.bf16 %v2908_v0, %v2908_v0 }
 0xd0b   :  { %v3218_v56 = vunpack.c.l.b16 %v2932_v35  ;;  %v3004_v29 = vpop.f32.mrf.mxu1 }
 0xd0d   :  { %v3220_v24 = vpack.c.b16 %v3218_v56, %v3218_v56 }
 0xd0f   :  { %3869 = vmatmul.msk.bf16.gmra.mxu2 %vm1064_vm10, %v3220_v24 }
 0xd13   :  { %v3044_v21 = vpop.f32.mrf.mxu0  ;;  %v3006_v19 = vpop.f32.mrf.mxu1 }
 0xd14   :  { %v4077_v17 = vpack.i.bf16 %v3006_v19, %v3004_v29 }
 0xd16   :  { %4078 = vrot.lane.b32.xlu2 %v4077_v17, %s6020_s11 }
 0xd1a   :  { %v2964_v11 = vpop.f32.mrf.mxu3 }
 0xd1b   :  { %v3046_v6 = vpop.f32.mrf.mxu0  ;;  %v3009_v15 = vpop.f32.mrf.mxu1 }
 0xd1c   :  { %v4082_v27 = vpack.i.bf16 %v3046_v6, %v3044_v21 }
 0xd1e   :  { %4083 = vrot.lane.b32.xlu0 %v4082_v27, %s6021_s17 }
 0xd22   :  { %v3084_v41 = vpop.f32.mrf.mxu2  ;;  %v2966_v5 = vpop.f32.mrf.mxu3 }
 0xd23   :  { %v3011_v45 = vpop.f32.mrf.mxu1 }
 0xd24   :  { %v3049_v22 = vpop.f32.mrf.mxu0 }
 0xd2a   :  { %v3086_v10 = vpop.f32.mrf.mxu2 }
 0xd2b   :  { %v4087_v51 = vpack.i.bf16 %v3086_v10, %v3084_v41 }
 0xd2c   :  { %v3051_v61 = vpop.f32.mrf.mxu0 }
 0xd2d   :  { %4088 = vrot.lane.b32.xlu1 %v4087_v51, %s6022_s21 }
 0xd32   :  { %v5830_v16 = vpop.f32.mrf.mxu3  ;;  %v3089_v28 = vpop.f32.mrf.mxu2 }
 0xd34   :  { %v3204_v9 = vpop.f32.mrf.mxu0 }
 0xd3a   :  { %v2971_v26 = vpop.f32.mrf.mxu3  ;;  %v3091_v52 = vpop.f32.mrf.mxu2 }
 0xd3c   :  { %v3206_v13 = vpop.f32.mrf.mxu0 }
 0xd3d   :  { %v4097_v25 = vpack.i.bf16 %v3206_v13, %v3204_v9 }
 0xd3f   :  { %4098 = vrot.lane.b32.xlu1 %v4097_v25, %s6023_s25 }
 0xd47   :  { %3272 = vrot.lane.b32.xlu1 %v3049_v22, %s6021_s17 }
 0xd48   :  { %v3164_v7 = vpop.f32.mrf.mxu1 }
 0xd4a   :  { %v3124_v54 = vpop.f32.mrf.mxu3 }
 0xd50   :  { %v3166_v37 = vpop.f32.mrf.mxu1 }
 0xd51   :  { %v4092_v53 = vpack.i.bf16 %v3166_v37, %v3164_v7 }
 0xd52   :  { %v3126_v20 = vpop.f32.mrf.mxu3  ;;  %v3244_v1 = vpop.f32.mrf.mxu2 }
 0xd53   :  { %v4102_v23 = vpack.i.bf16 %v3126_v20, %v3124_v54  ;;  %4093 = vrot.lane.b32.xlu2 %v4092_v53, %s6024_s0 }
 0xd55   :  { %4103 = vrot.lane.b32.xlu0 %v4102_v23, %s6025_s5 }
 0xd5a   :  { %v3246_v14 = vpop.f32.mrf.mxu2 }
 0xd5b   :  { %v4107_v33 = vpack.i.bf16 %v3246_v14, %v3244_v1  ;;  %3260 = vrot.lane.b32.xlu2 %v3009_v15, %s6020_s11 }
 0xd5d   :  { %4108 = vrot.lane.b32.xlu0 %v4107_v33, %s6026_s9 }
 0xd65   :  { %3284 = vrot.lane.b32.xlu0 %v3089_v28, %s6022_s21 }
 0xd6a   :  { %v3169_v43 = vpop.f32.mrf.mxu1 }
 0xd6b   :  { %3308 = vrot.lane.b32.xlu1 %v3169_v43, %s6024_s0 }
 0xd70   :  { %v4079_v58 = vpop.permute.xlu2 %4078 }
 0xd71   :  { %v4081_v32 = vunpack.i.h.bf16 %v4079_v58  ;;  %v4080_v39 = vunpack.i.l.bf16 %v4079_v58  ;;  %v3962_v58 = vld [vmem:[%s5997_s26 + $0x18] sm:$0xff] }
 0xd72   :  { %v3171_v8 = vpop.f32.mrf.mxu1  ;;  %3477 = vmatpush.bf16.msra.mxu0 %v3962_v58 }
 0xd73   :  { %v3337_v55 = vsel %vm767_vm1, %v2964_v11, %v4080_v39  ;;  %v3338_v44 = vsel %vm767_vm1, %v2966_v5, %v4081_v32  ;;  %v4132_v32 = vld [vmem:[%s5998_s15 + $0x1] ss:$0 sm:$0xff] }
 0xd7d   :  { %v3129_v42 = vpop.f32.mrf.mxu3 }
 0xd7e   :  { %3296 = vrot.lane.b32.xlu2 %v3129_v42, %s6025_s5 }
 0xd7f   :  { %v3209_v60 = vpop.f32.mrf.mxu0 }
 0xd80   :  { %3320 = vrot.lane.b32.xlu0 %v3209_v60, %s6023_s25  ;;  %v4135_v60 = vld [vmem:[%s5995_s19 + $0x1] ss:$0 sm:$0xff] }
 0xd85   :  { %v3131_v3 = vpop.f32.mrf.mxu3 }
 0xd87   :  { %v3211_v34 = vpop.f32.mrf.mxu0 }
 0xd90   :  { %v4084_v63 = vpop.permute.xlu0 %4083 }
 0xd91   :  { %v4086_v49 = vunpack.i.h.bf16 %v4084_v63  ;;  %v4085_v40 = vunpack.i.l.bf16 %v4084_v63  ;;  %v4352_v63 = vld [vmem:[%s5996_s10 + $0x8] sm:$0xff] }
 0xd92   :  { %v3249_v4 = vpop.f32.mrf.mxu2 }
 0xd93   :  { %3332 = vrot.lane.b32.xlu2 %v3249_v4, %s6026_s9  ;;  %v3340_v57 = vsel %vm220_vm4, %v3337_v55, %v4085_v40  ;;  %v3341_v0 = vsel %vm220_vm4, %v3338_v44, %v4086_v49  ;;  %v2226_v49 = vadd.f32 %v4132_v32, %v5537_v31  ;;  %v2228_v40 = vadd.f32 %v4132_v32, %v5539_v50  ;;  %v4133_v55 = vld [vmem:[%s6000_s23 + $0x1] ss:$0 sm:$0xff]  ;;  %s3592_s23 = sshll.u32 %s4644_s14, 4  ;;  %s3593_s23 = int_to_ptr.hbm [resolvable:$true] %s3592_s23 }
 0xd95   :  { %v2231_v44 = vadd.f32 %v2228_v40, %v5314_v47 }
 0xd9a   :  { %v3251_v12 = vpop.f32.mrf.mxu2 }
 0xd9f   :  { %v4089_v46 = vpop.permute.xlu1 %4088 }
 0xda0   :  { %v4091_v59 = vunpack.i.h.bf16 %v4089_v46  ;;  %v4090_v18 = vunpack.i.l.bf16 %v4089_v46  ;;  %v3961_v46 = vld [vmem:[%s5997_s26 + $0x10] sm:$0xff]  ;;  %s4369_s26 = scalar_lea.hbm %s4644_s14, 2 }
 0xda1   :  { %3478 = vmatpush.bf16.msra.mxu0 %v3961_v46 }
 0xda2   :  { %v3344_v56 = vsel %vm1763_vm15, %v3341_v0, %v4091_v59  ;;  %v3343_v29 = vsel %vm1763_vm15, %v3340_v57, %v4090_v18  ;;  %v4136_v18 = vld [vmem:[%s5999_s1 + $0x1] ss:$0 sm:$0xff] }
 0xdad   :  { %v4094_v35 = vpop.permute.xlu2 %4093 }
 0xdae   :  { %v4096_v19 = vunpack.i.h.bf16 %v4094_v35  ;;  %v4095_v17 = vunpack.i.l.bf16 %v4094_v35  ;;  %v4134_v35 = vld [vmem:[%s6001_s28 + $0x1] ss:$0 sm:$0xff] }
 0xdb1   :  { %v4099_v6 = vpop.permute.xlu1 %4098 }
 0xdb2   :  { %v4101_v11 = vunpack.i.h.bf16 %v4099_v6  ;;  %v4100_v41 = vunpack.i.l.bf16 %v4099_v6 }
 0xdb5   :  { %v3261_v26 = vpop.permute.xlu2 %3260 }
 0xdb6   :  { %v3339_v7 = vsel %vm767_vm1, %v5830_v16, %v3261_v26  ;;  %v4139_v26 = vld [vmem:[%s6004_s16 + $0x1] ss:$0 sm:$0xff]  ;;  %s4450_s16 = smov [#allocation2]  }
 0xdb7   :  { %s3590_s18 = sshll.u32 %s4450_s16, 4  ;;  %s3591_s18 = int_to_ptr.vmem [resolvable:$true] %s3590_s18 }
 0xdb9   :  { %v3273_v52 = vpop.permute.xlu1 %3272 }
 0xdba   :  { %v3342_v54 = vsel %vm220_vm4, %v3339_v7, %v3273_v52  ;;  %v4140_v7 = vld [vmem:[%s4634_s29 + $0x1] ss:$0 sm:$0xff]  ;;  %s4365_s29 = sshra.s32 %s3593_s23, 4  ;;  %s4366_s29 = int_to_ptr.hbm [resolvable:$true] %s4365_s29 }
 0xdbb   :  { %p4370_p1 = scmp.lt.s32.totalorder %s4366_s29, %s4644_s14 }
 0xdc7   :  { %v4104_v62 = vpop.permute.xlu0 %4103 }
 0xdc8   :  { %v4106_v38 = vunpack.i.h.bf16 %v4104_v62  ;;  %v4105_v36 = vunpack.i.l.bf16 %v4104_v62  ;;  %v2230_v62 = vadd.f32 %v2226_v49, %v5316_v30 }
 0xdca   :  { %v3346_v24 = vsel %vm404_vm8, %v3343_v29, %v4105_v36  ;;  %v3347_v21 = vsel %vm404_vm8, %v3344_v56, %v4106_v38  ;;  %v4137_v36 = vld [vmem:[%s4629_s3 + $0x1] ss:$0 sm:$0xff]  ;;  %v2237_v0 = vmul.f32 %v4133_v55, %v2230_v62  ;;  %v2238_v56 = vmul.f32 %v4133_v55, %v2231_v44  ;;  %s6027_s3 = sld [smem:[#allocation9_spill]] }
 0xdcb   :  { %v3349_v15 = vsel %vm1770_vm0, %v3346_v24, %v4095_v17  ;;  %v3350_v27 = vsel %vm1770_vm0, %v3347_v21, %v4096_v19 }
 0xdcc   :  { %v3352_v10 = vsel %vm1064_vm10, %v3349_v15, %v4100_v41  ;;  %v3353_v51 = vsel %vm1064_vm10, %v3350_v27, %v4101_v11  ;;  %v2244_v24 = vadd.f32 %v4134_v35, %v2237_v0  ;;  %v3966_v15 = vld [vmem:[%s6002_s2 + $0x38] sm:$0xff]  ;;  %v3965_v27 = vld [vmem:[%s6002_s2 + $0x30] sm:$0xff]  ;;  %v3964_v11 = vld [vmem:[%s6002_s2 + $0x28] sm:$0xff] }
 0xdcf   :  { %v4109_v22 = vpop.permute.xlu0 %4108 }
 0xdd0   :  { %v4111_v45 = vunpack.i.h.bf16 %v4109_v22  ;;  %v4110_v5 = vunpack.i.l.bf16 %v4109_v22  ;;  %v4138_v22 = vld [vmem:[%s6003_s22 + $0x1] ss:$0 sm:$0xff] }
 0xdd2   :  { %v3355_v61 = vsel %vm1777_vm2, %v3352_v10, %v4110_v5  ;;  %v3356_v28 = vsel %vm1777_vm2, %v3353_v51, %v4111_v45 }
 0xdd3   :  { %v3363_v9 = vpack.c.bf16 %v3356_v28, %v3355_v61 }
 0xdd5   :  { %3883 = vmatmul.msk.bf16.vlgmr.msrb.gmra.mxu3 %vm370_vm7, %v3363_v9 }
 0xdd7   :  { %v3285_v13 = vpop.permute.xlu0 %3284 }
 0xdd8   :  { %v3297_v25 = vpop.permute.xlu2 %3296  ;;  %v3345_v37 = vsel %vm1763_vm15, %v3342_v54, %v3285_v13 }
 0xdd9   :  { %v3348_v20 = vsel %vm404_vm8, %v3345_v37, %v3297_v25 }
 0xddd   :  { %v3309_v53 = vpop.permute.xlu1 %3308 }
 0xdde   :  { %v3351_v1 = vsel %vm1770_vm0, %v3348_v20, %v3309_v53 }
 0xded   :  { %v3333_v14 = vpop.permute.xlu2 %3332 }
 0xdf2   :  { %v3321_v23 = vpop.permute.xlu0 %3320 }
 0xdf3   :  { %v3354_v33 = vsel %vm1064_vm10, %v3351_v1, %v3321_v23  ;;  %v4141_v1 = vld [vmem:[%s4639_s8 + $0x1] ss:$0 sm:$0xff]  ;;  %s4367_s8 = scalar_lea.hbm %s4366_s29, 2 }
 0xdf4   :  { %v3357_v43 = vsel %vm1777_vm2, %v3354_v33, %v3333_v14  ;;  %v3559_v33 = vld [vmem:[%s6027_s3] sm:$0x3]  ;;  %p4368_p0 = scmp.ne.s32.totalorder %s4366_s29, %s4367_s8  ;;  %p4371_p2 = scmp.lt.s32.totalorder %s4369_s26, %s4367_s8 }
 0xdf5   :  { %v3364_v8 = vpack.c.bf16 %v3357_v43, %v3357_v43 }
 0xdf6   :  { %p4372_p3 = por %p4371_p2, %p4370_p1 }
 0xdf7   :  { %3884 = vmatmul.msk.bf16.gmra.mxu3 %vm370_vm7, %v3364_v8 }
 0xdf8   :  { %p4373_p4 = pnand %p4372_p3, %p4368_p0 }
 0xe58   :  { %v3397_v16 = vpop.f32.mrf.mxu3 }
 0xe59   :  { %v3398_v12 = vadd.f32 %v4135_v60, %v3397_v16 }
 0xe60   :  { %v3399_v42 = vpop.f32.mrf.mxu3 }
 0xe61   :  { %v3400_v4 = vadd.f32 %v4135_v60, %v3399_v42 }
 0xe7a   :  { %v3402_v3 = vpop.f32.mrf.mxu3 }
 0xe7b   :  { %v3403_v34 = vadd.f32 %v4135_v60, %v3402_v3 }
 0xe7d   :  { %3419 = vmatpush.msra.mxu1 %v3403_v34 }
 0xe7f   :  { %3420 = vmatpush.msra.mxu1 %v3400_v4 }
 0xe81   :  { %3421 = vmatpush.msra.mxu1 %v3398_v12 }
 0xe82   :  { %v3404_v2 = vpop.f32.mrf.mxu3  ;;  %3885 = vmatmul.msk.f32.vlgmr.msra.gmra.mxu1 %vm1064_vm10, %v4351_v48 }
 0xe83   :  { %3533 = vmatpush.bf16.msrb.mxu1 %v3966_v15 }
 0xe87   :  { %3534 = vmatpush.bf16.msrb.mxu1 %v3965_v27 }
 0xe8a   :  { %3886 = vmatmul.msk.f32.gmra.mxu1 %vm1064_vm10, %v4352_v63 }
 0xe8b   :  { %3535 = vmatpush.bf16.msrb.mxu1 %v3964_v11 }
 0xeff   :  { %v3423_v39 = vpop.f32.mrf.mxu1 }
 0xf00   :  { %v3424_v59 = vadd.f32 %v3423_v39, %v5316_v30  ;;  %v2245_v30 = vadd.f32 %v4134_v35, %v2238_v56 }
 0xf02   :  { %v3434_v38 = vmul.f32 %v4136_v18, %v3424_v59 }
 0xf04   :  { %v3441_v50 = vadd.f32 %v4137_v36, %v3434_v38 }
 0xf06   :  { %v3443_v19 = vadd.f32 %v3441_v50, %v2244_v24 }
 0xf07   :  { %v3426_v57 = vpop.f32.mrf.mxu1 }
 0xf08   :  { %v3427_v31 = vadd.f32 %v3426_v57, %v5314_v47  ;;  %v3963_v47 = vld [vmem:[%s6002_s2 + $0x20] sm:$0xff] }
 0xf09   :  { %3536 = vmatpush.bf16.msrb.mxu1 %v3963_v47 }
 0xf0a   :  { %v3435_v29 = vmul.f32 %v4136_v18, %v3427_v31 }
 0xf0c   :  { %v3442_v21 = vadd.f32 %v4137_v36, %v3435_v29 }
 0xf0e   :  { %v3444_v17 = vadd.f32 %v3442_v21, %v2245_v30 }
 0xf10   :  { %v3450_v6 = vpack.c.bf16 %v3444_v17, %v3443_v19 }
 0xf12   :  { %3902 = vmatmul.msk.bf16.vlgmr.msra.gmra.mxu0 %vm370_vm7, %v3450_v6 }
 0xf8f   :  { %v3480_v41 = vpop.f32.mrf.mxu0 }
 0xf90   :  { %v3481_v45 = vadd.f32 %v4138_v22, %v3480_v41 }
 0xf92   :  { %v3485_v51 = vmax.f32 %v3481_v45, 0.0 }
 0xf97   :  { %v3482_v5 = vpop.f32.mrf.mxu0 }
 0xf98   :  { %v3483_v10 = vadd.f32 %v4138_v22, %v3482_v5 }
 0xf9a   :  { %v3486_v61 = vmax.f32 %v3483_v10, 0.0 }
 0xf9c   :  { %v3496_v28 = vpack.c.bf16 %v3486_v61, %v3485_v51 }
 0xf9e   :  { %3928 = vmatmul.msk.bf16.vlgmr.msrb.gmra.mxu1 %vm1947_vm5, %v3496_v28 }
0x101b   :  { %v3538_v9 = vpop.f32.mrf.mxu1 }
0x101c   :  { %v3539_v52 = vadd.f32 %v4139_v26, %v3538_v9 }
0x101e   :  { %v3543_v25 = vadd.f32 %v3539_v52, %v3443_v19 }
0x1020   :  { %v3550_v53 = vmul.f32 %v4140_v7, %v3543_v25 }
0x1022   :  { %v3557_v14 = vadd.f32 %v4141_v1, %v3550_v53 }
0x1023   :  { %v3540_v13 = vpop.f32.mrf.mxu1 }
0x1024   :  { %v3541_v54 = vadd.f32 %v4139_v26, %v3540_v13 }
0x1026   :  { %v3544_v37 = vadd.f32 %v3541_v54, %v3444_v17 }
0x1028   :  { %v3551_v20 = vmul.f32 %v4140_v7, %v3544_v37 }
0x102a   :  { %v3558_v23 = vadd.f32 %v4141_v1, %v3551_v20 }
0x102c   :  { %3577 = vmatpush.msrb.mxu2 %v3558_v23 }
0x102e   :  { %3578 = vmatpush.msrb.mxu2 %v3557_v14 }
0x102f   :  { %3931 = vmatmul.msk.f32.vlgmr.msrb.gmra.mxu2 %vm404_vm8, %v3559_v33 }
0x10b2   :  { %v3580_v43 = vpop.f32.mrf.mxu2 }
0x10b3   :  { %3584 = vst.msk [vmem:[#allocation2] sm:$0x3] %vm3583_vm3, %v3580_v43 }
0x10b4   :  { %4376 = shalt.err (!%p4373_p4)
}
0x10b5   :  { %3595 = dma.vmem_to_hbm [thread:$0]  %s3591_s18, 32, %s3593_s23, [#allocation3]  }
0x10b6   :  { %4377 = dma.done.wait [#allocation3], 32  }
0x10b7   :  { %4378 = vsyncadd [#allocation3], 4294967264 }
0x10b8   :  { %3600 = vsyncpa [#allocation3], 1 }

</bundles_post_ra>
